<compile_context>
chip_gen: v5e
topology: v5e:2x2
jax: 0.10.0
libtpu: 0.0.40
codegen_flags: <defaults>
</compile_context>

<pallas_src>
import functools
import math

import jax
import jax.numpy as jnp
from jax.experimental import pallas as pl
from jax.experimental.pallas import tpu as pltpu


# -----------------------------------------------------------------------------
# Pallas kernel: one (batch, layer) grid step of the post-norm encoder stack
# -----------------------------------------------------------------------------
def _layer_norm(x, w, b, eps=1e-5):
    mu = jnp.mean(x, axis=-1, keepdims=True)
    xc = x - mu
    var = jnp.mean(xc * xc, axis=-1, keepdims=True)
    return xc * jax.lax.rsqrt(var + eps) * w + b


def matchert_layer_kernel(x_ref, wqkv_ref, bqkv_ref, wo_ref, bo_ref,
                          ln1w_ref, ln1b_ref, w1_ref, b1_ref,
                          w2_ref, b2_ref, ln2w_ref, ln2b_ref,
                          clsw_ref, clsb_ref, out_ref, x_carry,
                          *, nhead, l_real):
    """Post-norm TransformerEncoderLayer (dropout=0, relu); layer index is the
    second grid axis.  Activations are carried across layers in `x_carry`
    (VMEM scratch); the Linear(D->1) classifier runs on the CLS row (row 0) at
    the last layer."""
    layer = pl.program_id(1)
    last_layer = pl.num_programs(1) - 1

    @pl.when(layer == 0)
    def _():
        x_carry[...] = x_ref[0]                         # load padded tokens once

    x = x_carry[...]                                    # (Lp, D) f32
    Lp, D = x.shape
    dh = D // nhead

    # Additive key-padding bias: 0 on real key columns, -1e30 on padded ones.
    col = jax.lax.broadcasted_iota(jnp.int32, (1, Lp), 1)
    key_bias = jnp.where(col < l_real, 0.0, -1e30).astype(jnp.float32)

    # --- fused QKV projection; keep only a bf16 copy of qkv live --------------
    qkv = jnp.dot(x.astype(jnp.bfloat16), wqkv_ref[0],
                  preferred_element_type=jnp.float32) + bqkv_ref[0]   # (Lp, 3D)
    qkv_bf = qkv.astype(jnp.bfloat16)

    # --- multi-head attention (1/sqrt(dh) already folded into Q weights) ------
    head_outs = []
    for h in range(nhead):                              # static per-head loop
        lo = h * dh
        qh = qkv_bf[:, lo:lo + dh]
        kh = qkv_bf[:, D + lo:D + lo + dh]
        vh = qkv_bf[:, 2 * D + lo:2 * D + lo + dh]
        # scores (Lp, Lp) = qh @ kh^T (contract last dims, no transpose op)
        s = jax.lax.dot_general(qh, kh, (((1,), (1,)), ((), ())),
                                preferred_element_type=jnp.float32)
        s = s + key_bias                                # mask padded key columns
        s = s - jnp.max(s, axis=-1, keepdims=True)
        e = jnp.exp(s)
        denom = jnp.sum(e, axis=-1, keepdims=True)
        # PV matmul on the unnormalized exp; normalize the small (Lp, dh) head
        # output instead of the (Lp, Lp) tile.
        o = jnp.dot(e.astype(jnp.bfloat16), vh, preferred_element_type=jnp.float32)
        o = o * pl.reciprocal(denom, approx=True)
        head_outs.append(o.astype(jnp.bfloat16))

    # one K=128 output projection on the bf16 concat instead of nhead K=32 dots
    attn_bf = jnp.concatenate(head_outs, axis=-1)                       # (Lp, D)
    attn = jnp.dot(attn_bf, wo_ref[0],
                   preferred_element_type=jnp.float32) + bo_ref[0]

    # --- residual + LayerNorm 1 ------------------------------------------------
    y = _layer_norm(x + attn, ln1w_ref[0], ln1b_ref[0])

    # --- FFN: relu(y @ W1 + b1) @ W2 + b2 (dropout = 0) ------------------------
    hidden = jnp.maximum(
        jnp.dot(y.astype(jnp.bfloat16), w1_ref[0],
                preferred_element_type=jnp.float32) + b1_ref[0], 0.0)
    ff = jnp.dot(hidden.astype(jnp.bfloat16), w2_ref[0],
                 preferred_element_type=jnp.float32) + b2_ref[0]

    # --- residual + LayerNorm 2 -> carry to next layer --------------------------
    x_new = _layer_norm(y + ff, ln2w_ref[0], ln2b_ref[0])
    x_carry[...] = x_new

    # --- classifier epilogue on the CLS token (row 0) at the last layer ---------
    @pl.when(layer == last_layer)
    def _():
        cls = x_new[0:1, :]                                             # (1, D)
        logit = jnp.sum(cls * clsw_ref[...], axis=-1, keepdims=True) + clsb_ref[...]
        out_ref[0] = jnp.broadcast_to(logit, (1, D))   # lane-dense write; lane 0 = logit


def _vmem_limit_bytes(Lp, D, F):
    """Explicit scoped-VMEM budget: double-buffered per-layer weights + IO blocks
    + resident activation carry + intermediates, clamped to a safe range."""
    bf16, f32 = 2, 4
    w_layer = (D * 3 * D + D * D + D * F + F * D) * bf16 \
        + (3 * D + D + 2 * D + F + D + 2 * D) * f32          # biases + LN params
    x_blk = Lp * D * f32
    out_blk = D * f32
    cls = (D + 1) * f32
    resident = 2 * (w_layer + x_blk + out_blk + cls) + x_blk  # dbl-buffered IO + carry
    interm = Lp * 3 * D * (f32 + bf16) + 2 * Lp * Lp * f32 \
        + Lp * F * (f32 + bf16) + 6 * Lp * D * f32            # qkv/scores/hidden/residuals
    total = resident + interm + (4 << 20)
    return int(min(max(total, 16 << 20), 48 << 20))


def run_matchert_stack(x, fp, clsw, clsb, nhead, num_layers, l_real):
    """x: (B, L_pad, D) f32 tokens. Returns (B,) logits."""
    B, Lp, D = x.shape
    F = fp['w1'].shape[-1]

    def layer_spec(tail):
        return pl.BlockSpec((1,) + tail, lambda b, l: (l, 0, 0))

    def const_spec(shape):
        n = len(shape)
        return pl.BlockSpec(shape, lambda b, l, n=n: (0,) * n)

    kernel = functools.partial(matchert_layer_kernel, nhead=nhead, l_real=l_real)
    out = pl.pallas_call(
        kernel,
        out_shape=jax.ShapeDtypeStruct((B, 1, D), jnp.float32),
        grid=(B, num_layers),
        in_specs=[
            pl.BlockSpec((1, Lp, D), lambda b, l: (b, 0, 0)),   # tokens (const over l)
            layer_spec((D, 3 * D)), layer_spec((1, 3 * D)),     # wqkv, bqkv
            layer_spec((D, D)), layer_spec((1, D)),             # wo, bo
            layer_spec((1, D)), layer_spec((1, D)),             # ln1w, ln1b
            layer_spec((D, F)), layer_spec((1, F)),             # w1, b1
            layer_spec((F, D)), layer_spec((1, D)),             # w2, b2
            layer_spec((1, D)), layer_spec((1, D)),             # ln2w, ln2b
            const_spec((1, D)), const_spec((1, 1)),             # classifier w, b
        ],
        out_specs=pl.BlockSpec((1, 1, D), lambda b, l: (b, 0, 0)),
        scratch_shapes=[pltpu.VMEM((Lp, D), jnp.float32)],      # activation carry
        compiler_params=pltpu.CompilerParams(
            # Batch axis "parallel" (shards across v7x's two TensorCores; neutral
            # on v5e/v6e); layer axis carries state -> "arbitrary".
            # TODO(synk): if v7x profiling shows both batch elements landing on
            # one TC, switch this axis to pltpu.CORE_PARALLEL.
            dimension_semantics=("parallel", "arbitrary"),
            vmem_limit_bytes=_vmem_limit_bytes(Lp, D, F)),
    )(x, fp['wqkv'], fp['bqkv'], fp['wo'], fp['bo'],
      fp['ln1w'], fp['ln1b'], fp['w1'], fp['b1'],
      fp['w2'], fp['b2'], fp['ln2w'], fp['ln2b'],
      clsw, clsb)
    return out[:, 0, 0]


# -----------------------------------------------------------------------------
# Plain-JAX glue (reshapes, embeddings, parameter setup)
# -----------------------------------------------------------------------------
def change_shape(x):
    """(B, S, D) -> (B, D, 7, -1); drops the first token if S == 50."""
    b, s, d = x.shape
    x = jnp.transpose(x, (0, 2, 1))
    if x.shape[-1] == 50:
        x = x[:, :, 1:]
    return x.reshape(b, d, 7, -1)


def position_embedding_sine(h, w, num_pos_feats, temperature=10000.0, scale=2.0):
    """DETR-style sine positional embedding on a mask of ones; normalize=True."""
    ones = jnp.ones((1, h, w), jnp.float32)
    y_embed = jnp.cumsum(ones, axis=1)
    x_embed = jnp.cumsum(ones, axis=2)
    eps = 1e-6
    y_embed = y_embed / (y_embed[:, -1:, :] + eps) * scale
    x_embed = x_embed / (x_embed[:, :, -1:] + eps) * scale
    dim_t = jnp.arange(num_pos_feats, dtype=jnp.float32)
    dim_t = temperature ** (2.0 * jnp.floor(dim_t / 2.0) / num_pos_feats)
    pos_x = x_embed[:, :, :, None] / dim_t
    pos_y = y_embed[:, :, :, None] / dim_t
    pos_x = jnp.stack([jnp.sin(pos_x[..., 0::2]), jnp.cos(pos_x[..., 1::2])],
                      axis=4).reshape(1, h, w, num_pos_feats)
    pos_y = jnp.stack([jnp.sin(pos_y[..., 0::2]), jnp.cos(pos_y[..., 1::2])],
                      axis=4).reshape(1, h, w, num_pos_feats)
    pos = jnp.concatenate([pos_y, pos_x], axis=3)            # (1, h, w, 2*npf)
    return jnp.transpose(pos, (0, 3, 1, 2))                  # (1, 2*npf, h, w)


def xavier_uniform(key, shape):
    fan_in, fan_out = shape[0], shape[1]
    a = math.sqrt(6.0 / (fan_in + fan_out))
    return jax.random.uniform(key, shape, jnp.float32, -a, a)


def init_params(key, d_model, num_layers, dim_ff):
    k_seg, k_cls, key = jax.random.split(key, 3)
    params = {
        'seg': xavier_uniform(k_seg, (4, d_model)),            # nn.Embedding(4, d_model)
        'cls_w': xavier_uniform(k_cls, (1, d_model)),           # nn.Linear(d_model, 1)
        'cls_b': jnp.zeros((1, 1), jnp.float32),
        'layers': [],
    }
    for _ in range(num_layers):
        key, k1, k2, k3, k4 = jax.random.split(key, 5)
        params['layers'].append({
            'wqkv': xavier_uniform(k1, (d_model, 3 * d_model)),
            'bqkv': jnp.zeros((1, 3 * d_model), jnp.float32),
            'wo': xavier_uniform(k2, (d_model, d_model)),
            'bo': jnp.zeros((1, d_model), jnp.float32),
            'ln1w': jnp.ones((1, d_model), jnp.float32),
            'ln1b': jnp.zeros((1, d_model), jnp.float32),
            'w1': xavier_uniform(k3, (d_model, dim_ff)),
            'b1': jnp.zeros((1, dim_ff), jnp.float32),
            'w2': xavier_uniform(k4, (dim_ff, d_model)),
            'b2': jnp.zeros((1, d_model), jnp.float32),
            'ln2w': jnp.ones((1, d_model), jnp.float32),
            'ln2b': jnp.zeros((1, d_model), jnp.float32),
        })
    return params


def prepare_fused_params(params, nhead, d_model):
    """Stack per-layer weights on a leading (num_layers, ...) axis, fold
    1/sqrt(dh) into the Q columns of wqkv/bqkv, and cast matmul weights to bf16
    (biases / LN params stay f32)."""
    dh = d_model // nhead
    scale = 1.0 / math.sqrt(dh)
    bf16_names = ('wqkv', 'wo', 'w1', 'w2')
    stacked = {}
    for name in params['layers'][0].keys():
        a = jnp.stack([lp[name] for lp in params['layers']], axis=0)
        if name in ('wqkv', 'bqkv'):
            a = a.at[:, :, :d_model].multiply(scale)           # fold scale into Q
        if name in bf16_names:
            a = a.astype(jnp.bfloat16)
        stacked[name] = a
    return stacked


def matchert_forward(params, src_global, src_local, tgt_global, tgt_local,
                     d_model, nhead):
    # src_global / tgt_global are accepted but unused by the reference forward.
    del src_global, tgt_global

    src_l = change_shape(src_local)                            # (B, D, 7, 7)
    tgt_l = change_shape(tgt_local)
    b, f, h, w = src_l.shape

    pos = position_embedding_sine(h, w, d_model // 2)          # (1, D, h, w)
    pos_flat = jnp.broadcast_to(pos, (b, f, h, w)).reshape(b, f, h * w)

    seg = params['seg']
    cls_tok = jnp.broadcast_to(seg[0][None, :, None], (b, f, 1))
    sep_tok = jnp.broadcast_to(seg[1][None, :, None], (b, f, 1))
    src_tok = src_l.reshape(b, f, h * w) + seg[2][None, :, None] + pos_flat
    tgt_tok = tgt_l.reshape(b, f, h * w) + seg[3][None, :, None] + pos_flat

    feats = jnp.concatenate([cls_tok, src_tok, sep_tok, tgt_tok], axis=-1)  # (B, D, L)
    x = jnp.transpose(feats, (0, 2, 1))                                     # (B, L, D)

    # Pad the token axis to a multiple of 128 for aligned, lane-dense tiles;
    # padded key columns are masked inside the kernel.
    L = x.shape[1]
    L_pad = ((L + 127) // 128) * 128
    if L_pad != L:
        x = jnp.pad(x, ((0, 0), (0, L_pad - L), (0, 0)))

    num_layers = len(params['layers'])
    fp = prepare_fused_params(params, nhead, d_model)
    logits = run_matchert_stack(x, fp, params['cls_w'], params['cls_b'],
                                nhead, num_layers, L)
    return logits                                               # (B,)


# -----------------------------------------------------------------------------
if __name__ == "__main__":
    # Small shapes consistent with the module (seq_len=50 exercises the "drop
    # first token" path -> 7x7 grid; d_model even and divisible by nhead).
    B, S = 2, 50
    D_MODEL, NHEAD, NLAYERS, DFF, D_GLOBAL = 128, 4, 2, 256, 32

    key = jax.random.PRNGKey(0)
    kp, k1, k2, k3, k4 = jax.random.split(key, 5)
    params = init_params(kp, D_MODEL, NLAYERS, DFF)

    src_global = jax.random.normal(k1, (B, D_GLOBAL), jnp.float32)
    tgt_global = jax.random.normal(k2, (B, D_GLOBAL), jnp.float32)
    src_local = jax.random.normal(k3, (B, S, D_MODEL), jnp.float32)
    tgt_local = jax.random.normal(k4, (B, S, D_MODEL), jnp.float32)

    forward = jax.jit(functools.partial(matchert_forward,
                                        d_model=D_MODEL, nhead=NHEAD))
    out = forward(params, src_global, src_local, tgt_global, tgt_local)
    out = jax.block_until_ready(out)
    assert out.shape == (B,) and out.dtype == jnp.float32
    assert bool(jnp.all(jnp.isfinite(out)))
    print("KERNEL_OK")
</pallas_src>

<mosaic_0001>
module attributes {stable_mosaic.version = 11 : i64} {
  func.func @matchert_layer_kernel(%arg0: i32, %arg1: i32, %arg2: memref<1x128x128xf32, #tpu.memory_space<vmem>>, %arg3: memref<1x128x384xbf16, #tpu.memory_space<vmem>>, %arg4: memref<1x1x384xf32, #tpu.memory_space<vmem>>, %arg5: memref<1x128x128xbf16, #tpu.memory_space<vmem>>, %arg6: memref<1x1x128xf32, #tpu.memory_space<vmem>>, %arg7: memref<1x1x128xf32, #tpu.memory_space<vmem>>, %arg8: memref<1x1x128xf32, #tpu.memory_space<vmem>>, %arg9: memref<1x128x256xbf16, #tpu.memory_space<vmem>>, %arg10: memref<1x1x256xf32, #tpu.memory_space<vmem>>, %arg11: memref<1x256x128xbf16, #tpu.memory_space<vmem>>, %arg12: memref<1x1x128xf32, #tpu.memory_space<vmem>>, %arg13: memref<1x1x128xf32, #tpu.memory_space<vmem>>, %arg14: memref<1x1x128xf32, #tpu.memory_space<vmem>>, %arg15: memref<1x128xf32, #tpu.memory_space<vmem>>, %arg16: memref<1x1xf32, #tpu.memory_space<vmem>>, %arg17: memref<1x1x128xf32, #tpu.memory_space<vmem>>, %arg18: memref<128x128xf32, #tpu.memory_space<vmem>>) attributes {dimension_semantics = [#tpu.dimension_semantics<parallel>, #tpu.dimension_semantics<arbitrary>], iteration_bounds = array<i64: 2, 2>, scalar_prefetch = 0 : i64, scratch_operands = 1 : i64, tpu.core_type = #tpu.core_type<tc>, window_params = [{transform_indices = @transform_0, window_bounds = array<i64: 1, 128, 128>}, {transform_indices = @transform_1, window_bounds = array<i64: 1, 128, 384>}, {transform_indices = @transform_2, window_bounds = array<i64: 1, 1, 384>}, {transform_indices = @transform_3, window_bounds = array<i64: 1, 128, 128>}, {transform_indices = @transform_4, window_bounds = array<i64: 1, 1, 128>}, {transform_indices = @transform_5, window_bounds = array<i64: 1, 1, 128>}, {transform_indices = @transform_6, window_bounds = array<i64: 1, 1, 128>}, {transform_indices = @transform_7, window_bounds = array<i64: 1, 128, 256>}, {transform_indices = @transform_8, window_bounds = array<i64: 1, 1, 256>}, {transform_indices = @transform_9, window_bounds = array<i64: 1, 256, 128>}, {transform_indices = @transform_10, window_bounds = array<i64: 1, 1, 128>}, {transform_indices = @transform_11, window_bounds = array<i64: 1, 1, 128>}, {transform_indices = @transform_12, window_bounds = array<i64: 1, 1, 128>}, {pipeline_mode = #tpu.pipeline_mode<synchronous>, transform_indices = @transform_13, window_bounds = array<i64: 1, 128>}, {pipeline_mode = #tpu.pipeline_mode<synchronous>, transform_indices = @transform_14, window_bounds = array<i64: 1, 1>}, {transform_indices = @transform_15, window_bounds = array<i64: 1, 1, 128>}]} {
    %c0_i32 = arith.constant 0 : i32
    %0 = arith.cmpi eq, %arg1, %c0_i32 : i32
    %1 = arith.extui %0 : i1 to i32
    %c0_i32_0 = arith.constant 0 : i32
    %2 = arith.cmpi ne, %1, %c0_i32_0 : i32
    scf.if %2 {
      %c0_73 = arith.constant 0 : index
      %c0_74 = arith.constant 0 : index
      %c0_75 = arith.constant 0 : index
      %175 = vector.load %arg2[%c0_73, %c0_74, %c0_75] : memref<1x128x128xf32, #tpu.memory_space<vmem>>, vector<1x128x128xf32>
      %176 = vector.shape_cast %175 : vector<1x128x128xf32> to vector<128x128xf32>
      %c0_76 = arith.constant 0 : index
      %c0_77 = arith.constant 0 : index
      %177 = vector.load %arg18[%c0_76, %c0_77] : memref<128x128xf32, #tpu.memory_space<vmem>>, vector<128x128xf32>
      tpu.vector_store %arg18[%c0_76, %c0_77], %176 {strides = array<i32>} : memref<128x128xf32, #tpu.memory_space<vmem>>, vector<128x128xf32>,
    } else {
    }
    %c0 = arith.constant 0 : index
    %c0_1 = arith.constant 0 : index
    %3 = vector.load %arg18[%c0, %c0_1] : memref<128x128xf32, #tpu.memory_space<vmem>>, vector<128x128xf32>
    %4 = tpu.iota {dimensions = array<i32: 1>} : vector<1x128xi32>
    %c100_i32 = arith.constant 100 : i32
    %5 = vector.broadcast %c100_i32 : i32 to vector<1x128xi32>
    %6 = arith.cmpi slt, %4, %5 : vector<1x128xi32>
    %cst = arith.constant 0.000000e+00 : f32
    %cst_2 = arith.constant -1.000000e+30 : f32
    %7 = vector.broadcast %cst : f32 to vector<1x128xf32>
    %8 = vector.broadcast %cst_2 : f32 to vector<1x128xf32>
    %9 = arith.select %6, %7, %8 : vector<1x128xi1>, vector<1x128xf32>
    %10 = arith.truncf %3 : vector<128x128xf32> to vector<128x128xbf16>
    %c0_3 = arith.constant 0 : index
    %c0_4 = arith.constant 0 : index
    %c0_5 = arith.constant 0 : index
    %11 = vector.load %arg3[%c0_3, %c0_4, %c0_5] : memref<1x128x384xbf16, #tpu.memory_space<vmem>>, vector<1x128x384xbf16>
    %12 = vector.shape_cast %11 : vector<1x128x384xbf16> to vector<128x384xbf16>
    %cst_6 = arith.constant dense<0.000000e+00> : vector<128x384xf32>
    %13 = tpu.matmul %10, %12, %cst_6 {dimension_numbers = #tpu.dot_dimension_numbers<[1], [0], [0], [1], [0, 0, 1, 1], [], []>} : vector<128x128xbf16>, vector<128x384xbf16>, vector<128x384xf32> -> vector<128x384xf32>
    %c0_7 = arith.constant 0 : index
    %c0_8 = arith.constant 0 : index
    %c0_9 = arith.constant 0 : index
    %14 = vector.load %arg4[%c0_7, %c0_8, %c0_9] : memref<1x1x384xf32, #tpu.memory_space<vmem>>, vector<1x1x384xf32>
    %15 = vector.shape_cast %14 : vector<1x1x384xf32> to vector<1x384xf32>
    %16 = vector.broadcast %15 : vector<1x384xf32> to vector<128x384xf32>
    %17 = arith.addf %13, %16 : vector<128x384xf32>
    %18 = arith.truncf %17 : vector<128x384xf32> to vector<128x384xbf16>
    %19 = vector.extract_strided_slice %18 {offsets = [0, 0], sizes = [128, 32], strides = [1, 1]} : vector<128x384xbf16> to vector<128x32xbf16>
    %20 = vector.extract_strided_slice %18 {offsets = [0, 128], sizes = [128, 32], strides = [1, 1]} : vector<128x384xbf16> to vector<128x32xbf16>
    %21 = vector.extract_strided_slice %18 {offsets = [0, 256], sizes = [128, 32], strides = [1, 1]} : vector<128x384xbf16> to vector<128x32xbf16>
    %cst_10 = arith.constant dense<0.000000e+00> : vector<128x128xf32>
    %22 = tpu.matmul %19, %20, %cst_10 {dimension_numbers = #tpu.dot_dimension_numbers<[1], [1], [0], [0], [0, 0, 1, 0], [], []>} : vector<128x32xbf16>, vector<128x32xbf16>, vector<128x128xf32> -> vector<128x128xf32>
    %23 = vector.broadcast %9 : vector<1x128xf32> to vector<128x128xf32>
    %24 = arith.addf %22, %23 : vector<128x128xf32>
    %cst_11 = arith.constant dense<0xFF800000> : vector<128xf32>
    %25 = vector.multi_reduction <maximumf>, %24, %cst_11 [1] : vector<128x128xf32> to vector<128xf32>
    %26 = vector.shape_cast %25 : vector<128xf32> to vector<128x1xf32>
    %27 = vector.broadcast %26 : vector<128x1xf32> to vector<128x128xf32>
    %28 = arith.subf %24, %27 : vector<128x128xf32>
    %29 = math.exp %28 : vector<128x128xf32>
    %cst_12 = arith.constant dense<0.000000e+00> : vector<128xf32>
    %30 = vector.multi_reduction <add>, %29, %cst_12 [1] : vector<128x128xf32> to vector<128xf32>
    %31 = vector.shape_cast %30 : vector<128xf32> to vector<128x1xf32>
    %32 = arith.truncf %29 : vector<128x128xf32> to vector<128x128xbf16>
    %cst_13 = arith.constant dense<0.000000e+00> : vector<128x32xf32>
    %33 = tpu.matmul %32, %21, %cst_13 {dimension_numbers = #tpu.dot_dimension_numbers<[1], [0], [0], [1], [0, 0, 1, 1], [], []>} : vector<128x128xbf16>, vector<128x32xbf16>, vector<128x32xf32> -> vector<128x32xf32>
    %34 = tpu.reciprocal %31 {approx = true} : vector<128x1xf32> -> vector<128x1xf32>
    %35 = vector.broadcast %34 : vector<128x1xf32> to vector<128x32xf32>
    %36 = arith.mulf %33, %35 : vector<128x32xf32>
    %37 = arith.truncf %36 : vector<128x32xf32> to vector<128x32xbf16>
    %38 = vector.extract_strided_slice %18 {offsets = [0, 32], sizes = [128, 32], strides = [1, 1]} : vector<128x384xbf16> to vector<128x32xbf16>
    %39 = vector.extract_strided_slice %18 {offsets = [0, 160], sizes = [128, 32], strides = [1, 1]} : vector<128x384xbf16> to vector<128x32xbf16>
    %40 = vector.extract_strided_slice %18 {offsets = [0, 288], sizes = [128, 32], strides = [1, 1]} : vector<128x384xbf16> to vector<128x32xbf16>
    %cst_14 = arith.constant dense<0.000000e+00> : vector<128x128xf32>
    %41 = tpu.matmul %38, %39, %cst_14 {dimension_numbers = #tpu.dot_dimension_numbers<[1], [1], [0], [0], [0, 0, 1, 0], [], []>} : vector<128x32xbf16>, vector<128x32xbf16>, vector<128x128xf32> -> vector<128x128xf32>
    %42 = vector.broadcast %9 : vector<1x128xf32> to vector<128x128xf32>
    %43 = arith.addf %41, %42 : vector<128x128xf32>
    %cst_15 = arith.constant dense<0xFF800000> : vector<128xf32>
    %44 = vector.multi_reduction <maximumf>, %43, %cst_15 [1] : vector<128x128xf32> to vector<128xf32>
    %45 = vector.shape_cast %44 : vector<128xf32> to vector<128x1xf32>
    %46 = vector.broadcast %45 : vector<128x1xf32> to vector<128x128xf32>
    %47 = arith.subf %43, %46 : vector<128x128xf32>
    %48 = math.exp %47 : vector<128x128xf32>
    %cst_16 = arith.constant dense<0.000000e+00> : vector<128xf32>
    %49 = vector.multi_reduction <add>, %48, %cst_16 [1] : vector<128x128xf32> to vector<128xf32>
    %50 = vector.shape_cast %49 : vector<128xf32> to vector<128x1xf32>
    %51 = arith.truncf %48 : vector<128x128xf32> to vector<128x128xbf16>
    %cst_17 = arith.constant dense<0.000000e+00> : vector<128x32xf32>
    %52 = tpu.matmul %51, %40, %cst_17 {dimension_numbers = #tpu.dot_dimension_numbers<[1], [0], [0], [1], [0, 0, 1, 1], [], []>} : vector<128x128xbf16>, vector<128x32xbf16>, vector<128x32xf32> -> vector<128x32xf32>
    %53 = tpu.reciprocal %50 {approx = true} : vector<128x1xf32> -> vector<128x1xf32>
    %54 = vector.broadcast %53 : vector<128x1xf32> to vector<128x32xf32>
    %55 = arith.mulf %52, %54 : vector<128x32xf32>
    %56 = arith.truncf %55 : vector<128x32xf32> to vector<128x32xbf16>
    %57 = vector.extract_strided_slice %18 {offsets = [0, 64], sizes = [128, 32], strides = [1, 1]} : vector<128x384xbf16> to vector<128x32xbf16>
    %58 = vector.extract_strided_slice %18 {offsets = [0, 192], sizes = [128, 32], strides = [1, 1]} : vector<128x384xbf16> to vector<128x32xbf16>
    %59 = vector.extract_strided_slice %18 {offsets = [0, 320], sizes = [128, 32], strides = [1, 1]} : vector<128x384xbf16> to vector<128x32xbf16>
    %cst_18 = arith.constant dense<0.000000e+00> : vector<128x128xf32>
    %60 = tpu.matmul %57, %58, %cst_18 {dimension_numbers = #tpu.dot_dimension_numbers<[1], [1], [0], [0], [0, 0, 1, 0], [], []>} : vector<128x32xbf16>, vector<128x32xbf16>, vector<128x128xf32> -> vector<128x128xf32>
    %61 = vector.broadcast %9 : vector<1x128xf32> to vector<128x128xf32>
    %62 = arith.addf %60, %61 : vector<128x128xf32>
    %cst_19 = arith.constant dense<0xFF800000> : vector<128xf32>
    %63 = vector.multi_reduction <maximumf>, %62, %cst_19 [1] : vector<128x128xf32> to vector<128xf32>
    %64 = vector.shape_cast %63 : vector<128xf32> to vector<128x1xf32>
    %65 = vector.broadcast %64 : vector<128x1xf32> to vector<128x128xf32>
    %66 = arith.subf %62, %65 : vector<128x128xf32>
    %67 = math.exp %66 : vector<128x128xf32>
    %cst_20 = arith.constant dense<0.000000e+00> : vector<128xf32>
    %68 = vector.multi_reduction <add>, %67, %cst_20 [1] : vector<128x128xf32> to vector<128xf32>
    %69 = vector.shape_cast %68 : vector<128xf32> to vector<128x1xf32>
    %70 = arith.truncf %67 : vector<128x128xf32> to vector<128x128xbf16>
    %cst_21 = arith.constant dense<0.000000e+00> : vector<128x32xf32>
    %71 = tpu.matmul %70, %59, %cst_21 {dimension_numbers = #tpu.dot_dimension_numbers<[1], [0], [0], [1], [0, 0, 1, 1], [], []>} : vector<128x128xbf16>, vector<128x32xbf16>, vector<128x32xf32> -> vector<128x32xf32>
    %72 = tpu.reciprocal %69 {approx = true} : vector<128x1xf32> -> vector<128x1xf32>
    %73 = vector.broadcast %72 : vector<128x1xf32> to vector<128x32xf32>
    %74 = arith.mulf %71, %73 : vector<128x32xf32>
    %75 = arith.truncf %74 : vector<128x32xf32> to vector<128x32xbf16>
    %76 = vector.extract_strided_slice %18 {offsets = [0, 96], sizes = [128, 32], strides = [1, 1]} : vector<128x384xbf16> to vector<128x32xbf16>
    %77 = vector.extract_strided_slice %18 {offsets = [0, 224], sizes = [128, 32], strides = [1, 1]} : vector<128x384xbf16> to vector<128x32xbf16>
    %78 = vector.extract_strided_slice %18 {offsets = [0, 352], sizes = [128, 32], strides = [1, 1]} : vector<128x384xbf16> to vector<128x32xbf16>
    %cst_22 = arith.constant dense<0.000000e+00> : vector<128x128xf32>
    %79 = tpu.matmul %76, %77, %cst_22 {dimension_numbers = #tpu.dot_dimension_numbers<[1], [1], [0], [0], [0, 0, 1, 0], [], []>} : vector<128x32xbf16>, vector<128x32xbf16>, vector<128x128xf32> -> vector<128x128xf32>
    %80 = vector.broadcast %9 : vector<1x128xf32> to vector<128x128xf32>
    %81 = arith.addf %79, %80 : vector<128x128xf32>
    %cst_23 = arith.constant dense<0xFF800000> : vector<128xf32>
    %82 = vector.multi_reduction <maximumf>, %81, %cst_23 [1] : vector<128x128xf32> to vector<128xf32>
    %83 = vector.shape_cast %82 : vector<128xf32> to vector<128x1xf32>
    %84 = vector.broadcast %83 : vector<128x1xf32> to vector<128x128xf32>
    %85 = arith.subf %81, %84 : vector<128x128xf32>
    %86 = math.exp %85 : vector<128x128xf32>
    %cst_24 = arith.constant dense<0.000000e+00> : vector<128xf32>
    %87 = vector.multi_reduction <add>, %86, %cst_24 [1] : vector<128x128xf32> to vector<128xf32>
    %88 = vector.shape_cast %87 : vector<128xf32> to vector<128x1xf32>
    %89 = arith.truncf %86 : vector<128x128xf32> to vector<128x128xbf16>
    %cst_25 = arith.constant dense<0.000000e+00> : vector<128x32xf32>
    %90 = tpu.matmul %89, %78, %cst_25 {dimension_numbers = #tpu.dot_dimension_numbers<[1], [0], [0], [1], [0, 0, 1, 1], [], []>} : vector<128x128xbf16>, vector<128x32xbf16>, vector<128x32xf32> -> vector<128x32xf32>
    %91 = tpu.reciprocal %88 {approx = true} : vector<128x1xf32> -> vector<128x1xf32>
    %92 = vector.broadcast %91 : vector<128x1xf32> to vector<128x32xf32>
    %93 = arith.mulf %90, %92 : vector<128x32xf32>
    %94 = arith.truncf %93 : vector<128x32xf32> to vector<128x32xbf16>
    %95 = tpu.concatenate %37, %56, %75, %94 in 1 : vector<128x32xbf16>, vector<128x32xbf16>, vector<128x32xbf16>, vector<128x32xbf16> -> vector<128x128xbf16>
    %c0_26 = arith.constant 0 : index
    %c0_27 = arith.constant 0 : index
    %c0_28 = arith.constant 0 : index
    %96 = vector.load %arg5[%c0_26, %c0_27, %c0_28] : memref<1x128x128xbf16, #tpu.memory_space<vmem>>, vector<1x128x128xbf16>
    %97 = vector.shape_cast %96 : vector<1x128x128xbf16> to vector<128x128xbf16>
    %cst_29 = arith.constant dense<0.000000e+00> : vector<128x128xf32>
    %98 = tpu.matmul %95, %97, %cst_29 {dimension_numbers = #tpu.dot_dimension_numbers<[1], [0], [0], [1], [0, 0, 1, 1], [], []>} : vector<128x128xbf16>, vector<128x128xbf16>, vector<128x128xf32> -> vector<128x128xf32>
    %c0_30 = arith.constant 0 : index
    %c0_31 = arith.constant 0 : index
    %c0_32 = arith.constant 0 : index
    %99 = vector.load %arg6[%c0_30, %c0_31, %c0_32] : memref<1x1x128xf32, #tpu.memory_space<vmem>>, vector<1x1x128xf32>
    %100 = vector.shape_cast %99 : vector<1x1x128xf32> to vector<1x128xf32>
    %101 = vector.broadcast %100 : vector<1x128xf32> to vector<128x128xf32>
    %102 = arith.addf %98, %101 : vector<128x128xf32>
    %103 = arith.addf %3, %102 : vector<128x128xf32>
    %c0_33 = arith.constant 0 : index
    %c0_34 = arith.constant 0 : index
    %c0_35 = arith.constant 0 : index
    %104 = vector.load %arg7[%c0_33, %c0_34, %c0_35] : memref<1x1x128xf32, #tpu.memory_space<vmem>>, vector<1x1x128xf32>
    %105 = vector.shape_cast %104 : vector<1x1x128xf32> to vector<1x128xf32>
    %c0_36 = arith.constant 0 : index
    %c0_37 = arith.constant 0 : index
    %c0_38 = arith.constant 0 : index
    %106 = vector.load %arg8[%c0_36, %c0_37, %c0_38] : memref<1x1x128xf32, #tpu.memory_space<vmem>>, vector<1x1x128xf32>
    %107 = vector.shape_cast %106 : vector<1x1x128xf32> to vector<1x128xf32>
    %cst_39 = arith.constant dense<0.000000e+00> : vector<128xf32>
    %108 = vector.multi_reduction <add>, %103, %cst_39 [1] : vector<128x128xf32> to vector<128xf32>
    %109 = vector.shape_cast %108 : vector<128xf32> to vector<128x1xf32>
    %cst_40 = arith.constant 1.280000e+02 : f32
    %110 = vector.broadcast %cst_40 : f32 to vector<128x1xf32>
    %111 = arith.divf %109, %110 : vector<128x1xf32>
    %112 = vector.broadcast %111 : vector<128x1xf32> to vector<128x128xf32>
    %113 = arith.subf %103, %112 : vector<128x128xf32>
    %114 = arith.mulf %113, %113 : vector<128x128xf32>
    %cst_41 = arith.constant dense<0.000000e+00> : vector<128xf32>
    %115 = vector.multi_reduction <add>, %114, %cst_41 [1] : vector<128x128xf32> to vector<128xf32>
    %116 = vector.shape_cast %115 : vector<128xf32> to vector<128x1xf32>
    %cst_42 = arith.constant 1.280000e+02 : f32
    %117 = vector.broadcast %cst_42 : f32 to vector<128x1xf32>
    %118 = arith.divf %116, %117 : vector<128x1xf32>
    %cst_43 = arith.constant 9.99999974E-6 : f32
    %119 = vector.broadcast %cst_43 : f32 to vector<128x1xf32>
    %120 = arith.addf %118, %119 : vector<128x1xf32>
    %121 = math.rsqrt %120 : vector<128x1xf32>
    %122 = vector.broadcast %121 : vector<128x1xf32> to vector<128x128xf32>
    %123 = arith.mulf %113, %122 : vector<128x128xf32>
    %124 = vector.broadcast %105 : vector<1x128xf32> to vector<128x128xf32>
    %125 = arith.mulf %123, %124 : vector<128x128xf32>
    %126 = vector.broadcast %107 : vector<1x128xf32> to vector<128x128xf32>
    %127 = arith.addf %125, %126 : vector<128x128xf32>
    %128 = arith.truncf %127 : vector<128x128xf32> to vector<128x128xbf16>
    %c0_44 = arith.constant 0 : index
    %c0_45 = arith.constant 0 : index
    %c0_46 = arith.constant 0 : index
    %129 = vector.load %arg9[%c0_44, %c0_45, %c0_46] : memref<1x128x256xbf16, #tpu.memory_space<vmem>>, vector<1x128x256xbf16>
    %130 = vector.shape_cast %129 : vector<1x128x256xbf16> to vector<128x256xbf16>
    %cst_47 = arith.constant dense<0.000000e+00> : vector<128x256xf32>
    %131 = tpu.matmul %128, %130, %cst_47 {dimension_numbers = #tpu.dot_dimension_numbers<[1], [0], [0], [1], [0, 0, 1, 1], [], []>} : vector<128x128xbf16>, vector<128x256xbf16>, vector<128x256xf32> -> vector<128x256xf32>
    %c0_48 = arith.constant 0 : index
    %c0_49 = arith.constant 0 : index
    %c0_50 = arith.constant 0 : index
    %132 = vector.load %arg10[%c0_48, %c0_49, %c0_50] : memref<1x1x256xf32, #tpu.memory_space<vmem>>, vector<1x1x256xf32>
    %133 = vector.shape_cast %132 : vector<1x1x256xf32> to vector<1x256xf32>
    %134 = vector.broadcast %133 : vector<1x256xf32> to vector<128x256xf32>
    %135 = arith.addf %131, %134 : vector<128x256xf32>
    %cst_51 = arith.constant 0.000000e+00 : f32
    %136 = vector.broadcast %cst_51 : f32 to vector<128x256xf32>
    %137 = arith.maximumf %135, %136 : vector<128x256xf32>
    %138 = arith.truncf %137 : vector<128x256xf32> to vector<128x256xbf16>
    %c0_52 = arith.constant 0 : index
    %c0_53 = arith.constant 0 : index
    %c0_54 = arith.constant 0 : index
    %139 = vector.load %arg11[%c0_52, %c0_53, %c0_54] : memref<1x256x128xbf16, #tpu.memory_space<vmem>>, vector<1x256x128xbf16>
    %140 = vector.shape_cast %139 : vector<1x256x128xbf16> to vector<256x128xbf16>
    %cst_55 = arith.constant dense<0.000000e+00> : vector<128x128xf32>
    %141 = tpu.matmul %138, %140, %cst_55 {dimension_numbers = #tpu.dot_dimension_numbers<[1], [0], [0], [1], [0, 0, 1, 1], [], []>} : vector<128x256xbf16>, vector<256x128xbf16>, vector<128x128xf32> -> vector<128x128xf32>
    %c0_56 = arith.constant 0 : index
    %c0_57 = arith.constant 0 : index
    %c0_58 = arith.constant 0 : index
    %142 = vector.load %arg12[%c0_56, %c0_57, %c0_58] : memref<1x1x128xf32, #tpu.memory_space<vmem>>, vector<1x1x128xf32>
    %143 = vector.shape_cast %142 : vector<1x1x128xf32> to vector<1x128xf32>
    %144 = vector.broadcast %143 : vector<1x128xf32> to vector<128x128xf32>
    %145 = arith.addf %141, %144 : vector<128x128xf32>
    %146 = arith.addf %127, %145 : vector<128x128xf32>
    %c0_59 = arith.constant 0 : index
    %c0_60 = arith.constant 0 : index
    %c0_61 = arith.constant 0 : index
    %147 = vector.load %arg13[%c0_59, %c0_60, %c0_61] : memref<1x1x128xf32, #tpu.memory_space<vmem>>, vector<1x1x128xf32>
    %148 = vector.shape_cast %147 : vector<1x1x128xf32> to vector<1x128xf32>
    %c0_62 = arith.constant 0 : index
    %c0_63 = arith.constant 0 : index
    %c0_64 = arith.constant 0 : index
    %149 = vector.load %arg14[%c0_62, %c0_63, %c0_64] : memref<1x1x128xf32, #tpu.memory_space<vmem>>, vector<1x1x128xf32>
    %150 = vector.shape_cast %149 : vector<1x1x128xf32> to vector<1x128xf32>
    %cst_65 = arith.constant dense<0.000000e+00> : vector<128xf32>
    %151 = vector.multi_reduction <add>, %146, %cst_65 [1] : vector<128x128xf32> to vector<128xf32>
    %152 = vector.shape_cast %151 : vector<128xf32> to vector<128x1xf32>
    %cst_66 = arith.constant 1.280000e+02 : f32
    %153 = vector.broadcast %cst_66 : f32 to vector<128x1xf32>
    %154 = arith.divf %152, %153 : vector<128x1xf32>
    %155 = vector.broadcast %154 : vector<128x1xf32> to vector<128x128xf32>
    %156 = arith.subf %146, %155 : vector<128x128xf32>
    %157 = arith.mulf %156, %156 : vector<128x128xf32>
    %cst_67 = arith.constant dense<0.000000e+00> : vector<128xf32>
    %158 = vector.multi_reduction <add>, %157, %cst_67 [1] : vector<128x128xf32> to vector<128xf32>
    %159 = vector.shape_cast %158 : vector<128xf32> to vector<128x1xf32>
    %cst_68 = arith.constant 1.280000e+02 : f32
    %160 = vector.broadcast %cst_68 : f32 to vector<128x1xf32>
    %161 = arith.divf %159, %160 : vector<128x1xf32>
    %cst_69 = arith.constant 9.99999974E-6 : f32
    %162 = vector.broadcast %cst_69 : f32 to vector<128x1xf32>
    %163 = arith.addf %161, %162 : vector<128x1xf32>
    %164 = math.rsqrt %163 : vector<128x1xf32>
    %165 = vector.broadcast %164 : vector<128x1xf32> to vector<128x128xf32>
    %166 = arith.mulf %156, %165 : vector<128x128xf32>
    %167 = vector.broadcast %148 : vector<1x128xf32> to vector<128x128xf32>
    %168 = arith.mulf %166, %167 : vector<128x128xf32>
    %169 = vector.broadcast %150 : vector<1x128xf32> to vector<128x128xf32>
    %170 = arith.addf %168, %169 : vector<128x128xf32>
    %c0_70 = arith.constant 0 : index
    %c0_71 = arith.constant 0 : index
    %171 = vector.load %arg18[%c0_70, %c0_71] : memref<128x128xf32, #tpu.memory_space<vmem>>, vector<128x128xf32>
    tpu.vector_store %arg18[%c0_70, %c0_71], %170 {strides = array<i32>} : memref<128x128xf32, #tpu.memory_space<vmem>>, vector<128x128xf32>,
    %c1_i32 = arith.constant 1 : i32
    %172 = arith.cmpi eq, %arg1, %c1_i32 : i32
    %173 = arith.extui %172 : i1 to i32
    %c0_i32_72 = arith.constant 0 : i32
    %174 = arith.cmpi ne, %173, %c0_i32_72 : i32
    scf.if %174 {
      %175 = vector.extract_strided_slice %170 {offsets = [0, 0], sizes = [1, 128], strides = [1, 1]} : vector<128x128xf32> to vector<1x128xf32>
      %c0_73 = arith.constant 0 : index
      %c0_74 = arith.constant 0 : index
      %176 = vector.load %arg15[%c0_73, %c0_74] : memref<1x128xf32, #tpu.memory_space<vmem>>, vector<1x128xf32>
      %177 = arith.mulf %175, %176 : vector<1x128xf32>
      %cst_75 = arith.constant dense<0.000000e+00> : vector<1xf32>
      %178 = vector.multi_reduction <add>, %177, %cst_75 [1] : vector<1x128xf32> to vector<1xf32>
      %179 = vector.shape_cast %178 : vector<1xf32> to vector<1x1xf32>
      %c0_76 = arith.constant 0 : index
      %c0_77 = arith.constant 0 : index
      %180 = vector.load %arg16[%c0_76, %c0_77] : memref<1x1xf32, #tpu.memory_space<vmem>>, vector<1x1xf32>
      %181 = arith.addf %179, %180 : vector<1x1xf32>
      %182 = vector.shape_cast %181 : vector<1x1xf32> to vector<1x1xf32>
      %183 = vector.broadcast %182 : vector<1x1xf32> to vector<1x128xf32>
      %c0_78 = arith.constant 0 : index
      %c0_79 = arith.constant 0 : index
      %c0_80 = arith.constant 0 : index
      %184 = vector.load %arg17[%c0_78, %c0_79, %c0_80] : memref<1x1x128xf32, #tpu.memory_space<vmem>>, vector<1x1x128xf32>
      %185 = vector.shape_cast %184 : vector<1x1x128xf32> to vector<1x128xf32>
      %186 = vector.shape_cast %183 : vector<1x128xf32> to vector<1x1x128xf32>
      tpu.vector_store %arg17[%c0_78, %c0_79, %c0_80], %186 {strides = array<i32>} : memref<1x1x128xf32, #tpu.memory_space<vmem>>, vector<1x1x128xf32>,
    } else {
    }
    return
  }
  func.func @transform_0(%arg0: i32, %arg1: i32) -> (i32, i32, i32) {
    %c0_i32 = arith.constant 0 : i32
    %c0_i32_0 = arith.constant 0 : i32
    %c0_i32_1 = arith.constant 0 : i32
    return %arg0, %c0_i32, %c0_i32_0 : i32, i32, i32
  }
  func.func @transform_1(%arg0: i32, %arg1: i32) -> (i32, i32, i32) {
    %c0_i32 = arith.constant 0 : i32
    %c0_i32_0 = arith.constant 0 : i32
    %c0_i32_1 = arith.constant 0 : i32
    return %arg1, %c0_i32, %c0_i32_0 : i32, i32, i32
  }
  func.func @transform_2(%arg0: i32, %arg1: i32) -> (i32, i32, i32) {
    %c0_i32 = arith.constant 0 : i32
    %c0_i32_0 = arith.constant 0 : i32
    %c0_i32_1 = arith.constant 0 : i32
    return %arg1, %c0_i32, %c0_i32_0 : i32, i32, i32
  }
  func.func @transform_3(%arg0: i32, %arg1: i32) -> (i32, i32, i32) {
    %c0_i32 = arith.constant 0 : i32
    %c0_i32_0 = arith.constant 0 : i32
    %c0_i32_1 = arith.constant 0 : i32
    return %arg1, %c0_i32, %c0_i32_0 : i32, i32, i32
  }
  func.func @transform_4(%arg0: i32, %arg1: i32) -> (i32, i32, i32) {
    %c0_i32 = arith.constant 0 : i32
    %c0_i32_0 = arith.constant 0 : i32
    %c0_i32_1 = arith.constant 0 : i32
    return %arg1, %c0_i32, %c0_i32_0 : i32, i32, i32
  }
  func.func @transform_5(%arg0: i32, %arg1: i32) -> (i32, i32, i32) {
    %c0_i32 = arith.constant 0 : i32
    %c0_i32_0 = arith.constant 0 : i32
    %c0_i32_1 = arith.constant 0 : i32
    return %arg1, %c0_i32, %c0_i32_0 : i32, i32, i32
  }
  func.func @transform_6(%arg0: i32, %arg1: i32) -> (i32, i32, i32) {
    %c0_i32 = arith.constant 0 : i32
    %c0_i32_0 = arith.constant 0 : i32
    %c0_i32_1 = arith.constant 0 : i32
    return %arg1, %c0_i32, %c0_i32_0 : i32, i32, i32
  }
  func.func @transform_7(%arg0: i32, %arg1: i32) -> (i32, i32, i32) {
    %c0_i32 = arith.constant 0 : i32
    %c0_i32_0 = arith.constant 0 : i32
    %c0_i32_1 = arith.constant 0 : i32
    return %arg1, %c0_i32, %c0_i32_0 : i32, i32, i32
  }
  func.func @transform_8(%arg0: i32, %arg1: i32) -> (i32, i32, i32) {
    %c0_i32 = arith.constant 0 : i32
    %c0_i32_0 = arith.constant 0 : i32
    %c0_i32_1 = arith.constant 0 : i32
    return %arg1, %c0_i32, %c0_i32_0 : i32, i32, i32
  }
  func.func @transform_9(%arg0: i32, %arg1: i32) -> (i32, i32, i32) {
    %c0_i32 = arith.constant 0 : i32
    %c0_i32_0 = arith.constant 0 : i32
    %c0_i32_1 = arith.constant 0 : i32
    return %arg1, %c0_i32, %c0_i32_0 : i32, i32, i32
  }
  func.func @transform_10(%arg0: i32, %arg1: i32) -> (i32, i32, i32) {
    %c0_i32 = arith.constant 0 : i32
    %c0_i32_0 = arith.constant 0 : i32
    %c0_i32_1 = arith.constant 0 : i32
    return %arg1, %c0_i32, %c0_i32_0 : i32, i32, i32
  }
  func.func @transform_11(%arg0: i32, %arg1: i32) -> (i32, i32, i32) {
    %c0_i32 = arith.constant 0 : i32
    %c0_i32_0 = arith.constant 0 : i32
    %c0_i32_1 = arith.constant 0 : i32
    return %arg1, %c0_i32, %c0_i32_0 : i32, i32, i32
  }
  func.func @transform_12(%arg0: i32, %arg1: i32) -> (i32, i32, i32) {
    %c0_i32 = arith.constant 0 : i32
    %c0_i32_0 = arith.constant 0 : i32
    %c0_i32_1 = arith.constant 0 : i32
    return %arg1, %c0_i32, %c0_i32_0 : i32, i32, i32
  }
  func.func @transform_13(%arg0: i32, %arg1: i32) -> (i32, i32) {
    %c0_i32 = arith.constant 0 : i32
    %c0_i32_0 = arith.constant 0 : i32
    %c0_i32_1 = arith.constant 0 : i32
    return %c0_i32, %c0_i32_0 : i32, i32
  }
  func.func @transform_14(%arg0: i32, %arg1: i32) -> (i32, i32) {
    %c0_i32 = arith.constant 0 : i32
    %c0_i32_0 = arith.constant 0 : i32
    %c0_i32_1 = arith.constant 0 : i32
    return %c0_i32, %c0_i32_0 : i32, i32
  }
  func.func @transform_15(%arg0: i32, %arg1: i32) -> (i32, i32, i32) {
    %c0_i32 = arith.constant 0 : i32
    %c0_i32_0 = arith.constant 0 : i32
    %c0_i32_1 = arith.constant 0 : i32
    return %arg0, %c0_i32, %c0_i32_0 : i32, i32, i32
  }
}

</mosaic_0001>

<bundles_post_ra>
// kernel: matchert_forward.1
= control target key start
LH: loop header
LB: loop body
LE: loop exit
PB: predicated region body
PF: predicated region fallthrough
CT: control target
= control target key end

     0   :  { %s5410_s20 = smov 0   ;;  %s5412_s21 = smov 0   ;;  %s7520_s0 = inlined_call_operand.vmem [shape: f32[2,128,128], index: 0, kind: input, shape index: {}]   ;;  %s7521_s1 = inlined_call_operand.vmem [shape: bf16[2,128,384], index: 1, kind: input, shape index: {}]   ;;  %s7522_s2 = inlined_call_operand.vmem [shape: f32[2,1,384], index: 2, kind: input, shape index: {}]   ;;  %s7523_s3 = inlined_call_operand.vmem [shape: bf16[2,128,128], index: 3, kind: input, shape index: {}]   ;;  %s7524_s4 = inlined_call_operand.vmem [shape: f32[2,1,128], index: 4, kind: input, shape index: {}]   ;;  %s7525_s5 = inlined_call_operand.vmem [shape: f32[2,1,128], index: 5, kind: input, shape index: {}]   ;;  %s7526_s6 = inlined_call_operand.vmem [shape: f32[2,1,128], index: 6, kind: input, shape index: {}]   ;;  %s7527_s7 = inlined_call_operand.vmem [shape: bf16[2,128,256], index: 7, kind: input, shape index: {}]   ;;  %s7528_s8 = inlined_call_operand.vmem [shape: f32[2,1,256], index: 8, kind: input, shape index: {}]   ;;  %s7529_s9 = inlined_call_operand.vmem [shape: bf16[2,256,128], index: 9, kind: input, shape index: {}]   ;;  %s7530_s10 = inlined_call_operand.vmem [shape: f32[2,1,128], index: 10, kind: input, shape index: {}]   ;;  %s7531_s11 = inlined_call_operand.vmem [shape: f32[2,1,128], index: 11, kind: input, shape index: {}]   ;;  %s7532_s12 = inlined_call_operand.vmem [shape: f32[2,1,128], index: 12, kind: input, shape index: {}]   ;;  %s7533_s13 = inlined_call_operand.vmem [shape: f32[1,128], index: 13, kind: input, shape index: {}]   ;;  %s7534_s14 = inlined_call_operand.<no memory space> [shape: f32[1,1], index: 14, kind: input, shape index: {}]   ;;  %s7535_s15 = inlined_call_operand.vmem [shape: f32[2,1,128], index: 15, kind: output, shape index: {}]  }
   0x1   :  { %7550 = sst [smem:[#allocation28_spill]] %s7520_s0  ;;  %v20_v0 = vstv %s7534_s14  ;;  %s5414_s22 = smov 0  }
   0x2   :  { %7551 = sst [smem:[#allocation29_spill]] %s7521_s1  ;;  %21 = vst [vmem:[#allocation3] sm:$0x1] %v20_v0  ;;  %s5416_s23 = smov 0  }
   0x3   :  { %7552 = sst [smem:[#allocation30_spill]] %s7522_s2  ;;  %s5418_s24 = smov 0  }
   0x4   :  { %7553 = sst [smem:[#allocation31_spill]] %s7523_s3 }
   0x5   :  { %7554 = sst [smem:[#allocation32_spill]] %s7527_s7 }
   0x6   :  { %7555 = sst [smem:[#allocation33_spill]] %s7533_s13 }
   0x7   :  { %7556 = sst [smem:[#allocation34_spill]] %s7535_s15 }
   0x8 LB: > { %7557 = sst [smem:[#allocation4_spill]] %s5303_s20  ;;  %s36_s14 = sadd.s32 1, %s5311_s22  ;;  %s5319_s24 = sphi %s5418_s24, %s27_s24   ;;  %s5315_s23 = sphi %s5416_s23, %s7631_s23   ;;  %s5311_s22 = sphi %s5414_s22, %s7630_s22   ;;  %s5307_s21 = sphi %s5412_s21, %s7629_s21   ;;  %s5303_s20 = sphi %s5410_s20, %s7628_s20  }
   0x9   : > { %7558 = sst [smem:[#allocation5_spill]] %s5311_s22  ;;  %s39_s25 = sadd.s32 1, %s5315_s23 }
   0xa   : > { %7559 = sst [smem:[#allocation6_spill]] %s5315_s23  ;;  %p37_p0 = scmp.ge.s32.totalorder %s36_s14, 2 }
   0xb   : > { %7560 = sst [smem:[#allocation7_spill]] %s5319_s24  ;;  %p4509_p1 = scmp.ge.s32.totalorder %s5319_s24, 1 }
   0xc   : > { %p557_p2 = scmp.lt.s32.totalorder %s5319_s24, 5  ;;  %s7633_s14 = smov (%p37_p0, %s36_s14), 0 }
   0xd   : > { %7561 = sst [smem:[#allocation8_spill]] %s7633_s14  ;;  %s7635_s25 = smov (!%p37_p0, %s39_s25), %s5315_s23 }
   0xe   : > { %p558_p3 = pnand %p4509_p1, %p557_p2  ;;  %p41_p4 = scmp.ge.s32.totalorder %s7635_s25, 2 }
  0x10   : > { %s7637_s25 = smov (%p41_p4, %s7635_s25), 0  ;;  %561 = sbr.rel (%p558_p3) target bundleno = 2761 (0xac9), region = 80 }
  0x11   : > { %7562 = sst [smem:[#allocation9_spill]] %s7637_s25 }
  0x15   : > { %p649_p5 = scmp.lt.s32.totalorder %s5307_s21, 1  ;;  %p654_p6 = scmp.lt.s32.totalorder %s5303_s20, 1 }
  0x16   : > { %s7565_s0 = sld [smem:[#allocation28_spill]] }
  0x17   : > { %s7639_s21 = smov (!%p649_p5, %s5307_s21), 1  ;;  %s7566_s1 = sld [smem:[#allocation29_spill]] }
  0x18   : > { %7563 = sst [smem:[#allocation10_spill]] %s7639_s21  ;;  %s4812_s27 = sshll.u32 %s7639_s21, 7 }
  0x19   : > { %s5446_s26 = scalar_select %p654_p6, %s5303_s20, 1 }
  0x1a   : > { %s7567_s3 = sld [smem:[#allocation31_spill]] }
  0x1b   : > { %s4888_s19 = smul.u32 192, %s5446_s26  ;;  %s4813_s14 = sshll.u32 %s5446_s26, 6 }
  0x1c   : > { %s5456_s18 = scalar_lea.vmem %s7565_s0, %s4812_s27  ;;  %s4889_s25 = smul.u32 3, %s5446_s26 }
  0x1d   : > { %s5464_s24 = scalar_lea.vmem %s7566_s1, %s4888_s19  ;;  %s7568_s2 = sld [smem:[#allocation30_spill]] }
  0x1e   : > { %s4814_s13 = sshll.u32 %s5446_s26, 7  ;;  %s4517_s20 = sshll.u32 %s5446_s26, 1 }
  0x1f   : > { %s7569_s7 = sld [smem:[#allocation32_spill]]  ;;  %s5498_s30 = scalar_lea.vmem %s7528_s8, %s4517_s20 }
  0x20   : > { %s5469_s28 = scalar_lea.vmem %s7567_s3, %s4813_s14  ;;  %s5503_s15 = scalar_lea.vmem %s7529_s9, %s4814_s13 }
  0x21   : > { %s693_s19 = scalar_lea.vmem %s7530_s10, %s5446_s26  ;;  %s696_s3 = scalar_lea.vmem %s7531_s11, %s5446_s26 }
  0x23   : > { %s5474_s27 = scalar_lea.vmem %s7568_s2, %s4889_s25  ;;  %s7570_s25 = sld [smem:[#allocation4_spill]] }
  0x25   : > { %s5493_s29 = scalar_lea.vmem %s7569_s7, %s4814_s13  ;;  %s699_s7 = scalar_lea.vmem %s7532_s12, %s5446_s26 }
  0x29   : > { %p4520_p7 = scmp.ne.s32.totalorder %s7570_s25, 0 }
  0x2b   : > { %706 = sbr.rel (%p4520_p7) target bundleno = 65 (0x41), region = 84 }
  0x30   : > { %v707_v1 = vld [vmem:[%s5456_s18] sm:$0xff]  ;;  %v708_v2 = vld [vmem:[%s5456_s18 + $0x8] sm:$0xff]  ;;  %v709_v3 = vld [vmem:[%s5456_s18 + $0x10] sm:$0xff] }
  0x31   : > { %723 = vst [vmem:[#allocation2 + $0x30] sm:$0xff] %v707_v1  ;;  %v710_v4 = vld [vmem:[%s5456_s18 + $0x18] sm:$0xff]  ;;  %v711_v5 = vld [vmem:[%s5456_s18 + $0x20] sm:$0xff]  ;;  %v712_v6 = vld [vmem:[%s5456_s18 + $0x28] sm:$0xff] }
  0x32   : > { %724 = vst [vmem:[#allocation2] sm:$0xff] %v708_v2  ;;  %v713_v7 = vld [vmem:[%s5456_s18 + $0x30] sm:$0xff]  ;;  %v714_v8 = vld [vmem:[%s5456_s18 + $0x38] sm:$0xff]  ;;  %v715_v9 = vld [vmem:[%s5456_s18 + $0x40] sm:$0xff] }
  0x33   : > { %725 = vst [vmem:[#allocation2 + $0x58] sm:$0xff] %v709_v3  ;;  %v716_v10 = vld [vmem:[%s5456_s18 + $0x48] sm:$0xff]  ;;  %v717_v11 = vld [vmem:[%s5456_s18 + $0x50] sm:$0xff]  ;;  %v718_v12 = vld [vmem:[%s5456_s18 + $0x58] sm:$0xff] }
  0x34   : > { %726 = vst [vmem:[#allocation2 + $0x18] sm:$0xff] %v710_v4  ;;  %v719_v13 = vld [vmem:[%s5456_s18 + $0x60] sm:$0xff]  ;;  %v720_v14 = vld [vmem:[%s5456_s18 + $0x68] sm:$0xff]  ;;  %v721_v15 = vld [vmem:[%s5456_s18 + $0x70] sm:$0xff] }
  0x35   : > { %727 = vst [vmem:[#allocation2 + $0x50] sm:$0xff] %v711_v5  ;;  %v722_v16 = vld [vmem:[%s5456_s18 + $0x78] sm:$0xff] }
  0x36   : > { %728 = vst [vmem:[#allocation2 + $0x68] sm:$0xff] %v712_v6 }
  0x37   : > { %729 = vst [vmem:[#allocation2 + $0x8] sm:$0xff] %v713_v7 }
  0x38   : > { %730 = vst [vmem:[#allocation2 + $0x48] sm:$0xff] %v714_v8 }
  0x39   : > { %731 = vst [vmem:[#allocation2 + $0x40] sm:$0xff] %v715_v9 }
  0x3a   : > { %732 = vst [vmem:[#allocation2 + $0x20] sm:$0xff] %v716_v10 }
  0x3b   : > { %733 = vst [vmem:[#allocation2 + $0x10] sm:$0xff] %v717_v11 }
  0x3c   : > { %734 = vst [vmem:[#allocation2 + $0x38] sm:$0xff] %v718_v12 }
  0x3d   : > { %735 = vst [vmem:[#allocation2 + $0x60] sm:$0xff] %v719_v13 }
  0x3e   : > { %736 = vst [vmem:[#allocation2 + $0x70] sm:$0xff] %v720_v14 }
  0x3f   : > { %737 = vst [vmem:[#allocation2 + $0x78] sm:$0xff] %v721_v15 }
  0x40   : > { %738 = vst [vmem:[#allocation2 + $0x28] sm:$0xff] %v722_v16 }
  0x41 PF: > { %v4607_v17 = vld [vmem:[%s5464_s24 + $0xa8] sm:$0xf]  ;;  %v4838_v18 = vld [vmem:[%s5464_s24 + $0xb0] sm:$0xf0]  ;;  %v4837_v19 = vld [vmem:[%s5464_s24 + $0xac] sm:$0xf]  ;;  %s7620_s13 = scalar_lea.vmem %s7525_s5, %s5446_s26  ;;  %s7621_s16 = scalar_lea.vmem %s7526_s6, %s5446_s26 }
  0x42   : > { %v4608_v20 = vor.u32 %v4838_v18, %v4607_v17  ;;  %v4609_v21 = vld [vmem:[%s5464_s24 + $0xb4] sm:$0xf0]  ;;  %v4615_v22 = vld [vmem:[%s5464_s24 + $0xb0] sm:$0xf]  ;;  %v4839_v23 = vld [vmem:[%s5464_s24 + $0xb8] sm:$0xf0] }
  0x43   : > { %v4612_v24 = vor.u32 %v4837_v19, %v4609_v21  ;;  %v4616_v25 = vor.u32 %v4839_v23, %v4615_v22  ;;  %v4595_v26 = vld [vmem:[%s5464_s24 + $0x90] sm:$0xf]  ;;  %v4835_v27 = vld [vmem:[%s5464_s24 + $0x98] sm:$0xf0]  ;;  %v4834_v28 = vld [vmem:[%s5464_s24 + $0x94] sm:$0xf] }
  0x44   : > { %935 = vmatpush.bf16.msra.mxu0 %v4608_v20  ;;  %v4596_v29 = vor.u32 %v4835_v27, %v4595_v26  ;;  %v4597_v30 = vld [vmem:[%s5464_s24 + $0x9c] sm:$0xf0]  ;;  %v4603_v31 = vld [vmem:[%s5464_s24 + $0x98] sm:$0xf]  ;;  %v4836_v32 = vld [vmem:[%s5464_s24 + $0xa0] sm:$0xf0] }
  0x45   : > { %984 = vmatpush.bf16.msra.mxu1 %v4612_v24  ;;  %1033 = vmatpush.bf16.msra.mxu2 %v4616_v25  ;;  %v4600_v33 = vor.u32 %v4834_v28, %v4597_v30  ;;  %v4604_v34 = vor.u32 %v4836_v32, %v4603_v31  ;;  %v4583_v35 = vld [vmem:[%s5464_s24 + $0x78] sm:$0xf]  ;;  %v4832_v36 = vld [vmem:[%s5464_s24 + $0x80] sm:$0xf0]  ;;  %v4831_v37 = vld [vmem:[%s5464_s24 + $0x7c] sm:$0xf] }
  0x46   : > { %v4585_v38 = vld [vmem:[%s5464_s24 + $0x84] sm:$0xf0]  ;;  %v4591_v39 = vld [vmem:[%s5464_s24 + $0x80] sm:$0xf]  ;;  %v4833_v40 = vld [vmem:[%s5464_s24 + $0x88] sm:$0xf0]  ;;  %v4584_v41 = vor.u32 %v4832_v36, %v4583_v35 }
  0x47   : > { %v4588_v42 = vor.u32 %v4831_v37, %v4585_v38  ;;  %v4592_v43 = vor.u32 %v4833_v40, %v4591_v39  ;;  %v4571_v44 = vld [vmem:[%s5464_s24 + $0x60] sm:$0xf]  ;;  %v4829_v45 = vld [vmem:[%s5464_s24 + $0x68] sm:$0xf0]  ;;  %v4828_v46 = vld [vmem:[%s5464_s24 + $0x64] sm:$0xf] }
  0x48   : > { %936 = vmatpush.bf16.msra.mxu0 %v4596_v29  ;;  %v4573_v47 = vld [vmem:[%s5464_s24 + $0x6c] sm:$0xf0]  ;;  %v4579_v48 = vld [vmem:[%s5464_s24 + $0x68] sm:$0xf]  ;;  %v4830_v49 = vld [vmem:[%s5464_s24 + $0x70] sm:$0xf0]  ;;  %v4572_v50 = vor.u32 %v4829_v45, %v4571_v44 }
  0x49   : > { %985 = vmatpush.bf16.msra.mxu1 %v4600_v33  ;;  %1034 = vmatpush.bf16.msra.mxu2 %v4604_v34  ;;  %v4576_v51 = vor.u32 %v4828_v46, %v4573_v47  ;;  %v4580_v52 = vor.u32 %v4830_v49, %v4579_v48  ;;  %v4559_v53 = vld [vmem:[%s5464_s24 + $0x48] sm:$0xf]  ;;  %v4826_v54 = vld [vmem:[%s5464_s24 + $0x50] sm:$0xf0]  ;;  %v4825_v55 = vld [vmem:[%s5464_s24 + $0x4c] sm:$0xf] }
  0x4a   : > { %v4561_v56 = vld [vmem:[%s5464_s24 + $0x54] sm:$0xf0]  ;;  %v4567_v57 = vld [vmem:[%s5464_s24 + $0x50] sm:$0xf]  ;;  %v4827_v58 = vld [vmem:[%s5464_s24 + $0x58] sm:$0xf0]  ;;  %v4560_v59 = vor.u32 %v4826_v54, %v4559_v53 }
  0x4b   : > { %v4547_v60 = vld [vmem:[%s5464_s24 + $0x30] sm:$0xf]  ;;  %v4823_v61 = vld [vmem:[%s5464_s24 + $0x38] sm:$0xf0]  ;;  %v4564_v62 = vor.u32 %v4825_v55, %v4561_v56  ;;  %v4568_v63 = vor.u32 %v4827_v58, %v4567_v57  ;;  %v4822_v0 = vld [vmem:[%s5464_s24 + $0x34] sm:$0xf] }
  0x4c   : > { %937 = vmatpush.bf16.msra.mxu0 %v4584_v41  ;;  %v4549_v1 = vld [vmem:[%s5464_s24 + $0x3c] sm:$0xf0]  ;;  %v4555_v2 = vld [vmem:[%s5464_s24 + $0x38] sm:$0xf]  ;;  %v4824_v3 = vld [vmem:[%s5464_s24 + $0x40] sm:$0xf0]  ;;  %v4548_v4 = vor.u32 %v4823_v61, %v4547_v60 }
  0x4d   : > { %986 = vmatpush.bf16.msra.mxu1 %v4588_v42  ;;  %1035 = vmatpush.bf16.msra.mxu2 %v4592_v43  ;;  %v4552_v5 = vor.u32 %v4822_v0, %v4549_v1  ;;  %v4556_v6 = vor.u32 %v4824_v3, %v4555_v2  ;;  %v4535_v7 = vld [vmem:[%s5464_s24 + $0x18] sm:$0xf]  ;;  %v4820_v8 = vld [vmem:[%s5464_s24 + $0x20] sm:$0xf0]  ;;  %v4819_v9 = vld [vmem:[%s5464_s24 + $0x1c] sm:$0xf] }
  0x4e   : > { %v4537_v10 = vld [vmem:[%s5464_s24 + $0x24] sm:$0xf0]  ;;  %v4543_v11 = vld [vmem:[%s5464_s24 + $0x20] sm:$0xf]  ;;  %v4821_v12 = vld [vmem:[%s5464_s24 + $0x28] sm:$0xf0]  ;;  %v4536_v13 = vor.u32 %v4820_v8, %v4535_v7 }
  0x4f   : > { %v4540_v14 = vor.u32 %v4819_v9, %v4537_v10  ;;  %v4544_v15 = vor.u32 %v4821_v12, %v4543_v11  ;;  %v4523_v16 = vld [vmem:[%s5464_s24] sm:$0xf]  ;;  %v4817_v17 = vld [vmem:[%s5464_s24 + $0x8] sm:$0xf0]  ;;  %v4816_v18 = vld [vmem:[%s5464_s24 + $0x4] sm:$0xf] }
  0x50   : > { %938 = vmatpush.bf16.msra.mxu0 %v4572_v50  ;;  %v4525_v19 = vld [vmem:[%s5464_s24 + $0xc] sm:$0xf0]  ;;  %v4531_v20 = vld [vmem:[%s5464_s24 + $0x8] sm:$0xf]  ;;  %v4818_v21 = vld [vmem:[%s5464_s24 + $0x10] sm:$0xf0]  ;;  %v4524_v22 = vor.u32 %v4817_v17, %v4523_v16 }
  0x51   : > { %987 = vmatpush.bf16.msra.mxu1 %v4576_v51  ;;  %1036 = vmatpush.bf16.msra.mxu2 %v4580_v52  ;;  %v739_v23 = vld [vmem:[#allocation2 + $0x30] sm:$0xff]  ;;  %v740_v24 = vld [vmem:[#allocation2] sm:$0xff]  ;;  %v4528_v25 = vor.u32 %v4816_v18, %v4525_v19  ;;  %v4532_v26 = vor.u32 %v4818_v21, %v4531_v20  ;;  %v741_v28 = vld [vmem:[#allocation2 + $0x58] sm:$0xff]  ;;  %s5321_s0 = smov 64   ;;  %s5322_s1 = smov 96   ;;  %vm1178_vm0 = vcmask 261120  }
  0x52   : > { %v759_v27 = vpack.c.bf16 %v740_v24, %v739_v23  ;;  %v742_v29 = vld [vmem:[#allocation2 + $0x18] sm:$0xff]  ;;  %v743_v31 = vld [vmem:[#allocation2 + $0x50] sm:$0xff]  ;;  %v744_v32 = vld [vmem:[#allocation2 + $0x68] sm:$0xff]  ;;  %s5323_s2 = smov 32   ;;  %vm2883_vm2 = vcmask 523264   ;;  %vm2900_vm3 = vcmask 785408  }
  0x53   : > { %v760_v30 = vpack.c.bf16 %v742_v29, %v741_v28  ;;  %v761_v33 = vpack.c.bf16 %v744_v32, %v743_v31  ;;  %v745_v34 = vld [vmem:[#allocation2 + $0x8] sm:$0xff]  ;;  %v747_v37 = vld [vmem:[#allocation2 + $0x40] sm:$0xff]  ;;  %v749_v40 = vld [vmem:[#allocation2 + $0x10] sm:$0xff] }
  0x54   : > { %939 = vmatpush.bf16.msra.mxu0 %v4560_v59  ;;  %v746_v35 = vld [vmem:[#allocation2 + $0x48] sm:$0xff]  ;;  %v748_v38 = vld [vmem:[#allocation2 + $0x20] sm:$0xff]  ;;  %v750_v41 = vld [vmem:[#allocation2 + $0x38] sm:$0xff] }
  0x55   : > { %988 = vmatpush.bf16.msra.mxu1 %v4564_v62  ;;  %1037 = vmatpush.bf16.msra.mxu2 %v4568_v63  ;;  %v762_v36 = vpack.c.bf16 %v746_v35, %v745_v34  ;;  %v763_v39 = vpack.c.bf16 %v748_v38, %v747_v37  ;;  %v764_v42 = vpack.c.bf16 %v750_v41, %v749_v40  ;;  %v751_v43 = vld [vmem:[#allocation2 + $0x60] sm:$0xff]  ;;  %v752_v44 = vld [vmem:[#allocation2 + $0x70] sm:$0xff]  ;;  %v753_v46 = vld [vmem:[#allocation2 + $0x78] sm:$0xff] }
  0x56   : > { %v765_v45 = vpack.c.bf16 %v752_v44, %v751_v43  ;;  %v754_v47 = vld [vmem:[#allocation2 + $0x28] sm:$0xff]  ;;  %v799_v49 = vld [vmem:[%s5474_s27] sm:$0x7] }
  0x57   : > { %v766_v48 = vpack.c.bf16 %v754_v47, %v753_v46  ;;  %v5583_v52 = vperm.slane %v799_v49, 0  ;;  %v5585_v53 = vperm.slane %v799_v49, 1  ;;  %v5637_v34 = vperm.slane %v799_v49, 2 }
  0x58   : > { %940 = vmatpush.bf16.msra.mxu0 %v4548_v4 }
  0x59   : > { %989 = vmatpush.bf16.msra.mxu1 %v4552_v5  ;;  %1038 = vmatpush.bf16.msra.mxu2 %v4556_v6 }
  0x5c   : > { %941 = vmatpush.bf16.msra.mxu0 %v4536_v13 }
  0x5d   : > { %990 = vmatpush.bf16.msra.mxu1 %v4540_v14  ;;  %1039 = vmatpush.bf16.msra.mxu2 %v4544_v15 }
  0x60   : > { %942 = vmatpush.bf16.msra.mxu0 %v4524_v22 }
  0x61   : > { %991 = vmatpush.bf16.msra.mxu1 %v4528_v25  ;;  %1040 = vmatpush.bf16.msra.mxu2 %v4532_v26 }
  0x63   : > { %943 = vmatmul.bf16.vlgmr.msra.gmra.mxu0 %v759_v27 }
  0x64   : > { %992 = vmatmul.bf16.vlgmr.msra.gmra.mxu1 %v759_v27  ;;  %1041 = vmatmul.bf16.vlgmr.msra.gmra.mxu2 %v759_v27 }
  0x73   : > { %948 = vmatmul.bf16.gmra.mxu0 %v760_v30 }
  0x74   : > { %997 = vmatmul.bf16.gmra.mxu1 %v760_v30  ;;  %1046 = vmatmul.bf16.gmra.mxu2 %v760_v30 }
  0x83   : > { %953 = vmatmul.bf16.gmra.mxu0 %v761_v33 }
  0x84   : > { %1002 = vmatmul.bf16.gmra.mxu1 %v761_v33  ;;  %1051 = vmatmul.bf16.gmra.mxu2 %v761_v33 }
  0x93   : > { %958 = vmatmul.bf16.gmra.mxu0 %v762_v36 }
  0x94   : > { %1007 = vmatmul.bf16.gmra.mxu1 %v762_v36  ;;  %1056 = vmatmul.bf16.gmra.mxu2 %v762_v36 }
  0xa3   : > { %963 = vmatmul.bf16.gmra.mxu0 %v763_v39 }
  0xa4   : > { %1012 = vmatmul.bf16.gmra.mxu1 %v763_v39  ;;  %1061 = vmatmul.bf16.gmra.mxu2 %v763_v39 }
  0xb3   : > { %968 = vmatmul.bf16.gmra.mxu0 %v764_v42 }
  0xb4   : > { %1017 = vmatmul.bf16.gmra.mxu1 %v764_v42  ;;  %1066 = vmatmul.bf16.gmra.mxu2 %v764_v42 }
  0xc3   : > { %973 = vmatmul.bf16.gmra.mxu0 %v765_v45 }
  0xc4   : > { %1022 = vmatmul.bf16.gmra.mxu1 %v765_v45  ;;  %1071 = vmatmul.bf16.gmra.mxu2 %v765_v45 }
  0xd3   : > { %978 = vmatmul.bf16.gmra.mxu0 %v766_v48 }
  0xd4   : > { %1027 = vmatmul.bf16.gmra.mxu1 %v766_v48  ;;  %1076 = vmatmul.bf16.gmra.mxu2 %v766_v48 }
  0xe0   : > { %v944_v50 = vpop.f32.mrf.mxu0 }
  0xe1   : > { %v993_v51 = vpop.f32.mrf.mxu1  ;;  %v945_v54 = vadd.f32 %v944_v50, %v5583_v52 }
  0xe2   : > { %v994_v55 = vadd.f32 %v993_v51, %v5585_v53 }
  0xe4   : > { %v1082_v60 = vpack.c.bf16 %v994_v55, %v945_v54 }
  0xe6   : > { %v1130_v63 = vunpack.c.l.b16 %v1082_v60  ;;  %v1154_v0 = vunpack.c.h.b16 %v1082_v60 }
  0xe7   : > { %v5589_v56 = vpop.f32.mrf.mxu2 }
  0xe8   : > { %v946_v57 = vpop.f32.mrf.mxu0 }
  0xe9   : > { %v947_v58 = vadd.f32 %v946_v57, %v5583_v52  ;;  %v995_v59 = vpop.f32.mrf.mxu1 }
  0xea   : > { %v996_v61 = vadd.f32 %v995_v59, %v5585_v53 }
  0xec   : > { %v1084_v62 = vpack.c.bf16 %v996_v61, %v947_v58 }
  0xee   : > { %v1131_v1 = vunpack.c.l.b16 %v1084_v62  ;;  %v1155_v2 = vunpack.c.h.b16 %v1084_v62 }
  0xef   : > { %v5593_v3 = vpop.f32.mrf.mxu2 }
  0xf0   : > { %v949_v4 = vpop.f32.mrf.mxu0  ;;  %v5595_v5 = vpack.c.b16 %v1155_v2, %v1154_v0  ;;  %v5597_v6 = vpack.c.b16 %v1131_v1, %v1130_v63 }
  0xf1   : > { %v998_v7 = vpop.f32.mrf.mxu1  ;;  %v950_v8 = vadd.f32 %v949_v4, %v5583_v52 }
  0xf2   : > { %1927 = vrot.lane.b32.xlu0 %v5595_v5, %s5321_s0  ;;  %1557 = vrot.lane.b32.xlu1 %v5595_v5, %s5322_s1  ;;  %v999_v9 = vadd.f32 %v998_v7, %v5585_v53 }
  0xf3   : > { %1541 = vrot.lane.b32.xlu2 %v5597_v6, %s5322_s1 }
  0xf4   : > { %v1086_v14 = vpack.c.bf16 %v999_v9, %v950_v8 }
  0xf6   : > { %v1132_v17 = vunpack.c.l.b16 %v1086_v14  ;;  %v1156_v18 = vunpack.c.h.b16 %v1086_v14 }
  0xf7   : > { %v5607_v10 = vpop.f32.mrf.mxu2 }
  0xf8   : > { %v951_v11 = vpop.f32.mrf.mxu0 }
  0xf9   : > { %v952_v12 = vadd.f32 %v951_v11, %v5583_v52  ;;  %v1000_v13 = vpop.f32.mrf.mxu1 }
  0xfa   : > { %v1001_v15 = vadd.f32 %v1000_v13, %v5585_v53  ;;  %2297 = vrot.lane.b32.xlu1 %v5595_v5, %s5323_s2  ;;  %2281 = vrot.lane.b32.xlu0 %v5597_v6, %s5323_s2 }
  0xfb   : > { %1911 = vrot.lane.b32.xlu2 %v5597_v6, %s5321_s0 }
  0xfc   : > { %v1088_v16 = vpack.c.bf16 %v1001_v15, %v952_v12 }
  0xfe   : > { %v1133_v19 = vunpack.c.l.b16 %v1088_v16  ;;  %v1157_v20 = vunpack.c.h.b16 %v1088_v16 }
  0xff   : > { %v5617_v21 = vpop.f32.mrf.mxu2 }
 0x100   : > { %v954_v22 = vpop.f32.mrf.mxu0  ;;  %v5619_v23 = vpack.c.b16 %v1133_v19, %v1132_v17  ;;  %v5621_v24 = vpack.c.b16 %v1157_v20, %v1156_v18 }
 0x101   : > { %v1003_v25 = vpop.f32.mrf.mxu1  ;;  %v955_v26 = vadd.f32 %v954_v22, %v5583_v52 }
 0x102   : > { %1913 = vrot.lane.b32.xlu1 %v5619_v23, %s5321_s0  ;;  %1559 = vrot.lane.b32.xlu0 %v5621_v24, %s5322_s1  ;;  %v1004_v27 = vadd.f32 %v1003_v25, %v5585_v53 }
 0x103   : > { %2299 = vrot.lane.b32.xlu2 %v5621_v24, %s5323_s2 }
 0x104   : > { %v1090_v30 = vpack.c.bf16 %v1004_v27, %v955_v26 }
 0x106   : > { %v1134_v36 = vunpack.c.l.b16 %v1090_v30  ;;  %v1158_v37 = vunpack.c.h.b16 %v1090_v30 }
 0x107   : > { %v1052_v28 = vpop.f32.mrf.mxu2 }
 0x108   : > { %v956_v29 = vpop.f32.mrf.mxu0  ;;  %v1053_v38 = vadd.f32 %v1052_v28, %v5637_v34 }
 0x109   : > { %v957_v31 = vadd.f32 %v956_v29, %v5583_v52  ;;  %v1005_v32 = vpop.f32.mrf.mxu1 }
 0x10a   : > { %v1006_v33 = vadd.f32 %v1005_v32, %v5585_v53  ;;  %1543 = vrot.lane.b32.xlu0 %v5619_v23, %s5322_s1  ;;  %v1091_v47 = vpack.c.bf16 %v1053_v38, %v1053_v38 }
 0x10b   : > { %2283 = vrot.lane.b32.xlu2 %v5619_v23, %s5323_s2 }
 0x10c   : > { %v1092_v35 = vpack.c.bf16 %v1006_v33, %v957_v31  ;;  %v1416_v50 = vunpack.c.l.b16 %v1091_v47 }
 0x10e   : > { %v1135_v39 = vunpack.c.l.b16 %v1092_v35  ;;  %v1159_v40 = vunpack.c.h.b16 %v1092_v35 }
 0x10f   : > { %v1054_v41 = vpop.f32.mrf.mxu2 }
 0x110   : > { %v1055_v42 = vadd.f32 %v1054_v41, %v5637_v34  ;;  %v959_v43 = vpop.f32.mrf.mxu0  ;;  %v5641_v44 = vpack.c.b16 %v1135_v39, %v1134_v36  ;;  %v5643_v45 = vpack.c.b16 %v1159_v40, %v1158_v37 }
 0x111   : > { %v1008_v46 = vpop.f32.mrf.mxu1  ;;  %v960_v51 = vadd.f32 %v959_v43, %v5583_v52 }
 0x112   : > { %v1093_v48 = vpack.c.bf16 %v1055_v42, %v1055_v42  ;;  %1545 = vrot.lane.b32.xlu1 %v5641_v44, %s5322_s1  ;;  %1929 = vrot.lane.b32.xlu0 %v5621_v24, %s5321_s0  ;;  %v1009_v54 = vadd.f32 %v1008_v46, %v5585_v53 }
 0x113   : > { %1561 = vrot.lane.b32.xlu2 %v5643_v45, %s5322_s1 }
 0x114   : > { %v1417_v49 = vunpack.c.l.b16 %v1093_v48  ;;  %v1094_v61 = vpack.c.bf16 %v1009_v54, %v960_v51 }
 0x116   : > { %v5653_v57 = vpack.c.b16 %v1417_v49, %v1416_v50  ;;  %v1160_v0 = vunpack.c.h.b16 %v1094_v61  ;;  %v1136_v13 = vunpack.c.l.b16 %v1094_v61 }
 0x117   : > { %v1057_v55 = vpop.f32.mrf.mxu2 }
 0x118   : > { %v961_v58 = vpop.f32.mrf.mxu0  ;;  %v1058_v22 = vadd.f32 %v1057_v55, %v5637_v34 }
 0x119   : > { %v962_v59 = vadd.f32 %v961_v58, %v5583_v52  ;;  %v1010_v60 = vpop.f32.mrf.mxu1 }
 0x11a   : > { %v1011_v62 = vadd.f32 %v1010_v60, %v5585_v53  ;;  %1931 = vrot.lane.b32.xlu1 %v5643_v45, %s5321_s0  ;;  %1794 = vrot.lane.b32.xlu0 %v5653_v57, %s5322_s1  ;;  %v1095_v30 = vpack.c.bf16 %v1058_v22, %v1058_v22 }
 0x11b   : > { %2301 = vrot.lane.b32.xlu2 %v5643_v45, %s5323_s2 }
 0x11c   : > { %v1096_v63 = vpack.c.bf16 %v1011_v62, %v962_v59  ;;  %v1418_v40 = vunpack.c.l.b16 %v1095_v30  ;;  %v1050_v62 = vadd.f32 %v5617_v21, %v5637_v34 }
 0x11e   : > { %v1161_v1 = vunpack.c.h.b16 %v1096_v63  ;;  %v1137_v9 = vunpack.c.l.b16 %v1096_v63 }
 0x11f   : > { %v1059_v2 = vpop.f32.mrf.mxu2 }
 0x120   : > { %v964_v4 = vpop.f32.mrf.mxu0  ;;  %v5663_v7 = vpack.c.b16 %v1161_v1, %v1160_v0  ;;  %v5673_v17 = vpack.c.b16 %v1137_v9, %v1136_v13  ;;  %v1060_v25 = vadd.f32 %v1059_v2, %v5637_v34  ;;  %v1045_v1 = vadd.f32 %v5593_v3, %v5637_v34 }
 0x121   : > { %v1013_v8 = vpop.f32.mrf.mxu1  ;;  %v965_v11 = vadd.f32 %v964_v4, %v5583_v52  ;;  %v1048_v2 = vadd.f32 %v5607_v10, %v5637_v34 }
 0x122   : > { %1915 = vrot.lane.b32.xlu1 %v5641_v44, %s5321_s0  ;;  %2303 = vrot.lane.b32.xlu0 %v5663_v7, %s5323_s2  ;;  %v1014_v12 = vadd.f32 %v1013_v8, %v5585_v53  ;;  %v1097_v31 = vpack.c.bf16 %v1060_v25, %v1060_v25  ;;  %v1043_v8 = vadd.f32 %v5589_v56, %v5637_v34 }
 0x123   : > { %2285 = vrot.lane.b32.xlu2 %v5641_v44, %s5323_s2 }
 0x124   : > { %v1098_v15 = vpack.c.bf16 %v1014_v12, %v965_v11  ;;  %v1419_v41 = vunpack.c.l.b16 %v1097_v31  ;;  %v1089_v12 = vpack.c.bf16 %v1050_v62, %v1050_v62  ;;  %v1083_v3 = vpack.c.bf16 %v1043_v8, %v1043_v8 }
 0x126   : > { %v1162_v26 = vunpack.c.h.b16 %v1098_v15  ;;  %v1138_v36 = vunpack.c.l.b16 %v1098_v15  ;;  %v5701_v50 = vpack.c.b16 %v1419_v41, %v1418_v40  ;;  %v1415_v56 = vunpack.c.l.b16 %v1089_v12 }
 0x127   : > { %v1062_v14 = vpop.f32.mrf.mxu2 }
 0x128   : > { %v966_v16 = vpop.f32.mrf.mxu0  ;;  %v1063_v38 = vadd.f32 %v1062_v14, %v5637_v34  ;;  %v1085_v14 = vpack.c.bf16 %v1045_v1, %v1045_v1 }
 0x129   : > { %v967_v18 = vadd.f32 %v966_v16, %v5583_v52  ;;  %v1015_v19 = vpop.f32.mrf.mxu1  ;;  %v1087_v16 = vpack.c.bf16 %v1048_v2, %v1048_v2 }
 0x12a   : > { %v1016_v20 = vadd.f32 %v1015_v19, %v5585_v53  ;;  %1933 = vrot.lane.b32.xlu1 %v5663_v7, %s5321_s0  ;;  %1917 = vrot.lane.b32.xlu0 %v5673_v17, %s5321_s0  ;;  %v1099_v47 = vpack.c.bf16 %v1063_v38, %v1063_v38  ;;  %v1413_v10 = vunpack.c.l.b16 %v1085_v14  ;;  %v1412_v19 = vunpack.c.l.b16 %v1083_v3 }
 0x12b   : > { %1563 = vrot.lane.b32.xlu2 %v5663_v7, %s5322_s1 }
 0x12c   : > { %v1100_v27 = vpack.c.bf16 %v1016_v20, %v967_v18  ;;  %v1420_v60 = vunpack.c.l.b16 %v1099_v47  ;;  %v1414_v18 = vunpack.c.l.b16 %v1087_v16 }
 0x12e   : > { %v1163_v28 = vunpack.c.h.b16 %v1100_v27  ;;  %v1139_v37 = vunpack.c.l.b16 %v1100_v27  ;;  %v5735_v22 = vpack.c.b16 %v1415_v56, %v1414_v18 }
 0x12f   : > { %v1064_v29 = vpop.f32.mrf.mxu2 }
 0x130   : > { %v969_v32 = vpop.f32.mrf.mxu0  ;;  %v5685_v33 = vpack.c.b16 %v1163_v28, %v1162_v26  ;;  %v1065_v39 = vadd.f32 %v1064_v29, %v5637_v34  ;;  %v5697_v46 = vpack.c.b16 %v1139_v37, %v1138_v36  ;;  %v5737_v26 = vpack.c.b16 %v1413_v10, %v1412_v19 }
 0x131   : > { %v1018_v35 = vpop.f32.mrf.mxu1  ;;  %v970_v42 = vadd.f32 %v969_v32, %v5583_v52 }
 0x132   : > { %1565 = vrot.lane.b32.xlu1 %v5685_v33, %s5322_s1  ;;  %2287 = vrot.lane.b32.xlu0 %v5673_v17, %s5323_s2  ;;  %v1019_v43 = vadd.f32 %v1018_v35, %v5585_v53  ;;  %v1101_v48 = vpack.c.bf16 %v1065_v39, %v1065_v39 }
 0x133   : > { %1547 = vrot.lane.b32.xlu2 %v5673_v17, %s5322_s1 }
 0x134   : > { %v5703_v51 = vpack.c.bf16 %v1019_v43, %v970_v42  ;;  %v1421_v61 = vunpack.c.l.b16 %v1101_v48 }
 0x136   : > { %v1164_v63 = vunpack.c.h.b16 %v5703_v51  ;;  %v5725_v9 = vpack.c.b16 %v1421_v61, %v1420_v60 }
 0x137   : > { %v5699_v49 = vpop.f32.mrf.mxu2 }
 0x138   : > { %v971_v54 = vpop.f32.mrf.mxu0  ;;  %v1068_v2 = vadd.f32 %v5699_v49, %v5637_v34 }
 0x139   : > { %v972_v55 = vadd.f32 %v971_v54, %v5583_v52  ;;  %v1020_v58 = vpop.f32.mrf.mxu1 }
 0x13a   : > { %v1021_v59 = vadd.f32 %v1020_v58, %v5585_v53  ;;  %1549 = vrot.lane.b32.xlu1 %v5697_v46, %s5322_s1  ;;  %1796 = vrot.lane.b32.xlu0 %v5701_v50, %s5322_s1  ;;  %v1103_v18 = vpack.c.bf16 %v1068_v2, %v1068_v2  ;;  %v1207_v2 = vsel %vm1178_vm0, %v5621_v24, 0 }
 0x13b   : > { %1935 = vrot.lane.b32.xlu2 %v5685_v33, %s5321_s0 }
 0x13c   : > { %v5716_v0 = vpack.c.bf16 %v1021_v59, %v972_v55 }
 0x13e   : > { %v1165_v4 = vunpack.c.h.b16 %v5716_v0  ;;  %v1141_v19 = vunpack.c.l.b16 %v5716_v0 }
 0x13f   : > { %v1069_v11 = vpop.f32.mrf.mxu2 }
 0x140   : > { %v974_v21 = vpop.f32.mrf.mxu0  ;;  %v5727_v13 = vpack.c.b16 %v1165_v4, %v1164_v63  ;;  %v1070_v4 = vadd.f32 %v1069_v11, %v5637_v34  ;;  %v1140_v11 = vunpack.c.l.b16 %v5703_v51 }
 0x141   : > { %v1023_v15 = vpop.f32.mrf.mxu1  ;;  %v975_v37 = vadd.f32 %v974_v21, %v5583_v52 }
 0x142   : > { %1567 = vrot.lane.b32.xlu1 %v5727_v13, %s5322_s1  ;;  %2305 = vrot.lane.b32.xlu0 %v5685_v33, %s5323_s2  ;;  %v1024_v38 = vadd.f32 %v1023_v15, %v5585_v53  ;;  %v5811_v0 = vpack.c.b16 %v1141_v19, %v1140_v11 }
 0x143   : > { %1798 = vrot.lane.b32.xlu2 %v5725_v9, %s5322_s1 }
 0x144   : > { %v5770_v58 = vpack.c.bf16 %v1024_v38, %v975_v37 }
 0x146   : > { %v1166_v8 = vunpack.c.h.b16 %v5770_v58 }
 0x147   : > { %v1072_v20 = vpop.f32.mrf.mxu2 }
 0x148   : > { %v976_v25 = vpop.f32.mrf.mxu0  ;;  %v1073_v59 = vadd.f32 %v1072_v20, %v5637_v34 }
 0x149   : > { %v1025_v27 = vpop.f32.mrf.mxu1  ;;  %v977_v40 = vadd.f32 %v976_v25, %v5583_v52 }
 0x14a   : > { %1792 = vrot.lane.b32.xlu1 %v5735_v22, %s5322_s1  ;;  %1919 = vrot.lane.b32.xlu0 %v5697_v46, %s5321_s0  ;;  %v1026_v41 = vadd.f32 %v1025_v27, %v5585_v53  ;;  %v1107_v12 = vpack.c.bf16 %v1073_v59, %v1073_v59  ;;  %v1142_v59 = vunpack.c.l.b16 %v5770_v58 }
 0x14b   : > { %1790 = vrot.lane.b32.xlu2 %v5737_v26, %s5322_s1 }
 0x14c   : > { %v5775_v60 = vpack.c.bf16 %v1026_v41, %v977_v40  ;;  %v1424_v20 = vunpack.c.l.b16 %v1107_v12 }
 0x14d   : > { %v5745_v28 = vpop.permute.xlu2 %1541 }
 0x14e   : > { %v1167_v14 = vunpack.c.h.b16 %v5775_v60 }
 0x14f   : > { %v1074_v29 = vpop.f32.mrf.mxu2 }
 0x150   : > { %v979_v30 = vpop.f32.mrf.mxu0  ;;  %v1176_v25 = vpack.c.b16 %v1167_v14, %v1166_v8  ;;  %v1204_v8 = vsel %vm1178_vm0, %v5595_v5, 0 }
 0x151   : > { %v1028_v31 = vpop.f32.mrf.mxu1  ;;  %v980_v32 = vadd.f32 %v979_v30, %v5583_v52 }
 0x152   : > { %2168 = vrot.lane.b32.xlu1 %v5725_v9, %s5321_s0  ;;  %2289 = vrot.lane.b32.xlu0 %v5697_v46, %s5323_s2  ;;  %v1029_v35 = vadd.f32 %v1028_v31, %v5585_v53  ;;  %v1222_v38 = vsel %vm1178_vm0, %v1176_v25, 0 }
 0x153   : > { %2538 = vrot.lane.b32.xlu2 %v5725_v9, %s5323_s2 }
 0x154   : > { %v5761_v42 = vpack.c.bf16 %v1029_v35, %v980_v32  ;;  %v1422_v35 = vunpack.c.l.b16 %v1103_v18 }
 0x155   : > { %v5755_v36 = vpop.permute.xlu2 %1911 }
 0x156   : > { %v1168_v61 = vunpack.c.h.b16 %v5761_v42 }
 0x157   : > { %v1077_v39 = vpop.f32.mrf.mxu2 }
 0x158   : > { %v981_v43 = vpop.f32.mrf.mxu0  ;;  %v1078_v54 = vadd.f32 %v1077_v39, %v5637_v34 }
 0x159   : > { %v982_v47 = vadd.f32 %v981_v43, %v5583_v52  ;;  %v1030_v48 = vpop.f32.mrf.mxu1  ;;  %v1075_v52 = vadd.f32 %v1074_v29, %v5637_v34  ;;  %v1219_v43 = vsel %vm1178_vm0, %v5727_v13, 0 }
 0x15a   : > { %v1031_v55 = vadd.f32 %v1030_v48, %v5585_v53  ;;  %2166 = vrot.lane.b32.xlu1 %v5701_v50, %s5321_s0  ;;  %2534 = vrot.lane.b32.xlu0 %v5653_v57, %s5323_s2  ;;  %v1111_v63 = vpack.c.bf16 %v1078_v54, %v1078_v54 }
 0x15b   : > { %2536 = vrot.lane.b32.xlu2 %v5701_v50, %s5323_s2  ;;  %v1109_v15 = vpack.c.bf16 %v1075_v52, %v1075_v52 }
 0x15c   : > { %v5779_v53 = vpack.c.bf16 %v1031_v55, %v982_v47  ;;  %v1426_v56 = vunpack.c.l.b16 %v1111_v63  ;;  %v1216_v55 = vsel %vm1178_vm0, %v5685_v33, 0  ;;  %v1144_v33 = vunpack.c.l.b16 %v5761_v42 }
 0x15d   : > { %v5781_v62 = vpop.permute.xlu2 %2299  ;;  %v1425_v27 = vunpack.c.l.b16 %v1109_v15 }
 0x15e   : > { %v1169_v1 = vunpack.c.h.b16 %v5779_v53 }
 0x15f   : > { %v1079_v21 = vpop.f32.mrf.mxu2  ;;  %v5808_v37 = vpack.c.b16 %v1425_v27, %v1424_v20 }
 0x160   : > { %v1080_v16 = vadd.f32 %v1079_v21, %v5637_v34  ;;  %v5790_v3 = vpack.c.b16 %v1169_v1, %v1168_v61  ;;  %v1105_v34 = vpack.c.bf16 %v1070_v4, %v1070_v4 }
 0x162   : > { %v1113_v10 = vpack.c.bf16 %v1080_v16, %v1080_v16  ;;  %2530 = vrot.lane.b32.xlu1 %v5737_v26, %s5323_s2  ;;  %2162 = vrot.lane.b32.xlu0 %v5735_v22, %s5321_s0  ;;  %v1225_v49 = vsel %vm1178_vm0, %v5790_v3, 0  ;;  %v1423_v51 = vunpack.c.l.b16 %v1105_v34 }
 0x163   : > { %2532 = vrot.lane.b32.xlu2 %v5735_v22, %s5323_s2  ;;  %1227 = vmatpush.bf16.xpose.msra.mxu3 %v1225_v49 }
 0x164   : > { %v1427_v29 = vunpack.c.l.b16 %v1113_v10  ;;  %v5802_v30 = vpop.permute.xlu0 %1927  ;;  %v1433_v39 = vpack.c.b16 %v1423_v51, %v1422_v35  ;;  %v5830_v47 = vpop.permute.xlu1 %1557 }
 0x165   : > { %v5804_v31 = vpop.permute.xlu2 %2283 }
 0x166   : > { %7571 = vst [vmem:[#allocation11_spill] sm:$0xff] %v5804_v31  ;;  %v5806_v32 = vpack.c.b16 %v1427_v29, %v1426_v56 }
 0x168   : > { %1444 = vmatpush.bf16.msrb.mxu0 %v5806_v32 }
 0x16a   : > { %2307 = vrot.lane.b32.xlu1 %v5727_v13, %s5323_s2  ;;  %1551 = vrot.lane.b32.xlu0 %v5811_v0, %s5322_s1 }
 0x16b   : > { %2164 = vrot.lane.b32.xlu2 %v5653_v57, %s5321_s0  ;;  %1228 = vmatpush.bf16.xpose.msra.mxu3 %v1222_v38 }
 0x16c   : > { %1445 = vmatpush.bf16.msrb.mxu0 %v5808_v37  ;;  %v5821_v40 = vpop.permute.xlu0 %2281 }
 0x16d   : > { %7572 = vst [vmem:[#allocation12_spill] sm:$0xff] %v5821_v40  ;;  %v5823_v41 = vpop.permute.xlu2 %1561 }
 0x170   : > { %1446 = vmatpush.bf16.msrb.mxu0 %v1433_v39 }
 0x172   : > { %2291 = vrot.lane.b32.xlu1 %v5811_v0, %s5323_s2  ;;  %1569 = vrot.lane.b32.xlu0 %v1176_v25, %s5322_s1 }
 0x173   : > { %2160 = vrot.lane.b32.xlu2 %v5737_v26, %s5321_s0  ;;  %1229 = vmatpush.bf16.xpose.msra.mxu3 %v1219_v43 }
 0x174   : > { %1447 = vmatpush.bf16.msrb.mxu0 %v5725_v9  ;;  %v5835_v48 = vpop.permute.xlu0 %1559  ;;  %v1143_v9 = vunpack.c.l.b16 %v5775_v60 }
 0x175   : > { %v5837_v54 = vpop.permute.xlu2 %2301 }
 0x176   : > { %v5856_v63 = vpack.c.b16 %v1143_v9, %v1142_v59 }
 0x178   : > { %1448 = vmatpush.bf16.msrb.mxu0 %v5701_v50  ;;  %v5851_v50 = vpop.permute.xlu1 %2297 }
 0x17a   : > { %1800 = vrot.lane.b32.xlu1 %v1433_v39, %s5322_s1  ;;  %1939 = vrot.lane.b32.xlu0 %v1176_v25, %s5321_s0 }
 0x17b   : > { %1937 = vrot.lane.b32.xlu2 %v5727_v13, %s5321_s0  ;;  %1230 = vmatpush.bf16.xpose.msra.mxu3 %v1216_v55  ;;  %v1145_v13 = vunpack.c.l.b16 %v5779_v53 }
 0x17c   : > { %1449 = vmatpush.bf16.msrb.mxu0 %v5653_v57  ;;  %v5849_v52 = vpop.permute.xlu0 %1543  ;;  %v1213_v57 = vsel %vm1178_vm0, %v5663_v7, 0  ;;  %v1210_v7 = vsel %vm1178_vm0, %v5643_v45, 0 }
 0x17d   : > { %v5853_v61 = vpop.permute.xlu2 %2285  ;;  %v5870_v58 = vpack.c.b16 %v1145_v13, %v1144_v33 }
 0x17e   : > { %7573 = vst [vmem:[#allocation13_spill] sm:$0xff] %v5853_v61 }
 0x180   : > { %1450 = vmatpush.bf16.msrb.mxu0 %v5735_v22  ;;  %v5872_v42 = vpop.permute.xlu1 %1913 }
 0x182   : > { %2309 = vrot.lane.b32.xlu1 %v1176_v25, %s5323_s2  ;;  %1923 = vrot.lane.b32.xlu0 %v5856_v63, %s5321_s0 }
 0x183   : > { %1921 = vrot.lane.b32.xlu2 %v5811_v0, %s5321_s0  ;;  %1231 = vmatpush.bf16.xpose.msra.mxu3 %v1213_v57 }
 0x184   : > { %1451 = vmatpush.bf16.msrb.mxu0 %v5737_v26  ;;  %v5868_v22 = vpop.permute.xlu0 %1929 }
 0x185   : > { %v5874_v60 = vpop.permute.xlu2 %1563 }
 0x188   : > { %v5885_v53 = vpop.permute.xlu1 %1545 }
 0x18a   : > { %1555 = vrot.lane.b32.xlu1 %v5870_v58, %s5322_s1  ;;  %2293 = vrot.lane.b32.xlu0 %v5856_v63, %s5323_s2 }
 0x18b   : > { %2540 = vrot.lane.b32.xlu2 %v1433_v39, %s5323_s2  ;;  %1232 = vmatpush.bf16.xpose.msra.mxu3 %v1210_v7 }
 0x18c   : > { %v5883_v26 = vpop.permute.xlu0 %1794 }
 0x18d   : > { %v5887_v1 = vpop.permute.xlu2 %1547 }
 0x190   : > { %v5898_v4 = vpop.permute.xlu1 %1931 }
 0x192   : > { %1925 = vrot.lane.b32.xlu1 %v5870_v58, %s5321_s0  ;;  %1802 = vrot.lane.b32.xlu0 %v5808_v37, %s5322_s1 }
 0x193   : > { %2170 = vrot.lane.b32.xlu2 %v1433_v39, %s5321_s0  ;;  %1233 = vmatpush.bf16.xpose.msra.mxu3 %v1207_v2 }
 0x194   : > { %v5896_v45 = vpop.permute.xlu0 %2303 }
 0x195   : > { %v5908_v24 = vpop.permute.xlu2 %1935 }
 0x198   : > { %v5916_v21 = vpop.permute.xlu1 %1915 }
 0x19a   : > { %1571 = vrot.lane.b32.xlu0 %v5790_v3, %s5322_s1  ;;  %2544 = vrot.lane.b32.xlu1 %v5806_v32, %s5323_s2 }
 0x19b   : > { %1553 = vrot.lane.b32.xlu2 %v5856_v63, %s5322_s1  ;;  %1234 = vmatpush.bf16.xpose.msra.mxu3 %v1204_v8 }
 0x19c   : > { %v5910_v12 = vpop.permute.xlu0 %1917 }
 0x19d   : > { %v5922_v14 = vpop.permute.xlu2 %1798 }
 0x1a0   : > { %v5930_v16 = vpop.permute.xlu1 %1933 }
 0x1a2   : > { %1941 = vrot.lane.b32.xlu0 %v5790_v3, %s5321_s0  ;;  %4617 = vmatmul.msk.bf16.vlgmr.msra.gmra.mxu3 %vm1178_vm0, %v5597_v6 }
 0x1a3   : > { %2542 = vrot.lane.b32.xlu2 %v5808_v37, %s5323_s2 }
 0x1a4   : > { %v5920_v5 = vpop.permute.xlu0 %2287 }
 0x1a5   : > { %7574 = vst [vmem:[#allocation14_spill] sm:$0xff] %v5920_v5  ;;  %v5932_v6 = vpop.permute.xlu2 %1790 }
 0x1a8   : > { %v5942_v10 = vpop.permute.xlu1 %1565 }
 0x1aa   : > { %1804 = vrot.lane.b32.xlu0 %v5806_v32, %s5322_s1 }
 0x1ab   : > { %2172 = vrot.lane.b32.xlu2 %v5808_v37, %s5321_s0 }
 0x1ac   : > { %v5928_v15 = vpop.permute.xlu0 %1796 }
 0x1ad   : > { %v5944_v49 = vpop.permute.xlu2 %2538 }
 0x1b0   : > { %v5950_v18 = vpop.permute.xlu1 %1549 }
 0x1b2   : > { %2174 = vrot.lane.b32.xlu0 %v5806_v32, %s5321_s0  ;;  %4618 = vmatmul.msk.bf16.gmra.mxu3 %vm1178_vm0, %v5619_v23 }
 0x1b3   : > { %2311 = vrot.lane.b32.xlu2 %v5790_v3, %s5323_s2 }
 0x1b4   : > { %v5940_v56 = vpop.permute.xlu0 %2305 }
 0x1b5   : > { %v5954_v23 = vpop.permute.xlu2 %2536 }
 0x1b8   : > { %v1568_v3 = vpop.permute.xlu1 %1567 }
 0x1bb   : > { %2295 = vrot.lane.b32.xlu2 %v5870_v58, %s5323_s2 }
 0x1bc   : > { %v5948_v11 = vpop.permute.xlu0 %1919 }
 0x1bd   : > { %v5960_v20 = vpop.permute.xlu2 %2532 }
 0x1c0   : > { %v5966_v27 = vpop.permute.xlu1 %1792 }
 0x1c2   : > { %4619 = vmatmul.msk.bf16.gmra.mxu3 %vm1178_vm0, %v5641_v44 }
 0x1c4   : > { %v5956_v19 = vpop.permute.xlu0 %2289 }
 0x1c5   : > { %7575 = vst [vmem:[#allocation15_spill] sm:$0xff] %v5956_v19  ;;  %v5968_v29 = vpop.permute.xlu2 %2164 }
 0x1c8   : > { %v5972_v44 = vpop.permute.xlu1 %2168 }
 0x1cc   : > { %v5958_v34 = vpop.permute.xlu0 %2534 }
 0x1cd   : > { %v5974_v35 = vpop.permute.xlu2 %2160 }
 0x1d0   : > { %v5978_v37 = vpop.permute.xlu1 %2166 }
 0x1d2   : > { %4620 = vmatmul.msk.bf16.gmra.mxu3 %vm1178_vm0, %v5673_v17 }
 0x1d4   : > { %v5964_v25 = vpop.permute.xlu0 %2162 }
 0x1d5   : > { %v1938_v38 = vpop.permute.xlu2 %1937 }
 0x1d8   : > { %v5982_v39 = vpop.permute.xlu1 %2530 }
 0x1dc   : > { %v5970_v32 = vpop.permute.xlu0 %1551 }
 0x1dd   : > { %v5986_v55 = vpop.permute.xlu2 %1921 }
 0x1e0   : > { %v5990_v9 = vpop.permute.xlu1 %2307 }
 0x1e2   : > { %4621 = vmatmul.msk.bf16.gmra.mxu3 %vm1178_vm0, %v5697_v46 }
 0x1e4   : > { %v1570_v51 = vpop.permute.xlu0 %1569 }
 0x1e5   : > { %v5992_v33 = vpop.permute.xlu2 %2540  ;;  %v1616_v19 = vsel %vm1178_vm0, %v1570_v51, 0  ;;  %v5324_v51 = vmov -1e+30  }
 0x1e8   : > { %v5996_v13 = vpop.permute.xlu1 %2291 }
 0x1e9   : > { %7577 = vst [vmem:[#allocation17_spill] sm:$0xff] %v5996_v13 }
 0x1ec   : > { %v1940_v17 = vpop.permute.xlu0 %1939 }
 0x1ed   : > { %v2171_v57 = vpop.permute.xlu2 %2170 }
 0x1f0   : > { %v1801_v2 = vpop.permute.xlu1 %1800 }
 0x1f2   : > { %4622 = vmatmul.msk.bf16.gmra.mxu3 %vm1178_vm0, %v5811_v0 }
 0x1f4   : > { %v5984_v43 = vpop.permute.xlu0 %1923 }
 0x1f5   : > { %v6001_v8 = vpop.permute.xlu2 %1553 }
 0x1f8   : > { %v6005_v13 = vpop.permute.xlu1 %2309 }
 0x1fc   : > { %v5988_v59 = vpop.permute.xlu0 %2293 }
 0x1fd   : > { %7576 = vst [vmem:[#allocation16_spill] sm:$0xff] %v5988_v59 }
 0x202   : > { %4623 = vmatmul.msk.bf16.gmra.mxu3 %vm1178_vm0, %v5856_v63  ;;  %v755_v63 = vlaneseq }
 0x204   : > { %v1803_v46 = vpop.permute.xlu0 %1802  ;;  %v756_v31 = vand.u32 127, %v755_v63 }
 0x206   : > { %vm757_vm1 = vcmp.lt.s32.totalorder %v756_v31, 100 }
 0x207   : > { %v6009_v40 = vsel %vm757_vm1, 0.0, %v5324_v51 }
 0x20c   : > { %v1572_v0 = vpop.permute.xlu0 %1571 }
 0x20d   : > { %v1619_v7 = vsel %vm1178_vm0, %v1572_v0, 0  ;;  %v1613_v0 = vsel %vm1178_vm0, %v1568_v3, 0  ;;  %v1983_v3 = vsel %vm1178_vm0, %v1938_v38, 0  ;;  %v1980_v38 = vsel %vm1178_vm0, %v5908_v24, 0 }
 0x20e   : > { %1621 = vmatpush.bf16.xpose.msrb.mxu1 %v1619_v7  ;;  %v1986_v7 = vsel %vm1178_vm0, %v1940_v17, 0  ;;  %v1977_v24 = vsel %vm1178_vm0, %v5930_v16, 0  ;;  %v1974_v16 = vsel %vm1178_vm0, %v5898_v4, 0  ;;  %v1971_v4 = vsel %vm1178_vm0, %v5868_v22, 0 }
 0x20f   : > { %v2356_v22 = vsel %vm1178_vm0, %v6005_v13, 0  ;;  %v2341_v13 = vsel %vm1178_vm0, %v5781_v62, 0 }
 0x212   : > { %4624 = vmatmul.msk.bf16.gmra.mxu3 %vm1178_vm0, %v5870_v58  ;;  %v2543_v58 = vpop.permute.xlu2 %2542 }
 0x214   : > { %v1942_v59 = vpop.permute.xlu0 %1941 }
 0x215   : > { %v1989_v5 = vsel %vm1178_vm0, %v1942_v59, 0 }
 0x216   : > { %1622 = vmatpush.bf16.xpose.msrb.mxu1 %v1616_v19  ;;  %1991 = vmatpush.bf16.xpose.msrb.mxu3 %v1989_v5  ;;  %v6011_v5 = vpop.permute.xlu1 %1555 }
 0x21a   : > { %v2173_v31 = vpop.permute.xlu2 %2172 }
 0x21c   : > { %v1805_v61 = vpop.permute.xlu0 %1804 }
 0x21d   : > { %1814 = vmatpush.bf16.msrb.mxu2 %v1805_v61  ;;  %v1610_v61 = vsel %vm1178_vm0, %v5942_v10, 0  ;;  %v1607_v10 = vsel %vm1178_vm0, %v5874_v60, 0  ;;  %v1604_v60 = vsel %vm1178_vm0, %v5823_v41, 0  ;;  %v1601_v41 = vsel %vm1178_vm0, %v5835_v48, 0 }
 0x21e   : > { %1623 = vmatpush.bf16.xpose.msrb.mxu1 %v1613_v0  ;;  %1992 = vmatpush.bf16.xpose.msrb.mxu3 %v1986_v7  ;;  %v6029_v63 = vpop.permute.xlu1 %1925  ;;  %v1598_v48 = vsel %vm1178_vm0, %v5830_v47, 0  ;;  %v1968_v47 = vsel %vm1178_vm0, %v5802_v30, 0  ;;  %v2353_v30 = vsel %vm1178_vm0, %v5990_v9, 0  ;;  %v2347_v9 = vsel %vm1178_vm0, %v5896_v45, 0 }
 0x221   : > { %1815 = vmatpush.bf16.msrb.mxu2 %v1803_v46 }
 0x224   : > { %v2175_v19 = vpop.permute.xlu0 %2174 }
 0x225   : > { %v1236_v59 = vpop.f32.mrf.mxu3  ;;  %1816 = vmatpush.bf16.msrb.mxu2 %v1801_v2  ;;  %2184 = vmatpush.bf16.msra.mxu0 %v2175_v19 }
 0x226   : > { %v6017_v17 = vadd.f32 %v1236_v59, %v6009_v40  ;;  %1624 = vmatpush.bf16.xpose.msrb.mxu1 %v1610_v61  ;;  %1993 = vmatpush.bf16.xpose.msrb.mxu3 %v1983_v3 }
 0x228   : > { %1276 = vmax.xlane.f32.xlu0 %v6017_v17 }
 0x229   : > { %1817 = vmatpush.bf16.msrb.mxu2 %v5922_v14  ;;  %2185 = vmatpush.bf16.msra.mxu0 %v2173_v31 }
 0x22d   : > { %v1238_v46 = vpop.f32.mrf.mxu3  ;;  %1818 = vmatpush.bf16.msrb.mxu2 %v5928_v15  ;;  %2186 = vmatpush.bf16.msra.mxu0 %v2171_v57  ;;  %v2545_v57 = vpop.permute.xlu1 %2544 }
 0x22e   : > { %1625 = vmatpush.bf16.xpose.msrb.mxu1 %v1607_v10  ;;  %1994 = vmatpush.bf16.xpose.msrb.mxu3 %v1980_v38  ;;  %v6027_v2 = vadd.f32 %v1238_v46, %v6009_v40 }
 0x230   : > { %1278 = vmax.xlane.f32.xlu2 %v6027_v2 }
 0x231   : > { %1819 = vmatpush.bf16.msrb.mxu2 %v5883_v26  ;;  %2187 = vmatpush.bf16.msra.mxu0 %v5972_v44 }
 0x235   : > { %v1241_v14 = vpop.f32.mrf.mxu3  ;;  %1820 = vmatpush.bf16.msrb.mxu2 %v5966_v27  ;;  %2188 = vmatpush.bf16.msra.mxu0 %v5978_v37 }
 0x236   : > { %v6041_v15 = vadd.f32 %v1241_v14, %v6009_v40  ;;  %1626 = vmatpush.bf16.xpose.msrb.mxu1 %v1604_v60  ;;  %1995 = vmatpush.bf16.xpose.msrb.mxu3 %v1977_v24 }
 0x238   : > { %1280 = vmax.xlane.f32.xlu0 %v6041_v15 }
 0x239   : > { %1821 = vmatpush.bf16.msrb.mxu2 %v5932_v6  ;;  %2189 = vmatpush.bf16.msra.mxu0 %v5968_v29  ;;  %v2312_v6 = vpop.permute.xlu2 %2311 }
 0x23a   : > { %v2359_v29 = vsel %vm1178_vm0, %v2312_v6, 0 }
 0x23d   : > { %2554 = vmatpush.bf16.msra.mxu2 %v2545_v57  ;;  %v1243_v26 = vpop.f32.mrf.mxu3  ;;  %2190 = vmatpush.bf16.msra.mxu0 %v5964_v25 }
 0x23e   : > { %1627 = vmatpush.bf16.xpose.msrb.mxu1 %v1601_v41  ;;  %1996 = vmatpush.bf16.xpose.msrb.mxu3 %v1974_v16  ;;  %v6052_v27 = vadd.f32 %v1243_v26, %v6009_v40 }
 0x240   : > { %1282 = vmax.xlane.f32.xlu1 %v6052_v27 }
 0x241   : > { %2555 = vmatpush.bf16.msra.mxu2 %v2543_v58  ;;  %2191 = vmatpush.bf16.msra.mxu0 %v5974_v35  ;;  %v6143_v58 = vpop.permute.xlu2 %2295 }
 0x245   : > { %2556 = vmatpush.bf16.msra.mxu2 %v5992_v33  ;;  %v1246_v25 = vpop.f32.mrf.mxu3 }
 0x246   : > { %v6063_v44 = vadd.f32 %v1246_v25, %v6009_v40  ;;  %1628 = vmatpush.bf16.xpose.msrb.mxu1 %v1598_v48  ;;  %1997 = vmatpush.bf16.xpose.msrb.mxu3 %v1971_v4  ;;  %v7578_v48 = vld [vmem:[#allocation12_spill] sm:$0xff] }
 0x248   : > { %1284 = vmax.xlane.f32.xlu0 %v6063_v44 }
 0x249   : > { %2557 = vmatpush.bf16.msra.mxu2 %v5944_v49 }
 0x24d   : > { %2558 = vmatpush.bf16.msra.mxu2 %v5954_v23  ;;  %v1248_v35 = vpop.f32.mrf.mxu3  ;;  %4625 = vmatmul.msk.bf16.vlgmr.msrb.gmra.mxu1 %vm1178_vm0, %v5745_v28 }
 0x24e   : > { %2361 = vmatpush.bf16.xpose.msra.mxu1 %v2359_v29  ;;  %1998 = vmatpush.bf16.xpose.msrb.mxu3 %v1968_v47  ;;  %v6075_v37 = vadd.f32 %v1248_v35, %v6009_v40 }
 0x250   : > { %1286 = vmax.xlane.f32.xlu2 %v6075_v37 }
 0x251   : > { %2559 = vmatpush.bf16.msra.mxu2 %v5958_v34  ;;  %v2350_v34 = vsel %vm1178_vm0, %v5940_v56, 0  ;;  %v2344_v56 = vsel %vm1178_vm0, %v5837_v54, 0 }
 0x255   : > { %2560 = vmatpush.bf16.msra.mxu2 %v5960_v20  ;;  %v1251_v49 = vpop.f32.mrf.mxu3  ;;  %4633 = vmatmul.msk.bf16.vlgmr.msrb.gmra.mxu3 %vm1178_vm0, %v5755_v36 }
 0x256   : > { %2362 = vmatpush.bf16.xpose.msra.mxu1 %v2356_v22  ;;  %v6083_v28 = vadd.f32 %v1251_v49, %v6009_v40 }
 0x258   : > { %1288 = vmax.xlane.f32.xlu2 %v6083_v28 }
 0x259   : > { %2561 = vmatpush.bf16.msra.mxu2 %v5982_v39 }
 0x25d   : > { %v1253_v23 = vpop.f32.mrf.mxu3  ;;  %4626 = vmatmul.msk.bf16.gmra.mxu1 %vm1178_vm0, %v5849_v52 }
 0x25e   : > { %2363 = vmatpush.bf16.xpose.msra.mxu1 %v2353_v30  ;;  %v6094_v36 = vadd.f32 %v1253_v23, %v6009_v40 }
 0x260   : > { %1290 = vmax.xlane.f32.xlu0 %v6094_v36 }
 0x265   : > { %v1256_v20 = vpop.f32.mrf.mxu3  ;;  %4634 = vmatmul.msk.bf16.gmra.mxu3 %vm1178_vm0, %v5872_v42 }
 0x266   : > { %2364 = vmatpush.bf16.xpose.msra.mxu1 %v2350_v34  ;;  %v6100_v39 = vadd.f32 %v1256_v20, %v6009_v40 }
 0x268   : > { %1292 = vmax.xlane.f32.xlu1 %v6100_v39 }
 0x26d   : > { %v1258_v52 = vpop.f32.mrf.mxu3  ;;  %4627 = vmatmul.msk.bf16.gmra.mxu1 %vm1178_vm0, %v5885_v53  ;;  %v2338_v53 = vsel %vm1178_vm0, %v5851_v50, 0 }
 0x26e   : > { %2365 = vmatpush.bf16.xpose.msra.mxu1 %v2347_v9  ;;  %v6110_v33 = vadd.f32 %v1258_v52, %v6009_v40  ;;  %v7579_v52 = vld [vmem:[#allocation11_spill] sm:$0xff] }
 0x270   : > { %1294 = vmax.xlane.f32.xlu2 %v6110_v33 }
 0x275   : > { %v1261_v42 = vpop.f32.mrf.mxu3  ;;  %4635 = vmatmul.msk.bf16.gmra.mxu3 %vm1178_vm0, %v5916_v21 }
 0x276   : > { %2366 = vmatpush.bf16.xpose.msra.mxu1 %v2344_v56  ;;  %v6116_v45 = vadd.f32 %v1261_v42, %v6009_v40 }
 0x278   : > { %1296 = vmax.xlane.f32.xlu0 %v6116_v45 }
 0x27d   : > { %v1263_v54 = vpop.f32.mrf.mxu3  ;;  %4628 = vmatmul.msk.bf16.gmra.mxu1 %vm1178_vm0, %v5887_v1 }
 0x27e   : > { %2367 = vmatpush.bf16.xpose.msra.mxu1 %v2341_v13  ;;  %v6126_v0 = vadd.f32 %v1263_v54, %v6009_v40 }
 0x280   : > { %1298 = vmax.xlane.f32.xlu0 %v6126_v0 }
 0x285   : > { %v1266_v21 = vpop.f32.mrf.mxu3  ;;  %4636 = vmatmul.msk.bf16.gmra.mxu3 %vm1178_vm0, %v5910_v12 }
 0x286   : > { %2368 = vmatpush.bf16.xpose.msra.mxu1 %v2338_v53  ;;  %v6132_v62 = vadd.f32 %v1266_v21, %v6009_v40 }
 0x288   : > { %1300 = vmax.xlane.f32.xlu2 %v6132_v62 }
 0x28d   : > { %v1268_v7 = vpop.f32.mrf.mxu3  ;;  %4629 = vmatmul.msk.bf16.gmra.mxu1 %vm1178_vm0, %v5950_v18 }
 0x28e   : > { %v6138_v50 = vadd.f32 %v1268_v7, %v6009_v40 }
 0x290   : > { %1302 = vmax.xlane.f32.xlu0 %v6138_v50 }
 0x295   : > { %v1271_v1 = vpop.f32.mrf.mxu3  ;;  %4637 = vmatmul.msk.bf16.gmra.mxu3 %vm1178_vm0, %v5948_v11 }
 0x296   : > { %v6187_v35 = vadd.f32 %v1271_v1, %v6009_v40 }
 0x29b   : > { %v1277_v12 = vpop.xlane.xlu0 %1276 }
 0x29c   : > { %v1308_v18 = vsub.f32 %v6017_v17, %v1277_v12 }
 0x29d   : > { %v1273_v51 = vpop.f32.mrf.mxu3  ;;  %4630 = vmatmul.msk.bf16.gmra.mxu1 %vm1178_vm0, %v5970_v32 }
 0x29e   : > { %v6148_v19 = vadd.f32 %v1273_v51, %v6009_v40  ;;  %v1324_v59 = vmul.f32 1.442695, %v1308_v18 }
 0x2a0   : > { %1306 = vmax.xlane.f32.xlu0 %v6148_v19  ;;  %4942 = vpow2.f32 %v1324_v59 }
 0x2a3   : > { %v1279_v61 = vpop.xlane.xlu2 %1278 }
 0x2a4   : > { %v1309_v3 = vsub.f32 %v6027_v2, %v1279_v61 }
 0x2a5   : > { %4638 = vmatmul.msk.bf16.gmra.mxu3 %vm1178_vm0, %v5986_v55 }
 0x2a6   : > { %v1326_v11 = vmul.f32 1.442695, %v1309_v3  ;;  %v4943_v46 = vpop.eup %4942 }
 0x2a8   : > { %4944 = vpow2.f32 %v1326_v11 }
 0x2ab   : > { %v1281_v31 = vpop.xlane.xlu0 %1280 }
 0x2ac   : > { %v1310_v17 = vsub.f32 %v6041_v15, %v1281_v31  ;;  %v7580_v31 = vld [vmem:[#allocation13_spill] sm:$0xff] }
 0x2ad   : > { %4631 = vmatmul.msk.bf16.gmra.mxu1 %vm1178_vm0, %v6001_v8 }
 0x2ae   : > { %v4945_v32 = vpop.eup %4944  ;;  %v1328_v38 = vmul.f32 1.442695, %v1310_v17 }
 0x2af   : > { %1358 = vadd.xlane.f32.xlu0 %v4945_v32  ;;  %v1388_v10 = vpack.c.bf16 %v4945_v32, %v4943_v46 }
 0x2b0   : > { %4946 = vpow2.f32 %v1328_v38 }
 0x2b1   : > { %1452 = vmatmul.bf16.vlgmr.msrb.gmra.mxu0 %v1388_v10 }
 0x2b3   : > { %v1283_v14 = vpop.xlane.xlu1 %1282 }
 0x2b4   : > { %v1311_v2 = vsub.f32 %v6052_v27, %v1283_v14 }
 0x2b5   : > { %4639 = vmatmul.msk.bf16.gmra.mxu3 %vm1178_vm0, %v5984_v43 }
 0x2b6   : > { %v1330_v55 = vmul.f32 1.442695, %v1311_v2  ;;  %v6161_v24 = vpop.eup %4946 }
 0x2b8   : > { %4948 = vpow2.f32 %v1330_v55 }
 0x2bb   : > { %v1285_v60 = vpop.xlane.xlu0 %1284 }
 0x2bc   : > { %v1312_v15 = vsub.f32 %v6063_v44, %v1285_v60 }
 0x2bd   : > { %4632 = vmatmul.msk.bf16.gmra.mxu1 %vm1178_vm0, %v6011_v5 }
 0x2be   : > { %v6165_v8 = vpop.eup %4948  ;;  %v1332_v26 = vmul.f32 1.442695, %v1312_v15 }
 0x2bf   : > { %v1389_v57 = vpack.c.bf16 %v6165_v8, %v6161_v24 }
 0x2c0   : > { %4950 = vpow2.f32 %v1332_v26 }
 0x2c1   : > { %1457 = vmatmul.bf16.gmra.mxu0 %v1389_v57 }
 0x2c3   : > { %v1287_v41 = vpop.xlane.xlu2 %1286 }
 0x2c4   : > { %v1313_v43 = vsub.f32 %v6075_v37, %v1287_v41 }
 0x2c5   : > { %4640 = vmatmul.msk.bf16.gmra.mxu3 %vm1178_vm0, %v6029_v63 }
 0x2c6   : > { %v1334_v16 = vmul.f32 1.442695, %v1313_v43  ;;  %v6176_v25 = vpop.eup %4950  ;;  %v7582_v43 = vld [vmem:[#allocation14_spill] sm:$0xff] }
 0x2c8   : > { %4952 = vpow2.f32 %v1334_v16 }
 0x2ca   : > { %v1630_v27 = vpop.f32.mrf.mxu1 }
 0x2cb   : > { %v6174_v5 = vadd.f32 %v1630_v27, %v6009_v40  ;;  %v1289_v6 = vpop.xlane.xlu2 %1288 }
 0x2cc   : > { %v1314_v29 = vsub.f32 %v6083_v28, %v1289_v6 }
 0x2cd   : > { %4641 = vmatmul.msk.bf16.vlgmr.msra.gmra.mxu1 %vm1178_vm0, %v7578_v48  ;;  %1670 = vmax.xlane.f32.xlu1 %v6174_v5 }
 0x2ce   : > { %v6181_v4 = vpop.eup %4952  ;;  %v1336_v47 = vmul.f32 1.442695, %v1314_v29 }
 0x2cf   : > { %v1390_v63 = vpack.c.bf16 %v6181_v4, %v6176_v25 }
 0x2d0   : > { %4954 = vpow2.f32 %v1336_v47 }
 0x2d1   : > { %1462 = vmatmul.bf16.gmra.mxu0 %v1390_v63 }
 0x2d2   : > { %v1632_v44 = vpop.f32.mrf.mxu1 }
 0x2d3   : > { %v1291_v22 = vpop.xlane.xlu0 %1290  ;;  %v6190_v37 = vadd.f32 %v1632_v44, %v6009_v40 }
 0x2d4   : > { %v1315_v49 = vsub.f32 %v6094_v36, %v1291_v22 }
 0x2d5   : > { %1304 = vmax.xlane.f32.xlu1 %v6187_v35  ;;  %1672 = vmax.xlane.f32.xlu2 %v6190_v37 }
 0x2d6   : > { %v1338_v28 = vmul.f32 1.442695, %v1315_v49  ;;  %v6198_v9 = vpop.eup %4954 }
 0x2d8   : > { %4956 = vpow2.f32 %v1338_v28  ;;  %v2000_v30 = vpop.f32.mrf.mxu3 }
 0x2d9   : > { %v6212_v21 = vadd.f32 %v2000_v30, %v6009_v40 }
 0x2da   : > { %v1635_v23 = vpop.f32.mrf.mxu1 }
 0x2db   : > { %v6196_v34 = vadd.f32 %v1635_v23, %v6009_v40  ;;  %v1293_v20 = vpop.xlane.xlu1 %1292 }
 0x2dc   : > { %v1316_v56 = vsub.f32 %v6100_v39, %v1293_v20 }
 0x2dd   : > { %4642 = vmatmul.msk.bf16.gmra.mxu1 %vm1178_vm0, %v7579_v52  ;;  %1674 = vmax.xlane.f32.xlu1 %v6196_v34 }
 0x2de   : > { %v6203_v36 = vpop.eup %4956  ;;  %1356 = vadd.xlane.f32.xlu2 %v4943_v46  ;;  %v1340_v7 = vmul.f32 1.442695, %v1316_v56 }
 0x2df   : > { %v1391_v42 = vpack.c.bf16 %v6203_v36, %v6198_v9 }
 0x2e0   : > { %v2002_v13 = vpop.f32.mrf.mxu3  ;;  %4958 = vpow2.f32 %v1340_v7 }
 0x2e1   : > { %1467 = vmatmul.bf16.gmra.mxu0 %v1391_v42  ;;  %v6209_v54 = vadd.f32 %v2002_v13, %v6009_v40 }
 0x2e2   : > { %v1637_v53 = vpop.f32.mrf.mxu1 }
 0x2e3   : > { %v1295_v1 = vpop.xlane.xlu2 %1294  ;;  %2042 = vmax.xlane.f32.xlu0 %v6209_v54  ;;  %v6216_v12 = vadd.f32 %v1637_v53, %v6009_v40 }
 0x2e4   : > { %v1317_v39 = vsub.f32 %v6110_v33, %v1295_v1 }
 0x2e5   : > { %2040 = vmax.xlane.f32.xlu1 %v6212_v21 }
 0x2e6   : > { %v1342_v51 = vmul.f32 1.442695, %v1317_v39  ;;  %1676 = vmax.xlane.f32.xlu2 %v6216_v12  ;;  %v6224_v11 = vpop.eup %4958 }
 0x2e8   : > { %4960 = vpow2.f32 %v1342_v51  ;;  %v2005_v18 = vpop.f32.mrf.mxu3  ;;  %v7587_v51 = vld [vmem:[#allocation17_spill] sm:$0xff] }
 0x2e9   : > { %v6236_v38 = vadd.f32 %v2005_v18, %v6009_v40 }
 0x2ea   : > { %v1640_v59 = vpop.f32.mrf.mxu1 }
 0x2eb   : > { %v6222_v61 = vadd.f32 %v1640_v59, %v6009_v40  ;;  %v1297_v3 = vpop.xlane.xlu0 %1296 }
 0x2ec   : > { %v1318_v46 = vsub.f32 %v6116_v45, %v1297_v3 }
 0x2ed   : > { %4643 = vmatmul.msk.bf16.gmra.mxu1 %vm1178_vm0, %v7580_v31  ;;  %1360 = vadd.xlane.f32.xlu1 %v6161_v24 }
 0x2ee   : > { %v6229_v33 = vpop.eup %4960  ;;  %1678 = vmax.xlane.f32.xlu2 %v6222_v61  ;;  %v1344_v14 = vmul.f32 1.442695, %v1318_v46 }
 0x2ef   : > { %v1392_v32 = vpack.c.bf16 %v6229_v33, %v6224_v11 }
 0x2f0   : > { %v2007_v17 = vpop.f32.mrf.mxu3  ;;  %4962 = vpow2.f32 %v1344_v14  ;;  %v7588_v14 = vld [vmem:[#allocation16_spill] sm:$0xff] }
 0x2f1   : > { %1472 = vmatmul.bf16.gmra.mxu0 %v1392_v32  ;;  %v6245_v26 = vadd.f32 %v2007_v17, %v6009_v40 }
 0x2f2   : > { %v1642_v10 = vpop.f32.mrf.mxu1 }
 0x2f3   : > { %v1299_v2 = vpop.xlane.xlu0 %1298  ;;  %v6242_v15 = vadd.f32 %v1642_v10, %v6009_v40 }
 0x2f4   : > { %v1319_v55 = vsub.f32 %v6126_v0, %v1299_v2 }
 0x2f5   : > { %2044 = vmax.xlane.f32.xlu1 %v6236_v38 }
 0x2f6   : > { %v1346_v60 = vmul.f32 1.442695, %v1319_v55  ;;  %1362 = vadd.xlane.f32.xlu2 %v6165_v8  ;;  %v6247_v41 = vpop.eup %4962 }
 0x2f7   : > { %7581 = vst [vmem:[#allocation12_spill] sm:$0xff] %v6247_v41 }
 0x2f8   : > { %4964 = vpow2.f32 %v1346_v60  ;;  %v2010_v45 = vpop.f32.mrf.mxu3 }
 0x2f9   : > { %v6269_v28 = vadd.f32 %v2010_v45, %v6009_v40 }
 0x2fa   : > { %v1645_v24 = vpop.f32.mrf.mxu1 }
 0x2fb   : > { %v1301_v57 = vpop.xlane.xlu2 %1300  ;;  %v6259_v48 = vadd.f32 %v1645_v24, %v6009_v40 }
 0x2fc   : > { %v1320_v8 = vsub.f32 %v6132_v62, %v1301_v57 }
 0x2fd   : > { %4644 = vmatmul.msk.bf16.gmra.mxu1 %vm1178_vm0, %v7582_v43  ;;  %1680 = vmax.xlane.f32.xlu1 %v6242_v15 }
 0x2fe   : > { %v6252_v0 = vpop.eup %4964  ;;  %2046 = vmax.xlane.f32.xlu2 %v6245_v26  ;;  %v1348_v29 = vmul.f32 1.442695, %v1320_v8 }
 0x2ff   : > { %7583 = vst [vmem:[#allocation11_spill] sm:$0xff] %v6252_v0  ;;  %v1393_v16 = vpack.c.bf16 %v6252_v0, %v6247_v41 }
 0x300   : > { %v2012_v27 = vpop.f32.mrf.mxu3  ;;  %4966 = vpow2.f32 %v1348_v29 }
 0x301   : > { %1477 = vmatmul.bf16.gmra.mxu0 %v1393_v16  ;;  %v6272_v30 = vadd.f32 %v2012_v27, %v6009_v40 }
 0x302   : > { %v1647_v6 = vpop.f32.mrf.mxu1 }
 0x303   : > { %v1303_v63 = vpop.xlane.xlu0 %1302  ;;  %v6262_v44 = vadd.f32 %v1647_v6, %v6009_v40 }
 0x304   : > { %v1321_v47 = vsub.f32 %v6138_v50, %v1303_v63  ;;  %v7585_v50 = vld [vmem:[#allocation15_spill] sm:$0xff] }
 0x305   : > { %1684 = vmax.xlane.f32.xlu0 %v6262_v44  ;;  %1682 = vmax.xlane.f32.xlu1 %v6259_v48 }
 0x306   : > { %v1350_v62 = vmul.f32 1.442695, %v1321_v47  ;;  %1364 = vadd.xlane.f32.xlu2 %v6176_v25  ;;  %v6274_v23 = vpop.eup %4966 }
 0x307   : > { %7584 = vst [vmem:[#allocation13_spill] sm:$0xff] %v6274_v23 }
 0x308   : > { %4968 = vpow2.f32 %v1350_v62  ;;  %v2015_v22 = vpop.f32.mrf.mxu3 }
 0x309   : > { %v6289_v13 = vadd.f32 %v2015_v22, %v6009_v40 }
 0x30a   : > { %v1650_v49 = vpop.f32.mrf.mxu1 }
 0x30d   : > { %4645 = vmatmul.msk.bf16.gmra.mxu1 %vm1178_vm0, %v7585_v50  ;;  %1366 = vadd.xlane.f32.xlu0 %v6181_v4  ;;  %v6292_v4 = vadd.f32 %v1650_v49, %v6009_v40 }
 0x30e   : > { %v6279_v20 = vpop.eup %4968  ;;  %2048 = vmax.xlane.f32.xlu1 %v6269_v28  ;;  %2050 = vmax.xlane.f32.xlu2 %v6272_v30 }
 0x30f   : > { %7586 = vst [vmem:[#allocation14_spill] sm:$0xff] %v6279_v20  ;;  %v1394_v25 = vpack.c.bf16 %v6279_v20, %v6274_v23 }
 0x310   : > { %v2017_v52 = vpop.f32.mrf.mxu3 }
 0x311   : > { %1482 = vmatmul.bf16.gmra.mxu0 %v1394_v25  ;;  %v6286_v42 = vadd.f32 %v2017_v52, %v6009_v40 }
 0x312   : > { %v1652_v56 = vpop.f32.mrf.mxu1 }
 0x313   : > { %v6301_v39 = vadd.f32 %v1652_v56, %v6009_v40  ;;  %v1307_v6 = vpop.xlane.xlu0 %1306 }
 0x314   : > { %v1323_v49 = vsub.f32 %v6148_v19, %v1307_v6 }
 0x315   : > { %2054 = vmax.xlane.f32.xlu0 %v6286_v42 }
 0x316   : > { %1686 = vmax.xlane.f32.xlu1 %v6292_v4  ;;  %2052 = vmax.xlane.f32.xlu2 %v6289_v13 }
 0x318   : > { %v2020_v53 = vpop.f32.mrf.mxu3 }
 0x319   : > { %v6311_v31 = vadd.f32 %v2020_v53, %v6009_v40 }
 0x31a   : > { %v1655_v7 = vpop.f32.mrf.mxu1 }
 0x31b   : > { %v6298_v1 = vadd.f32 %v1655_v7, %v6009_v40 }
 0x31d   : > { %4646 = vmatmul.msk.bf16.gmra.mxu1 %vm1178_vm0, %v7587_v51  ;;  %1690 = vmax.xlane.f32.xlu0 %v6298_v1 }
 0x31e   : > { %1688 = vmax.xlane.f32.xlu2 %v6301_v39 }
 0x320   : > { %v2022_v18 = vpop.f32.mrf.mxu3 }
 0x321   : > { %v6308_v59 = vadd.f32 %v2022_v18, %v6009_v40 }
 0x322   : > { %v1657_v3 = vpop.f32.mrf.mxu1 }
 0x323   : > { %2058 = vmax.xlane.f32.xlu1 %v6308_v59  ;;  %v6320_v10 = vadd.f32 %v1657_v3, %v6009_v40 }
 0x325   : > { %2056 = vmax.xlane.f32.xlu0 %v6311_v31 }
 0x328   : > { %v2025_v46 = vpop.f32.mrf.mxu3 }
 0x329   : > { %v6316_v32 = vadd.f32 %v2025_v46, %v6009_v40  ;;  %v6361_v46 = vpop.xlane.xlu0 %1358 }
 0x32a   : > { %v1660_v17 = vpop.f32.mrf.mxu1 }
 0x32b   : > { %2060 = vmax.xlane.f32.xlu1 %v6316_v32  ;;  %v6329_v45 = vadd.f32 %v1660_v17, %v6009_v40 }
 0x32d   : > { %4647 = vmatmul.msk.bf16.gmra.mxu1 %vm1178_vm0, %v7588_v14  ;;  %1692 = vmax.xlane.f32.xlu0 %v6320_v10 }
 0x32e   : > { %v6355_v51 = vpop.f32.mrf.mxu0 }
 0x330   : > { %v2027_v2 = vpop.f32.mrf.mxu3 }
 0x331   : > { %v6326_v55 = vadd.f32 %v2027_v2, %v6009_v40 }
 0x332   : > { %v1662_v60 = vpop.f32.mrf.mxu1 }
 0x333   : > { %2062 = vmax.xlane.f32.xlu2 %v6326_v55  ;;  %v6333_v24 = vadd.f32 %v1662_v60, %v6009_v40 }
 0x335   : > { %1694 = vmax.xlane.f32.xlu0 %v6329_v45  ;;  %1696 = vmax.xlane.f32.xlu1 %v6333_v24 }
 0x338   : > { %v2030_v57 = vpop.f32.mrf.mxu3 }
 0x339   : > { %v6345_v47 = vadd.f32 %v2030_v57, %v6009_v40 }
 0x33a   : > { %v1665_v43 = vpop.f32.mrf.mxu1 }
 0x33b   : > { %v6338_v8 = vadd.f32 %v1665_v43, %v6009_v40 }
 0x33d   : > { %4648 = vmatmul.msk.bf16.gmra.mxu1 %vm1178_vm0, %v6143_v58  ;;  %1698 = vmax.xlane.f32.xlu2 %v6338_v8  ;;  %v1354_v58 = vmul.f32 1.442695, %v1323_v49 }
 0x340   : > { %v2032_v16 = vpop.f32.mrf.mxu3  ;;  %v1671_v27 = vpop.xlane.xlu1 %1670 }
 0x341   : > { %v1702_v29 = vsub.f32 %v6174_v5, %v1671_v27  ;;  %v6358_v19 = vadd.f32 %v2032_v16, %v6009_v40 }
 0x342   : > { %v1667_v63 = vpop.f32.mrf.mxu1 }
 0x343   : > { %v1718_v62 = vmul.f32 1.442695, %v1702_v29  ;;  %v6348_v22 = vadd.f32 %v1667_v63, %v6009_v40  ;;  %v6382_v63 = vpop.f32.mrf.mxu0 }
 0x345   : > { %4970 = vpow2.f32 %v1718_v62  ;;  %1700 = vmax.xlane.f32.xlu0 %v6348_v22  ;;  %2064 = vmax.xlane.f32.xlu2 %v6345_v47 }
 0x346   : > { %4972 = vpow2.f32 %v1354_v58 }
 0x348   : > { %v2035_v50 = vpop.f32.mrf.mxu3  ;;  %v1305_v25 = vpop.xlane.xlu1 %1304 }
 0x349   : > { %v1322_v5 = vsub.f32 %v6187_v35, %v1305_v25  ;;  %v1673_v52 = vpop.xlane.xlu2 %1672 }
 0x34a   : > { %v1703_v56 = vsub.f32 %v6190_v37, %v1673_v52  ;;  %v2370_v53 = vpop.f32.mrf.mxu1 }
 0x34b   : > { %v4971_v7 = vpop.eup %4970  ;;  %v1352_v18 = vmul.f32 1.442695, %v1322_v5  ;;  %v6374_v16 = vadd.f32 %v2370_v53, %v6009_v40 }
 0x34c   : > { %v1720_v3 = vmul.f32 1.442695, %v1703_v56  ;;  %v6369_v60 = vpop.eup %4972 }
 0x34d   : > { %4974 = vpow2.f32 %v1352_v18  ;;  %2066 = vmax.xlane.f32.xlu0 %v6358_v19  ;;  %1750 = vadd.xlane.f32.xlu2 %v4971_v7  ;;  %7589 = vst [vmem:[#allocation15_spill] sm:$0xff] %v6369_v60 }
 0x34e   : > { %4976 = vpow2.f32 %v1720_v3 }
 0x350   : > { %v2037_v35 = vpop.f32.mrf.mxu3  ;;  %v1675_v17 = vpop.xlane.xlu1 %1674 }
 0x351   : > { %v1704_v37 = vsub.f32 %v6196_v34, %v1675_v17  ;;  %v6364_v14 = vpop.xlane.xlu2 %1356  ;;  %v6367_v2 = vadd.f32 %v2037_v35, %v6009_v40  ;;  %v6390_v35 = vadd.f32 %v2035_v50, %v6009_v40 }
 0x352   : > { %v2372_v57 = vpop.f32.mrf.mxu1 }
 0x353   : > { %v6371_v43 = vpop.eup %4974  ;;  %v1722_v27 = vmul.f32 1.442695, %v1704_v37  ;;  %2070 = vmax.xlane.f32.xlu1 %v6367_v2  ;;  %v6378_v6 = vadd.f32 %v2372_v57, %v6009_v40 }
 0x354   : > { %7590 = vst [vmem:[#allocation17_spill] sm:$0xff] %v6371_v43  ;;  %v4977_v34 = vpop.eup %4976  ;;  %v1395_v29 = vpack.c.bf16 %v6369_v60, %v6371_v43 }
 0x355   : > { %4978 = vpow2.f32 %v1722_v27  ;;  %2410 = vmax.xlane.f32.xlu0 %v6374_v16  ;;  %2412 = vmax.xlane.f32.xlu2 %v6378_v6  ;;  %v1782_v62 = vpack.c.bf16 %v4977_v34, %v4971_v7 }
 0x356   : > { %1487 = vmatmul.bf16.gmra.mxu0 %v1395_v29  ;;  %v2043_v49 = vpop.xlane.xlu0 %2042 }
 0x357   : > { %1822 = vmatmul.bf16.vlgmr.msrb.gmra.mxu2 %v1782_v62  ;;  %v2073_v58 = vsub.f32 %v6209_v54, %v2043_v49  ;;  %v6393_v54 = vpop.f32.mrf.mxu0 }
 0x358   : > { %v2041_v25 = vpop.xlane.xlu1 %2040 }
 0x359   : > { %v2090_v5 = vmul.f32 1.442695, %v2073_v58  ;;  %v2072_v52 = vsub.f32 %v6212_v21, %v2041_v25  ;;  %v1677_v56 = vpop.xlane.xlu2 %1676 }
 0x35a   : > { %v1705_v53 = vsub.f32 %v6216_v12, %v1677_v56  ;;  %v2375_v18 = vpop.f32.mrf.mxu1 }
 0x35b   : > { %v4979_v3 = vpop.eup %4978  ;;  %v2088_v17 = vmul.f32 1.442695, %v2072_v52  ;;  %4980 = vpow2.f32 %v2090_v5  ;;  %v6398_v29 = vadd.f32 %v2375_v18, %v6009_v40 }
 0x35c   : > { %v1724_v7 = vmul.f32 1.442695, %v1705_v53 }
 0x35d   : > { %4982 = vpow2.f32 %v2088_v17  ;;  %2068 = vmax.xlane.f32.xlu0 %v6390_v35  ;;  %1754 = vadd.xlane.f32.xlu2 %v4979_v3 }
 0x35e   : > { %4984 = vpow2.f32 %v1724_v7 }
 0x35f   : > { %v6402_v5 = vpop.f32.mrf.mxu0 }
 0x360   : > { %v6395_v37 = vpop.xlane.xlu1 %1360 }
 0x361   : > { %v1679_v21 = vpop.xlane.xlu2 %1678  ;;  %v4981_v57 = vpop.eup %4980 }
 0x362   : > { %v2377_v12 = vpop.f32.mrf.mxu1  ;;  %v1706_v58 = vsub.f32 %v6222_v61, %v1679_v21 }
 0x363   : > { %v4983_v27 = vpop.eup %4982 }
 0x364   : > { %v4985_v50 = vpop.eup %4984  ;;  %v2152_v62 = vpack.c.bf16 %v4981_v57, %v4983_v27  ;;  %2120 = vadd.xlane.f32.xlu1 %v4983_v27  ;;  %v1726_v53 = vmul.f32 1.442695, %v1706_v58 }
 0x365   : > { %1752 = vadd.xlane.f32.xlu0 %v4977_v34  ;;  %2414 = vmax.xlane.f32.xlu2 %v6398_v29  ;;  %v1783_v49 = vpack.c.bf16 %v4985_v50, %v4979_v3 }
 0x366   : > { %2192 = vmatmul.bf16.vlgmr.msra.gmra.mxu0 %v2152_v62 }
 0x367   : > { %1827 = vmatmul.bf16.gmra.mxu2 %v1783_v49  ;;  %v6409_v62 = vpop.f32.mrf.mxu0 }
 0x368   : > { %v2045_v25 = vpop.xlane.xlu1 %2044 }
 0x369   : > { %v6404_v52 = vpop.xlane.xlu2 %1362  ;;  %v2074_v56 = vsub.f32 %v6236_v38, %v2045_v25  ;;  %v6412_v38 = vadd.f32 %v2377_v12, %v6009_v40 }
 0x36a   : > { %v2380_v18 = vpop.f32.mrf.mxu1 }
 0x36b   : > { %v2092_v17 = vmul.f32 1.442695, %v2074_v56 }
 0x36d   : > { %4986 = vpow2.f32 %v2092_v17  ;;  %1756 = vadd.xlane.f32.xlu0 %v4985_v50  ;;  %2122 = vadd.xlane.f32.xlu2 %v4981_v57  ;;  %v6419_v17 = vadd.f32 %v2380_v18, %v6009_v40 }
 0x36e   : > { %4988 = vpow2.f32 %v1726_v53 }
 0x370   : > { %v1681_v34 = vpop.xlane.xlu1 %1680 }
 0x371   : > { %v2047_v3 = vpop.xlane.xlu2 %2046  ;;  %v1707_v61 = vsub.f32 %v6242_v15, %v1681_v34 }
 0x372   : > { %v2075_v7 = vsub.f32 %v6245_v26, %v2047_v3  ;;  %v2382_v21 = vpop.f32.mrf.mxu1 }
 0x373   : > { %v4987_v27 = vpop.eup %4986  ;;  %v1728_v49 = vmul.f32 1.442695, %v1707_v61  ;;  %v6430_v43 = vadd.f32 %v2382_v21, %v6009_v40 }
 0x374   : > { %v4989_v58 = vpop.eup %4988  ;;  %v2094_v25 = vmul.f32 1.442695, %v2075_v7  ;;  %2124 = vadd.xlane.f32.xlu1 %v4987_v27  ;;  %v6422_v7 = vpop.f32.mrf.mxu0 }
 0x375   : > { %4990 = vpow2.f32 %v1728_v49  ;;  %2416 = vmax.xlane.f32.xlu0 %v6412_v38  ;;  %1758 = vadd.xlane.f32.xlu2 %v4989_v58 }
 0x376   : > { %4992 = vpow2.f32 %v2094_v25 }
 0x378   : > { %v1683_v57 = vpop.xlane.xlu1 %1682  ;;  %v1685_v15 = vpop.xlane.xlu0 %1684 }
 0x379   : > { %v1708_v26 = vsub.f32 %v6259_v48, %v1683_v57  ;;  %v6416_v50 = vpop.xlane.xlu2 %1364  ;;  %v1709_v34 = vsub.f32 %v6262_v44, %v1685_v15 }
 0x37a   : > { %v2385_v56 = vpop.f32.mrf.mxu1 }
 0x37b   : > { %v4991_v53 = vpop.eup %4990  ;;  %v1730_v12 = vmul.f32 1.442695, %v1708_v26  ;;  %v1732_v48 = vmul.f32 1.442695, %v1709_v34  ;;  %v6437_v21 = vadd.f32 %v2385_v56, %v6009_v40 }
 0x37c   : > { %v4993_v3 = vpop.eup %4992  ;;  %v1784_v61 = vpack.c.bf16 %v4991_v53, %v4989_v58 }
 0x37d   : > { %4994 = vpow2.f32 %v1730_v12  ;;  %1760 = vadd.xlane.f32.xlu0 %v4991_v53  ;;  %2418 = vmax.xlane.f32.xlu2 %v6419_v17  ;;  %v2153_v49 = vpack.c.bf16 %v4993_v3, %v4987_v27  ;;  %v6433_v27 = vpop.f32.mrf.mxu0 }
 0x37e   : > { %1832 = vmatmul.bf16.gmra.mxu2 %v1784_v61  ;;  %4996 = vpow2.f32 %v1732_v48 }
 0x37f   : > { %2197 = vmatmul.bf16.gmra.mxu0 %v2153_v49 }
 0x380   : > { %v6425_v25 = vpop.xlane.xlu0 %1366 }
 0x381   : > { %v2049_v57 = vpop.xlane.xlu1 %2048  ;;  %v2051_v18 = vpop.xlane.xlu2 %2050 }
 0x382   : > { %v2076_v26 = vsub.f32 %v6269_v28, %v2049_v57  ;;  %v2077_v44 = vsub.f32 %v6272_v30, %v2051_v18  ;;  %v2387_v15 = vpop.f32.mrf.mxu1 }
 0x383   : > { %v4995_v58 = vpop.eup %4994 }
 0x384   : > { %v2096_v53 = vmul.f32 1.442695, %v2076_v26  ;;  %v2098_v12 = vmul.f32 1.442695, %v2077_v44  ;;  %1762 = vadd.xlane.f32.xlu1 %v4995_v58  ;;  %v4997_v28 = vpop.eup %4996 }
 0x385   : > { %2420 = vmax.xlane.f32.xlu0 %v6430_v43  ;;  %2126 = vadd.xlane.f32.xlu2 %v4993_v3  ;;  %v1785_v44 = vpack.c.bf16 %v4997_v28, %v4995_v58  ;;  %v6442_v56 = vpop.f32.mrf.mxu0 }
 0x386   : > { %4998 = vpow2.f32 %v2096_v53 }
 0x387   : > { %5000 = vpow2.f32 %v2098_v12 }
 0x388   : > { %v2055_v34 = vpop.xlane.xlu0 %2054 }
 0x389   : > { %v1687_v61 = vpop.xlane.xlu1 %1686  ;;  %v2053_v30 = vpop.xlane.xlu2 %2052  ;;  %v2079_v26 = vsub.f32 %v6286_v42, %v2055_v34  ;;  %v6446_v34 = vadd.f32 %v2387_v15, %v6009_v40 }
 0x38a   : > { %v1710_v49 = vsub.f32 %v6292_v4, %v1687_v61  ;;  %v2390_v57 = vpop.f32.mrf.mxu1  ;;  %v2078_v53 = vsub.f32 %v6289_v13, %v2053_v30 }
 0x38b   : > { %v2102_v4 = vmul.f32 1.442695, %v2079_v26  ;;  %v6453_v15 = vadd.f32 %v2390_v57, %v6009_v40 }
 0x38c   : > { %v4999_v48 = vpop.eup %4998  ;;  %v1734_v18 = vmul.f32 1.442695, %v1710_v49  ;;  %v2100_v0 = vmul.f32 1.442695, %v2078_v53 }
 0x38d   : > { %v5001_v3 = vpop.eup %5000  ;;  %2128 = vadd.xlane.f32.xlu1 %v4999_v48  ;;  %2422 = vmax.xlane.f32.xlu0 %v6437_v21  ;;  %v6450_v53 = vpop.f32.mrf.mxu0 }
 0x38e   : > { %5002 = vpow2.f32 %v1734_v18  ;;  %1764 = vadd.xlane.f32.xlu2 %v4997_v28  ;;  %1837 = vmatmul.bf16.gmra.mxu2 %v1785_v44  ;;  %v2154_v12 = vpack.c.bf16 %v5001_v3, %v4999_v48  ;;  %7591 = vst [vmem:[#allocation16_spill] sm:$0xff] %v6450_v53 }
 0x38f   : > { %5004 = vpow2.f32 %v2102_v4 }
 0x390   : > { %2202 = vmatmul.bf16.gmra.mxu0 %v2154_v12  ;;  %v1691_v61 = vpop.xlane.xlu0 %1690  ;;  %5006 = vpow2.f32 %v2100_v0 }
 0x391   : > { %v1689_v49 = vpop.xlane.xlu2 %1688  ;;  %v1712_v48 = vsub.f32 %v6298_v1, %v1691_v61 }
 0x392   : > { %v1711_v42 = vsub.f32 %v6301_v39, %v1689_v49  ;;  %v2392_v58 = vpop.f32.mrf.mxu1 }
 0x393   : > { %v1738_v12 = vmul.f32 1.442695, %v1712_v48  ;;  %v6456_v0 = vadd.f32 %v2392_v58, %v6009_v40 }
 0x394   : > { %v5003_v13 = vpop.eup %5002  ;;  %v1736_v30 = vmul.f32 1.442695, %v1711_v42 }
 0x395   : > { %2424 = vmax.xlane.f32.xlu1 %v6446_v34  ;;  %1766 = vadd.xlane.f32.xlu0 %v5003_v13  ;;  %v5005_v26 = vpop.eup %5004 }
 0x396   : > { %5008 = vpow2.f32 %v1736_v30  ;;  %2130 = vadd.xlane.f32.xlu2 %v5001_v3  ;;  %v2059_v28 = vpop.xlane.xlu1 %2058  ;;  %v5007_v39 = vpop.eup %5006 }
 0x397   : > { %v2081_v3 = vsub.f32 %v6308_v59, %v2059_v28  ;;  %v2155_v61 = vpack.c.bf16 %v5005_v26, %v5007_v39  ;;  %5010 = vpow2.f32 %v1738_v12  ;;  %v6466_v59 = vpop.f32.mrf.mxu0 }
 0x398   : > { %v2057_v18 = vpop.xlane.xlu0 %2056  ;;  %7592 = vst [vmem:[#allocation18_spill] sm:$0xff] %v6466_v59 }
 0x399   : > { %v2080_v49 = vsub.f32 %v6311_v31, %v2057_v18  ;;  %v2106_v48 = vmul.f32 1.442695, %v2081_v3 }
 0x39a   : > { %v2395_v44 = vpop.f32.mrf.mxu1 }
 0x39b   : > { %v2104_v57 = vmul.f32 1.442695, %v2080_v49 }
 0x39c   : > { %v5009_v4 = vpop.eup %5008 }
 0x39d   : > { %2426 = vmax.xlane.f32.xlu1 %v6453_v15  ;;  %2132 = vadd.xlane.f32.xlu0 %v5007_v39  ;;  %v1786_v1 = vpack.c.bf16 %v5009_v4, %v5003_v13  ;;  %5012 = vpow2.f32 %v2104_v57  ;;  %v5011_v13 = vpop.eup %5010 }
 0x39e   : > { %2428 = vmax.xlane.f32.xlu2 %v6456_v0  ;;  %v2061_v42 = vpop.xlane.xlu1 %2060 }
 0x39f   : > { %1842 = vmatmul.bf16.gmra.mxu2 %v1786_v1 }
 0x3a0   : > { %2207 = vmatmul.bf16.gmra.mxu0 %v2155_v61  ;;  %v1693_v30 = vpop.xlane.xlu0 %1692  ;;  %v6471_v61 = vadd.f32 %v2395_v44, %v6009_v40 }
 0x3a1   : > { %v1713_v58 = vsub.f32 %v6320_v10, %v1693_v30 }
 0x3a2   : > { %v2397_v60 = vpop.f32.mrf.mxu1 }
 0x3a3   : > { %v1740_v31 = vmul.f32 1.442695, %v1713_v58  ;;  %v6464_v18 = vadd.f32 %v2397_v60, %v6009_v40  ;;  %v5013_v10 = vpop.eup %5012  ;;  %v2082_v58 = vsub.f32 %v6316_v32, %v2061_v42 }
 0x3a5   : > { %5014 = vpow2.f32 %v1740_v31  ;;  %1768 = vadd.xlane.f32.xlu1 %v5009_v4  ;;  %2432 = vmax.xlane.f32.xlu0 %v6464_v18  ;;  %v6477_v31 = vpop.f32.mrf.mxu0  ;;  %v2108_v20 = vmul.f32 1.442695, %v2082_v58 }
 0x3a6   : > { %5016 = vpow2.f32 %v2106_v48  ;;  %1770 = vadd.xlane.f32.xlu2 %v5011_v13  ;;  %v2063_v28 = vpop.xlane.xlu2 %2062  ;;  %7593 = vst [vmem:[#allocation19_spill] sm:$0xff] %v6477_v31 }
 0x3a7   : > { %v2083_v4 = vsub.f32 %v6326_v55, %v2063_v28 }
 0x3a8   : > { %v1697_v39 = vpop.xlane.xlu1 %1696  ;;  %v1695_v12 = vpop.xlane.xlu0 %1694 }
 0x3a9   : > { %v1715_v1 = vsub.f32 %v6333_v24, %v1697_v39  ;;  %v1714_v57 = vsub.f32 %v6329_v45, %v1695_v12  ;;  %v2110_v23 = vmul.f32 1.442695, %v2083_v4 }
 0x3aa   : > { %v2400_v3 = vpop.f32.mrf.mxu1 }
 0x3ab   : > { %v5015_v49 = vpop.eup %5014  ;;  %v1744_v24 = vmul.f32 1.442695, %v1715_v1  ;;  %v1742_v39 = vmul.f32 1.442695, %v1714_v57  ;;  %v6480_v45 = vadd.f32 %v2400_v3, %v6009_v40 }
 0x3ac   : > { %v5017_v60 = vpop.eup %5016  ;;  %v1787_v30 = vpack.c.bf16 %v5015_v49, %v5011_v13 }
 0x3ad   : > { %2134 = vadd.xlane.f32.xlu1 %v5005_v26  ;;  %2138 = vadd.xlane.f32.xlu0 %v5017_v60  ;;  %v2156_v48 = vpack.c.bf16 %v5017_v60, %v5013_v10  ;;  %5018 = vpow2.f32 %v1744_v24  ;;  %v6486_v13 = vpop.f32.mrf.mxu0 }
 0x3ae   : > { %2430 = vmax.xlane.f32.xlu2 %v6471_v61  ;;  %5020 = vpow2.f32 %v1742_v39  ;;  %7594 = vst [vmem:[#allocation20_spill] sm:$0xff] %v6486_v13 }
 0x3af   : > { %1847 = vmatmul.bf16.gmra.mxu2 %v1787_v30  ;;  %5022 = vpow2.f32 %v2110_v23 }
 0x3b0   : > { %2212 = vmatmul.bf16.gmra.mxu0 %v2156_v48  ;;  %v1699_v44 = vpop.xlane.xlu2 %1698  ;;  %5024 = vpow2.f32 %v2108_v20 }
 0x3b1   : > { %v1716_v20 = vsub.f32 %v6338_v8, %v1699_v44 }
 0x3b2   : > { %v2402_v55 = vpop.f32.mrf.mxu1 }
 0x3b3   : > { %v6484_v42 = vpop.eup %5018  ;;  %v6499_v48 = vadd.f32 %v2402_v55, %v6009_v40 }
 0x3b4   : > { %v5021_v28 = vpop.eup %5020 }
 0x3b5   : > { %1370 = vadd.xlane.f32.xlu1 %v6203_v36  ;;  %2434 = vmax.xlane.f32.xlu0 %v6480_v45  ;;  %v5023_v12 = vpop.eup %5022  ;;  %v1788_v36 = vpack.c.bf16 %v6484_v42, %v5021_v28 }
 0x3b6   : > { %2136 = vadd.xlane.f32.xlu2 %v5013_v10  ;;  %v5025_v3 = vpop.eup %5024 }
 0x3b7   : > { %v2157_v10 = vpack.c.bf16 %v5023_v12, %v5025_v3 }
 0x3b8   : > { %v2065_v32 = vpop.xlane.xlu2 %2064  ;;  %v1701_v26 = vpop.xlane.xlu0 %1700 }
 0x3b9   : > { %v2084_v1 = vsub.f32 %v6345_v47, %v2065_v32  ;;  %v1717_v23 = vsub.f32 %v6348_v22, %v1701_v26  ;;  %v1746_v22 = vmul.f32 1.442695, %v1716_v20 }
 0x3ba   : > { %v2405_v57 = vpop.f32.mrf.mxu1 }
 0x3bb   : > { %v2112_v60 = vmul.f32 1.442695, %v2084_v1  ;;  %v1748_v30 = vmul.f32 1.442695, %v1717_v23 }
 0x3bd   : > { %1772 = vadd.xlane.f32.xlu1 %v5015_v49  ;;  %2140 = vadd.xlane.f32.xlu0 %v5025_v3  ;;  %v6496_v49 = vpop.f32.mrf.mxu0  ;;  %5026 = vpow2.f32 %v2112_v60  ;;  %v6511_v3 = vadd.f32 %v2405_v57, %v6009_v40 }
 0x3be   : > { %1368 = vadd.xlane.f32.xlu2 %v6198_v9  ;;  %7595 = vst [vmem:[#allocation21_spill] sm:$0xff] %v6496_v49  ;;  %5028 = vpow2.f32 %v1748_v30 }
 0x3bf   : > { %1852 = vmatmul.bf16.gmra.mxu2 %v1788_v36 }
 0x3c0   : > { %2217 = vmatmul.bf16.gmra.mxu0 %v2157_v10  ;;  %v6493_v4 = vpop.xlane.xlu2 %1750  ;;  %v2067_v47 = vpop.xlane.xlu0 %2066 }
 0x3c1   : > { %v2085_v58 = vsub.f32 %v6358_v19, %v2067_v47 }
 0x3c2   : > { %v2407_v19 = vpop.f32.mrf.mxu1 }
 0x3c3   : > { %v2114_v8 = vmul.f32 1.442695, %v2085_v58  ;;  %v6502_v39 = vpop.eup %5026  ;;  %v6516_v36 = vadd.f32 %v2407_v19, %v6009_v40 }
 0x3c4   : > { %v6506_v26 = vpop.eup %5028 }
 0x3c5   : > { %5030 = vpow2.f32 %v2114_v8  ;;  %2436 = vmax.xlane.f32.xlu1 %v6499_v48  ;;  %1774 = vadd.xlane.f32.xlu0 %v5021_v28  ;;  %7596 = vst [vmem:[#allocation22_spill] sm:$0xff] %v6506_v26 }
 0x3c6   : > { %5032 = vpow2.f32 %v1746_v22  ;;  %2142 = vadd.xlane.f32.xlu2 %v5023_v12  ;;  %v2071_v44 = vpop.xlane.xlu1 %2070 }
 0x3c7   : > { %v2087_v20 = vsub.f32 %v6367_v2, %v2071_v44 }
 0x3c8   : > { %v2413_v9 = vpop.xlane.xlu2 %2412  ;;  %v2411_v24 = vpop.xlane.xlu0 %2410 }
 0x3c9   : > { %v2443_v32 = vsub.f32 %v6378_v6, %v2413_v9  ;;  %v2442_v55 = vsub.f32 %v6374_v16, %v2411_v24  ;;  %v6521_v16 = vpop.f32.mrf.mxu0  ;;  %v2118_v60 = vmul.f32 1.442695, %v2087_v20 }
 0x3ca   : > { %7598 = vst [vmem:[#allocation24_spill] sm:$0xff] %v6521_v16 }
 0x3cb   : > { %v6508_v1 = vpop.eup %5030  ;;  %v2460_v28 = vmul.f32 1.442695, %v2443_v32  ;;  %v2458_v23 = vmul.f32 1.442695, %v2442_v55 }
 0x3cc   : > { %v6513_v12 = vpop.eup %5032  ;;  %v2158_v6 = vpack.c.bf16 %v6508_v1, %v6502_v39 }
 0x3cd   : > { %7597 = vst [vmem:[#allocation23_spill] sm:$0xff] %v6513_v12  ;;  %5034 = vpow2.f32 %v2460_v28  ;;  %2438 = vmax.xlane.f32.xlu1 %v6511_v3  ;;  %v1789_v10 = vpack.c.bf16 %v6506_v26, %v6513_v12 }
 0x3ce   : > { %5036 = vpow2.f32 %v2458_v23  ;;  %2440 = vmax.xlane.f32.xlu2 %v6516_v36 }
 0x3cf   : > { %1857 = vmatmul.bf16.gmra.mxu2 %v1789_v10  ;;  %5038 = vpow2.f32 %v2118_v60 }
 0x3d0   : > { %2222 = vmatmul.bf16.gmra.mxu0 %v2158_v6  ;;  %v6527_v40 = vpop.xlane.xlu2 %1754  ;;  %v2069_v2 = vpop.xlane.xlu0 %2068 }
 0x3d1   : > { %v2086_v57 = vsub.f32 %v6390_v35, %v2069_v2 }
 0x3d3   : > { %v5035_v30 = vpop.eup %5034  ;;  %v2116_v47 = vmul.f32 1.442695, %v2086_v57  ;;  %v6530_v22 = vpop.f32.mrf.mxu0 }
 0x3d4   : > { %v5037_v58 = vpop.eup %5036  ;;  %7599 = vst [vmem:[#allocation25_spill] sm:$0xff] %v6530_v22 }
 0x3d5   : > { %5040 = vpow2.f32 %v2116_v47  ;;  %2492 = vadd.xlane.f32.xlu1 %v5035_v30  ;;  %2490 = vadd.xlane.f32.xlu0 %v5037_v58  ;;  %v6534_v19 = vpop.eup %5038  ;;  %v2522_v28 = vpack.c.bf16 %v5035_v30, %v5037_v58 }
 0x3d6   : > { %1776 = vadd.xlane.f32.xlu2 %v6484_v42  ;;  %7600 = vst [vmem:[#allocation26_spill] sm:$0xff] %v6534_v19 }
 0x3d7   : > { %v2121_v10 = vpop.xlane.xlu1 %2120 }
 0x3d8   : > { %v2415_v8 = vpop.xlane.xlu2 %2414  ;;  %v1753_v9 = vpop.xlane.xlu0 %1752 }
 0x3d9   : > { %v2444_v24 = vsub.f32 %v6398_v29, %v2415_v8 }
 0x3da   : > { %v1823_v32 = vpop.f32.mrf.mxu2 }
 0x3db   : > { %v6536_v44 = vpop.eup %5040  ;;  %v2462_v35 = vmul.f32 1.442695, %v2444_v24  ;;  %v6540_v23 = vpop.f32.mrf.mxu0 }
 0x3dc   : > { %v2159_v55 = vpack.c.bf16 %v6534_v19, %v6536_v44  ;;  %7601 = vst [vmem:[#allocation27_spill] sm:$0xff] %v6540_v23 }
 0x3dd   : > { %5042 = vpow2.f32 %v2462_v35 }
 0x3de   : > { %5044 = vrcp.f32 %v1753_v9 }
 0x3df   : > { %2562 = vmatmul.bf16.vlgmr.msra.gmra.mxu2 %v2522_v28  ;;  %5046 = vrcp.f32 %v6493_v4 }
 0x3e0   : > { %2227 = vmatmul.bf16.gmra.mxu0 %v2159_v55  ;;  %v2123_v42 = vpop.xlane.xlu2 %2122  ;;  %v6542_v20 = vpop.xlane.xlu0 %1756 }
 0x3e2   : > { %v1825_v29 = vpop.f32.mrf.mxu2 }
 0x3e3   : > { %v5043_v6 = vpop.eup %5042  ;;  %v6548_v58 = vpop.f32.mrf.mxu0 }
 0x3e4   : > { %2494 = vadd.xlane.f32.xlu0 %v5043_v6  ;;  %v5045_v57 = vpop.eup %5044 }
 0x3e5   : > { %v1880_v47 = vmul.f32 %v5045_v57, %v1825_v29  ;;  %v5047_v8 = vpop.eup %5046 }
 0x3e6   : > { %v1879_v35 = vmul.f32 %v5047_v8, %v1823_v32 }
 0x3e7   : > { %v1896_v55 = vpack.c.bf16 %v1880_v47, %v1880_v47  ;;  %v2125_v9 = vpop.xlane.xlu1 %2124 }
 0x3e8   : > { %v6545_v60 = vpop.xlane.xlu2 %1758  ;;  %v2417_v2 = vpop.xlane.xlu0 %2416  ;;  %v1895_v4 = vpack.c.bf16 %v1879_v35, %v1879_v35 }
 0x3e9   : > { %v2445_v30 = vsub.f32 %v6412_v38, %v2417_v2  ;;  %v2708_v16 = vunpack.c.l.b16 %v1896_v55 }
 0x3ea   : > { %v6550_v28 = vpop.f32.mrf.mxu2  ;;  %v2707_v31 = vunpack.c.l.b16 %v1895_v4 }
 0x3eb   : > { %v2464_v24 = vmul.f32 1.442695, %v2445_v30  ;;  %v2195_v13 = vpop.f32.mrf.mxu0 }
 0x3ec   : > { %v2723_v2 = vpack.c.b16 %v2708_v16, %v2707_v31 }
 0x3ed   : > { %5048 = vpow2.f32 %v2464_v24 }
 0x3f0   : > { %v2419_v23 = vpop.xlane.xlu2 %2418  ;;  %v6552_v22 = vpop.xlane.xlu0 %1760 }
 0x3f1   : > { %v2446_v38 = vsub.f32 %v6419_v17, %v2419_v23 }
 0x3f2   : > { %v1830_v8 = vpop.f32.mrf.mxu2 }
 0x3f3   : > { %v5049_v49 = vpop.eup %5048  ;;  %v2466_v57 = vmul.f32 1.442695, %v2446_v38 }
 0x3f4   : > { %2496 = vadd.xlane.f32.xlu1 %v5049_v49  ;;  %v2523_v29 = vpack.c.bf16 %v5049_v49, %v5043_v6 }
 0x3f5   : > { %5050 = vpow2.f32 %v2466_v57 }
 0x3f6   : > { %2567 = vmatmul.bf16.gmra.mxu2 %v2523_v29 }
 0x3f7   : > { %v1763_v32 = vpop.xlane.xlu1 %1762 }
 0x3f8   : > { %v2127_v30 = vpop.xlane.xlu2 %2126  ;;  %2731 = vrot.lane.b32.xlu0 %v2723_v2, %s5323_s2  ;;  %v2421_v47 = vpop.xlane.xlu0 %2420 }
 0x3f9   : > { %v2447_v24 = vsub.f32 %v6430_v43, %v2421_v47 }
 0x3fb   : > { %v2468_v35 = vmul.f32 1.442695, %v2447_v24  ;;  %v6562_v16 = vpop.eup %5050 }
 0x3fc   : > { %v2198_v55 = vpop.f32.mrf.mxu0 }
 0x3fd   : > { %5052 = vpow2.f32 %v2468_v35 }
 0x400   : > { %v6557_v4 = vpop.xlane.xlu1 %2128  ;;  %v2423_v17 = vpop.xlane.xlu0 %2422 }
 0x401   : > { %v1765_v23 = vpop.xlane.xlu2 %1764  ;;  %v2448_v31 = vsub.f32 %v6437_v21, %v2423_v17  ;;  %v6560_v49 = vpop.f32.mrf.mxu2 }
 0x403   : > { %v5053_v6 = vpop.eup %5052  ;;  %v2470_v38 = vmul.f32 1.442695, %v2448_v31 }
 0x404   : > { %v2200_v29 = vpop.f32.mrf.mxu0  ;;  %2500 = vadd.xlane.f32.xlu1 %v5053_v6  ;;  %v2524_v43 = vpack.c.bf16 %v5053_v6, %v6562_v16 }
 0x405   : > { %5054 = vpow2.f32 %v2470_v38 }
 0x406   : > { %2572 = vmatmul.bf16.gmra.mxu2 %v2524_v43  ;;  %5056 = vrcp.f32 %v2123_v42 }
 0x407   : > { %5058 = vrcp.f32 %v2121_v10 }
 0x408   : > { %v2425_v2 = vpop.xlane.xlu1 %2424  ;;  %v6565_v57 = vpop.xlane.xlu0 %1766  ;;  %5060 = vrcp.f32 %v1763_v32 }
 0x409   : > { %v2449_v47 = vsub.f32 %v6446_v34, %v2425_v2  ;;  %v2131_v24 = vpop.xlane.xlu2 %2130  ;;  %v6568_v21 = vpop.f32.mrf.mxu2 }
 0x40b   : > { %v5055_v35 = vpop.eup %5054  ;;  %v2472_v17 = vmul.f32 1.442695, %v2449_v47 }
 0x40c   : > { %2502 = vadd.xlane.f32.xlu2 %v5055_v35  ;;  %v5057_v6 = vpop.eup %5056 }
 0x40d   : > { %5062 = vpow2.f32 %v2472_v17  ;;  %v6570_v31 = vpop.f32.mrf.mxu0  ;;  %v2250_v38 = vmul.f32 %v5057_v6, %v2195_v13  ;;  %v5059_v42 = vpop.eup %5058 }
 0x40e   : > { %5064 = vrcp.f32 %v2127_v30  ;;  %v5061_v34 = vpop.eup %5060  ;;  %v2249_v2 = vmul.f32 %v5059_v42, %v6548_v58 }
 0x40f   : > { %5066 = vrcp.f32 %v6542_v20  ;;  %v2266_v13 = vpack.c.bf16 %v2250_v38, %v2250_v38 }
 0x410   : > { %v2427_v43 = vpop.xlane.xlu1 %2426  ;;  %v2133_v53 = vpop.xlane.xlu0 %2132  ;;  %5068 = vrcp.f32 %v2125_v9  ;;  %v2265_v19 = vpack.c.bf16 %v2249_v2, %v2249_v2 }
 0x411   : > { %v2429_v10 = vpop.xlane.xlu2 %2428  ;;  %v1838_v59 = vpop.f32.mrf.mxu2  ;;  %5070 = vrcp.f32 %v6527_v40  ;;  %v2450_v32 = vsub.f32 %v6453_v15, %v2427_v43  ;;  %v2764_v40 = vunpack.c.l.b16 %v2266_v13 }
 0x412   : > { %v1885_v47 = vmul.f32 %v5061_v34, %v1838_v59  ;;  %5072 = vrcp.f32 %v1765_v23  ;;  %v2451_v30 = vsub.f32 %v6456_v0, %v2429_v10  ;;  %v2763_v34 = vunpack.c.l.b16 %v2265_v19 }
 0x413   : > { %v6576_v17 = vpop.eup %5062  ;;  %v2474_v42 = vmul.f32 1.442695, %v2450_v32  ;;  %5074 = vrcp.f32 %v2131_v24 }
 0x414   : > { %v2525_v20 = vpack.c.bf16 %v6576_v17, %v5055_v35  ;;  %v5065_v6 = vpop.eup %5064  ;;  %v2476_v15 = vmul.f32 1.442695, %v2451_v30  ;;  %5076 = vrcp.f32 %v6557_v4  ;;  %v1901_v32 = vpack.c.bf16 %v1885_v47, %v1885_v47 }
 0x415   : > { %v2205_v12 = vpop.f32.mrf.mxu0  ;;  %v5067_v58 = vpop.eup %5066  ;;  %v2252_v9 = vmul.f32 %v5065_v6, %v2200_v29  ;;  %5078 = vpow2.f32 %v2474_v42 }
 0x416   : > { %2577 = vmatmul.bf16.gmra.mxu2 %v2525_v20  ;;  %v5069_v26 = vpop.eup %5068  ;;  %v1882_v41 = vmul.f32 %v5067_v58, %v1830_v8  ;;  %v2779_v8 = vpack.c.b16 %v2764_v40, %v2763_v34  ;;  %5080 = vpow2.f32 %v2476_v15 }
 0x417   : > { %v5071_v59 = vpop.eup %5070  ;;  %v2251_v43 = vmul.f32 %v5069_v26, %v2198_v55  ;;  %v2268_v10 = vpack.c.bf16 %v2252_v9, %v2252_v9  ;;  %5082 = vrcp.f32 %v2133_v53 }
 0x418   : > { %v1769_v38 = vpop.xlane.xlu1 %1768  ;;  %v6580_v23 = vpop.xlane.xlu0 %2432  ;;  %v1881_v35 = vmul.f32 %v5071_v59, %v6550_v28  ;;  %v1898_v24 = vpack.c.bf16 %v1882_v41, %v1882_v41  ;;  %v6585_v28 = vunpack.c.l.b16 %v1901_v32  ;;  %5084 = vrcp.f32 %v6565_v57 }
 0x419   : > { %v5073_v0 = vpop.eup %5072  ;;  %v1771_v2 = vpop.xlane.xlu2 %1770  ;;  %v2267_v30 = vpack.c.bf16 %v2251_v43, %v2251_v43  ;;  %v2766_v19 = vunpack.c.l.b16 %v2268_v10 }
 0x41a   : > { %v1840_v29 = vpop.f32.mrf.mxu2  ;;  %v5075_v55 = vpop.eup %5074  ;;  %v1897_v20 = vpack.c.bf16 %v1881_v35, %v1881_v35  ;;  %v2710_v47 = vunpack.c.l.b16 %v1898_v24  ;;  %v2453_v24 = vsub.f32 %v6464_v18, %v6580_v23 }
 0x41b   : > { %v1886_v13 = vmul.f32 %v5073_v0, %v1840_v29  ;;  %v2254_v4 = vmul.f32 %v5075_v55, %v2205_v12  ;;  %v5077_v9 = vpop.eup %5076  ;;  %v2765_v41 = vunpack.c.l.b16 %v2267_v30 }
 0x41c   : > { %v6589_v42 = vpop.eup %5078  ;;  %v2253_v40 = vmul.f32 %v5077_v9, %v6570_v31  ;;  %v2709_v0 = vunpack.c.l.b16 %v1897_v20  ;;  %v2480_v18 = vmul.f32 1.442695, %v2453_v24 }
 0x41d   : > { %v1902_v26 = vpack.c.bf16 %v1886_v13, %v1886_v13  ;;  %v2208_v6 = vpop.f32.mrf.mxu0  ;;  %2787 = vrot.lane.b32.xlu1 %v2779_v8, %s5321_s0  ;;  %v6595_v43 = vpop.eup %5080  ;;  %v2780_v34 = vpack.c.b16 %v2766_v19, %v2765_v41  ;;  %v2270_v35 = vpack.c.bf16 %v2254_v4, %v2254_v4 }
 0x41e   : > { %v5083_v10 = vpop.eup %5082  ;;  %v2724_v32 = vpack.c.b16 %v2710_v47, %v2709_v0  ;;  %v2269_v31 = vpack.c.bf16 %v2253_v40, %v2253_v40  ;;  %v2526_v8 = vpack.c.bf16 %v6595_v43, %v6589_v42 }
 0x41f   : > { %v6587_v58 = vunpack.c.l.b16 %v1902_v26  ;;  %v2255_v13 = vmul.f32 %v5083_v10, %v2208_v6  ;;  %v5085_v26 = vpop.eup %5084 }
 0x420   : > { %v2135_v15 = vpop.xlane.xlu1 %2134  ;;  %v2139_v59 = vpop.xlane.xlu0 %2138  ;;  %v2767_v20 = vunpack.c.l.b16 %v2269_v31 }
 0x421   : > { %v2726_v53 = vpack.c.b16 %v6587_v58, %v6585_v28  ;;  %5086 = vrcp.f32 %v2135_v15  ;;  %v2431_v12 = vpop.xlane.xlu2 %2430  ;;  %v2271_v6 = vpack.c.bf16 %v2255_v13, %v2255_v13 }
 0x422   : > { %v1843_v29 = vpop.f32.mrf.mxu2  ;;  %2498 = vadd.xlane.f32.xlu0 %v6562_v16  ;;  %v2452_v57 = vsub.f32 %v6471_v61, %v2431_v12  ;;  %5088 = vrcp.f32 %v1769_v38  ;;  %v2768_v16 = vunpack.c.l.b16 %v2270_v35 }
 0x423   : > { %5090 = vrcp.f32 %v6545_v60  ;;  %v1887_v38 = vmul.f32 %v5085_v26, %v1843_v29  ;;  %v6608_v12 = vunpack.c.l.b16 %v2271_v6 }
 0x424   : > { %2789 = vrot.lane.b32.xlu2 %v2780_v34, %s5321_s0  ;;  %v2478_v61 = vmul.f32 1.442695, %v2452_v57  ;;  %5092 = vrcp.f32 %v6552_v22  ;;  %v2781_v41 = vpack.c.b16 %v2768_v16, %v2767_v20 }
 0x425   : > { %v2210_v30 = vpop.f32.mrf.mxu0  ;;  %2733 = vrot.lane.b32.xlu1 %v2724_v32, %s5323_s2  ;;  %5094 = vrcp.f32 %v1771_v2  ;;  %v1903_v60 = vpack.c.bf16 %v1887_v38, %v1887_v38 }
 0x426   : > { %2582 = vmatmul.bf16.gmra.mxu2 %v2526_v8 }
 0x427   : > { %v5087_v55 = vpop.eup %5086 }
 0x428   : > { %v2256_v19 = vmul.f32 %v5087_v55, %v2210_v30  ;;  %v1371_v4 = vpop.xlane.xlu1 %1370  ;;  %v2435_v9 = vpop.xlane.xlu0 %2434 }
 0x429   : > { %v2137_v23 = vpop.xlane.xlu2 %2136  ;;  %v5089_v47 = vpop.eup %5088  ;;  %v2454_v26 = vsub.f32 %v6480_v45, %v2435_v9 }
 0x42a   : > { %v2272_v40 = vpack.c.bf16 %v2256_v19, %v2256_v19  ;;  %5096 = vrcp.f32 %v2137_v23  ;;  %v1845_v15 = vpop.f32.mrf.mxu2  ;;  %2504 = vadd.xlane.f32.xlu0 %v6576_v17  ;;  %v5091_v2 = vpop.eup %5090  ;;  %v6615_v17 = vunpack.c.l.b16 %v1903_v60 }
 0x42b   : > { %5098 = vpow2.f32 %v2478_v61  ;;  %v1888_v0 = vmul.f32 %v5089_v47, %v1845_v15  ;;  %v5093_v29 = vpop.eup %5092  ;;  %v2482_v9 = vmul.f32 1.442695, %v2454_v26 }
 0x42c   : > { %v6610_v22 = vunpack.c.l.b16 %v2272_v40  ;;  %5100 = vrcp.f32 %v1371_v4  ;;  %2791 = vrot.lane.b32.xlu2 %v2781_v41, %s5321_s0  ;;  %v5095_v32 = vpop.eup %5094  ;;  %v1884_v13 = vmul.f32 %v5093_v29, %v6568_v21 }
 0x42d   : > { %5102 = vpow2.f32 %v2480_v18  ;;  %v1904_v34 = vpack.c.bf16 %v1888_v0, %v1888_v0  ;;  %v2213_v35 = vpop.f32.mrf.mxu0 }
 0x42e   : > { %v2782_v10 = vpack.c.b16 %v6610_v22, %v6608_v12  ;;  %5104 = vrcp.f32 %v2139_v59  ;;  %v1883_v59 = vmul.f32 %v5091_v2, %v6560_v49  ;;  %v1900_v21 = vpack.c.bf16 %v1884_v13, %v1884_v13 }
 0x42f   : > { %v6617_v57 = vunpack.c.l.b16 %v1904_v34 }
 0x430   : > { %v5097_v31 = vpop.eup %5096  ;;  %v1773_v8 = vpop.xlane.xlu1 %1772  ;;  %v1899_v47 = vpack.c.bf16 %v1883_v59, %v1883_v59  ;;  %v2712_v15 = vunpack.c.l.b16 %v1900_v21 }
 0x431   : > { %v2141_v24 = vpop.xlane.xlu0 %2140  ;;  %v6620_v30 = vpop.eup %5098  ;;  %v2727_v16 = vpack.c.b16 %v6617_v57, %v6615_v17  ;;  %v2257_v38 = vmul.f32 %v5097_v31, %v2213_v35 }
 0x432   : > { %v1369_v55 = vpop.xlane.xlu2 %1368  ;;  %v5101_v61 = vpop.eup %5100 }
 0x433   : > { %5106 = vrcp.f32 %v1369_v55  ;;  %v1848_v20 = vpop.f32.mrf.mxu2  ;;  %v6626_v6 = vpop.eup %5102  ;;  %v1516_v45 = vmul.f32 %v5101_v61, %v6442_v56  ;;  %v2273_v41 = vpack.c.bf16 %v2257_v38, %v2257_v38  ;;  %v2711_v56 = vunpack.c.l.b16 %v1899_v47 }
 0x434   : > { %v1889_v19 = vmul.f32 %v5095_v32, %v1848_v20  ;;  %5108 = vrcp.f32 %v1773_v8  ;;  %v2527_v4 = vpack.c.bf16 %v6626_v6, %v6620_v30  ;;  %v5105_v18 = vpop.eup %5104 }
 0x435   : > { %v2215_v23 = vpop.f32.mrf.mxu0  ;;  %v1532_v2 = vpack.c.bf16 %v1516_v45, %v1516_v45  ;;  %5110 = vpow2.f32 %v2482_v9  ;;  %v6633_v13 = vunpack.c.l.b16 %v2273_v41  ;;  %v2725_v20 = vpack.c.b16 %v2712_v15, %v2711_v56 }
 0x436   : > { %v2258_v40 = vmul.f32 %v5105_v18, %v2215_v23  ;;  %2587 = vmatmul.bf16.gmra.mxu2 %v2527_v4  ;;  %5112 = vrcp.f32 %v2141_v24  ;;  %v1905_v61 = vpack.c.bf16 %v1889_v19, %v1889_v19 }
 0x437   : > { %v6641_v18 = vunpack.c.l.b16 %v1532_v2 }
 0x438   : > { %v2274_v60 = vpack.c.bf16 %v2258_v40, %v2258_v40  ;;  %v2437_v0 = vpop.xlane.xlu1 %2436  ;;  %v6644_v45 = vunpack.c.l.b16 %v1905_v61 }
 0x439   : > { %v5107_v49 = vpop.eup %5106  ;;  %v2455_v35 = vsub.f32 %v6499_v48, %v2437_v0  ;;  %v1775_v32 = vpop.xlane.xlu0 %1774 }
 0x43a   : > { %v1515_v34 = vmul.f32 %v5107_v49, %v6433_v27  ;;  %v2143_v29 = vpop.xlane.xlu2 %2142  ;;  %v5109_v31 = vpop.eup %5108  ;;  %v6635_v8 = vunpack.c.l.b16 %v2274_v60  ;;  %5114 = vrcp.f32 %v1775_v32 }
 0x43b   : > { %v1850_v26 = vpop.f32.mrf.mxu2  ;;  %v2484_v59 = vmul.f32 1.442695, %v2455_v35  ;;  %v5111_v24 = vpop.eup %5110 }
 0x43c   : > { %v1531_v55 = vpack.c.bf16 %v1515_v34, %v1515_v34  ;;  %v1890_v38 = vmul.f32 %v5109_v31, %v1850_v26  ;;  %v2783_v27 = vpack.c.b16 %v6635_v8, %v6633_v13  ;;  %v5113_v23 = vpop.eup %5112 }
 0x43d   : > { %5116 = vpow2.f32 %v2484_v59  ;;  %v2218_v21 = vpop.f32.mrf.mxu0 }
 0x43e   : > { %v1906_v48 = vpack.c.bf16 %v1890_v38, %v1890_v38  ;;  %v6639_v4 = vunpack.c.l.b16 %v1531_v55  ;;  %2735 = vrot.lane.b32.xlu0 %v2725_v20, %s5323_s2  ;;  %5118 = vrcp.f32 %v2143_v29  ;;  %v2259_v60 = vmul.f32 %v5113_v23, %v2218_v21 }
 0x440   : > { %v6646_v19 = vunpack.c.l.b16 %v1906_v48  ;;  %v2686_v9 = vpack.c.b16 %v6641_v18, %v6639_v4  ;;  %v2439_v47 = vpop.xlane.xlu1 %2438  ;;  %v5115_v15 = vpop.eup %5114  ;;  %v2275_v26 = vpack.c.bf16 %v2259_v60, %v2259_v60 }
 0x441   : > { %v2456_v40 = vsub.f32 %v6511_v3, %v2439_v47 }
 0x442   : > { %v2728_v41 = vpack.c.b16 %v6646_v19, %v6644_v45  ;;  %v2441_v49 = vpop.xlane.xlu2 %2440  ;;  %v6657_v38 = vunpack.c.l.b16 %v2275_v26 }
 0x443   : > { %v2457_v0 = vsub.f32 %v6516_v36, %v2441_v49  ;;  %v1853_v2 = vpop.f32.mrf.mxu2  ;;  %v6654_v34 = vpop.eup %5116  ;;  %v2486_v31 = vmul.f32 1.442695, %v2456_v40 }
 0x444   : > { %v1891_v35 = vmul.f32 %v5115_v15, %v1853_v2  ;;  %v2528_v29 = vpack.c.bf16 %v6654_v34, %v5111_v24  ;;  %v5119_v32 = vpop.eup %5118 }
 0x445   : > { %v2220_v56 = vpop.f32.mrf.mxu0  ;;  %v2488_v55 = vmul.f32 1.442695, %v2457_v0  ;;  %5120 = vpow2.f32 %v2486_v31 }
 0x446   : > { %v2260_v61 = vmul.f32 %v5119_v32, %v2220_v56  ;;  %2592 = vmatmul.bf16.gmra.mxu2 %v2528_v29  ;;  %v1907_v40 = vpack.c.bf16 %v1891_v35, %v1891_v35 }
 0x447   : > { %5122 = vpow2.f32 %v2488_v55 }
 0x448   : > { %v2276_v59 = vpack.c.bf16 %v2260_v61, %v2260_v61  ;;  %v6674_v2 = vunpack.c.l.b16 %v1907_v40  ;;  %v2493_v61 = vpop.xlane.xlu1 %2492 }
 0x44a   : > { %v1777_v3 = vpop.xlane.xlu2 %1776  ;;  %v6659_v36 = vunpack.c.l.b16 %v2276_v59 }
 0x44b   : > { %v1855_v20 = vpop.f32.mrf.mxu2  ;;  %5124 = vrcp.f32 %v1777_v3  ;;  %v6663_v21 = vpop.eup %5120 }
 0x44c   : > { %v2784_v48 = vpack.c.b16 %v6659_v36, %v6657_v38  ;;  %5126 = vrcp.f32 %v6364_v14  ;;  %v2491_v14 = vpop.xlane.xlu0 %2490 }
 0x44d   : > { %v6666_v23 = vpop.eup %5122  ;;  %5128 = vrcp.f32 %v6361_v46 }
 0x44e   : > { %v2529_v0 = vpack.c.bf16 %v6666_v23, %v6663_v21  ;;  %5130 = vrcp.f32 %v2493_v61 }
 0x44f   : > { %2144 = vadd.xlane.f32.xlu1 %v6502_v39  ;;  %5132 = vrcp.f32 %v2491_v14 }
 0x450   : > { %5134 = vrcp.f32 %v6404_v52 }
 0x451   : > { %v5125_v47 = vpop.eup %5124  ;;  %5136 = vrcp.f32 %v6395_v37 }
 0x452   : > { %v1892_v49 = vmul.f32 %v5125_v47, %v1855_v20  ;;  %v5127_v35 = vpop.eup %5126  ;;  %5138 = vrcp.f32 %v6425_v25 }
 0x453   : > { %v6668_v15 = vpop.f32.mrf.mxu2  ;;  %v1509_v31 = vmul.f32 %v5127_v35, %v6355_v51  ;;  %5140 = vrcp.f32 %v6416_v50  ;;  %v7603_v50 = vld [vmem:[#allocation22_spill] sm:$0xff] }
 0x454   : > { %v1908_v60 = vpack.c.bf16 %v1892_v49, %v1892_v49 }
 0x455   : > { %1374 = vadd.xlane.f32.xlu2 %v6229_v33  ;;  %v5129_v33 = vpop.eup %5128  ;;  %v1525_v26 = vpack.c.bf16 %v1509_v31, %v1509_v31 }
 0x456   : > { %v6676_v29 = vunpack.c.l.b16 %v1908_v60  ;;  %2597 = vmatmul.bf16.gmra.mxu2 %v2529_v0  ;;  %v1510_v56 = vmul.f32 %v5129_v33, %v6382_v63  ;;  %v5131_v20 = vpop.eup %5130 }
 0x457   : > { %2508 = vadd.xlane.f32.xlu1 %v6595_v43  ;;  %v6687_v55 = vpop.xlane.xlu0 %2494  ;;  %v2667_v59 = vunpack.c.l.b16 %v1525_v26  ;;  %v5133_v40 = vpop.eup %5132 }
 0x458   : > { %v2729_v39 = vpack.c.b16 %v6676_v29, %v6674_v2  ;;  %v1526_v46 = vpack.c.bf16 %v1510_v56, %v1510_v56 }
 0x45a   : > { %v2668_v3 = vunpack.c.l.b16 %v1526_v46 }
 0x45b   : > { %v6682_v32 = vpop.f32.mrf.mxu2 }
 0x45c   : > { %v2683_v51 = vpack.c.b16 %v2668_v3, %v2667_v59 }
 0x45d   : > { %2514 = vadd.xlane.f32.xlu2 %v5111_v24 }
 0x45f   : > { %2510 = vadd.xlane.f32.xlu1 %v6620_v30 }
 0x463   : > { %v2563_v43 = vpop.f32.mrf.mxu2 }
 0x465   : > { %2148 = vadd.xlane.f32.xlu2 %v6536_v44  ;;  %v2619_v44 = vmul.f32 %v5133_v40, %v2563_v43 }
 0x467   : > { %1372 = vadd.xlane.f32.xlu1 %v6224_v11  ;;  %v2635_v60 = vpack.c.bf16 %v2619_v44, %v2619_v44  ;;  %v6700_v14 = vpop.xlane.xlu1 %2496  ;;  %v7602_v44 = vld [vmem:[#allocation12_spill] sm:$0xff] }
 0x468   : > { %2506 = vadd.xlane.f32.xlu0 %v6589_v42 }
 0x469   : > { %v2819_v11 = vunpack.c.l.b16 %v2635_v60 }
 0x46a   : > { %v2732_v63 = vpop.permute.xlu0 %2731 }
 0x46b   : > { %v6693_v30 = vsel %vm1178_vm0, %v2683_v51, %v2732_v63  ;;  %v2565_v24 = vpop.f32.mrf.mxu2 }
 0x46c   : > { %v2620_v47 = vmul.f32 %v5131_v20, %v2565_v24  ;;  %v4847_v24 = vld [vmem:[%s5469_s28 + $0x38] sm:$0xff] }
 0x46d   : > { %2993 = vmatpush.bf16.msra.mxu3 %v4847_v24  ;;  %v4841_v24 = vld [vmem:[%s5469_s28 + $0x8] sm:$0xff] }
 0x46e   : > { %v2636_v49 = vpack.c.bf16 %v2620_v47, %v2620_v47 }
 0x470   : > { %2146 = vadd.xlane.f32.xlu0 %v6508_v1  ;;  %v2820_v0 = vunpack.c.l.b16 %v2636_v49  ;;  %v5135_v1 = vpop.eup %5134  ;;  %v4846_v49 = vld [vmem:[%s5469_s28 + $0x30] sm:$0xff] }
 0x471   : > { %v5137_v33 = vpop.eup %5136  ;;  %v1512_v56 = vmul.f32 %v5135_v1, %v6402_v5  ;;  %2994 = vmatpush.bf16.msra.mxu3 %v4846_v49 }
 0x472   : > { %v2835_v42 = vpack.c.b16 %v2820_v0, %v2819_v11  ;;  %v1511_v26 = vmul.f32 %v5137_v33, %v6393_v54  ;;  %v4845_v11 = vld [vmem:[%s5469_s28 + $0x28] sm:$0xff]  ;;  %v4844_v33 = vld [vmem:[%s5469_s28 + $0x20] sm:$0xff] }
 0x473   : > { %v1528_v22 = vpack.c.bf16 %v1512_v56, %v1512_v56 }
 0x474   : > { %v1527_v52 = vpack.c.bf16 %v1511_v26, %v1511_v26 }
 0x475   : > { %v2670_v43 = vunpack.c.l.b16 %v1528_v22  ;;  %2995 = vmatpush.bf16.msra.mxu3 %v4845_v11 }
 0x476   : > { %v2669_v46 = vunpack.c.l.b16 %v1527_v52 }
 0x477   : > { %v2501_v31 = vpop.xlane.xlu1 %2500 }
 0x478   : > { %2512 = vadd.xlane.f32.xlu0 %v6626_v6  ;;  %v2684_v61 = vpack.c.b16 %v2670_v43, %v2669_v46 }
 0x479   : > { %v6697_v35 = vpop.f32.mrf.mxu2  ;;  %2996 = vmatpush.bf16.msra.mxu3 %v4844_v33 }
 0x47d   : > { %2843 = vrot.lane.b32.xlu2 %v2835_v42, %s5322_s1 }
 0x47f   : > { %v2503_v12 = vpop.xlane.xlu2 %2502 }
 0x480   : > { %2793 = vrot.lane.b32.xlu1 %v2782_v10, %s5321_s0 }
 0x481   : > { %v6708_v6 = vpop.f32.mrf.mxu2 }
 0x487   : > { %v2790_v3 = vpop.permute.xlu2 %2789 }
 0x489   : > { %v2573_v37 = vpop.f32.mrf.mxu2 }
 0x48c   : > { %2737 = vrot.lane.b32.xlu0 %v2726_v53, %s5323_s2  ;;  %v5139_v53 = vpop.eup %5138 }
 0x48d   : > { %v5141_v51 = vpop.eup %5140  ;;  %v1514_v63 = vmul.f32 %v5139_v53, %v6422_v7 }
 0x48e   : > { %v1513_v47 = vmul.f32 %v5141_v51, %v6409_v62 }
 0x48f   : > { %v6716_v10 = vpop.permute.xlu1 %2787  ;;  %v1530_v25 = vpack.c.bf16 %v1514_v63, %v1514_v63  ;;  %v2792_v52 = vpop.permute.xlu2 %2791 }
 0x490   : > { %v1529_v60 = vpack.c.bf16 %v1513_v47, %v1513_v47 }
 0x491   : > { %v2575_v58 = vpop.f32.mrf.mxu2  ;;  %v2672_v0 = vunpack.c.l.b16 %v1530_v25 }
 0x492   : > { %v2671_v42 = vunpack.c.l.b16 %v1529_v60  ;;  %v7605_v60 = vld [vmem:[#allocation26_spill] sm:$0xff] }
 0x494   : > { %v2685_v1 = vpack.c.b16 %v2672_v0, %v2671_v42 }
 0x495   : > { %v2499_v28 = vpop.xlane.xlu0 %2498 }
 0x497   : > { %v2734_v59 = vpop.permute.xlu1 %2733 }
 0x498   : > { %v2864_v54 = vsel %vm1178_vm0, %v2684_v61, %v2734_v59  ;;  %v4843_v61 = vld [vmem:[%s5469_s28 + $0x18] sm:$0xff] }
 0x499   : > { %v6720_v5 = vsel %vm2883_vm2, %v2864_v54, %v2790_v3  ;;  %v2578_v40 = vpop.f32.mrf.mxu2  ;;  %2997 = vmatpush.bf16.msra.mxu3 %v4843_v61  ;;  %v4842_v54 = vld [vmem:[%s5469_s28 + $0x10] sm:$0xff] }
 0x49d   : > { %v2505_v20 = vpop.xlane.xlu0 %2504  ;;  %2998 = vmatpush.bf16.msra.mxu3 %v4842_v54 }
 0x49e   : > { %5142 = vrcp.f32 %v2505_v20 }
 0x49f   : > { %5144 = vrcp.f32 %v2503_v12 }
 0x4a0   : > { %5146 = vrcp.f32 %v2499_v28 }
 0x4a1   : > { %v2580_v62 = vpop.f32.mrf.mxu2  ;;  %5148 = vrcp.f32 %v2501_v31  ;;  %2999 = vmatpush.bf16.msra.mxu3 %v4841_v24  ;;  %v7608_v24 = vld [vmem:[#allocation14_spill] sm:$0xff] }
 0x4a2   : > { %5150 = vrcp.f32 %v6700_v14 }
 0x4a3   : > { %5152 = vrcp.f32 %v6687_v55 }
 0x4a4   : > { %v5143_v7 = vpop.eup %5142 }
 0x4a5   : > { %v2626_v56 = vmul.f32 %v5143_v7, %v2580_v62  ;;  %v5145_v22 = vpop.eup %5144 }
 0x4a6   : > { %1376 = vadd.xlane.f32.xlu2 %v7602_v44  ;;  %v2625_v46 = vmul.f32 %v5145_v22, %v2578_v40  ;;  %v5147_v51 = vpop.eup %5146  ;;  %v7604_v40 = vld [vmem:[#allocation23_spill] sm:$0xff] }
 0x4a7   : > { %v2642_v59 = vpack.c.bf16 %v2626_v56, %v2626_v56  ;;  %v5149_v47 = vpop.eup %5148  ;;  %v4840_v44 = vld [vmem:[%s5469_s28] sm:$0xff]  ;;  %s7613_s28 = scalar_lea.vmem %s7524_s4, %s5446_s26 }
 0x4a8   : > { %v2641_v3 = vpack.c.bf16 %v2625_v46, %v2625_v46  ;;  %v2624_v28 = vmul.f32 %v5149_v47, %v2575_v58  ;;  %3000 = vmatpush.bf16.msra.mxu3 %v4840_v44  ;;  %v5151_v11 = vpop.eup %5150  ;;  %v7607_v46 = vld [vmem:[#allocation16_spill] sm:$0xff] }
 0x4a9   : > { %v2826_v53 = vunpack.c.l.b16 %v2642_v59  ;;  %v2622_v7 = vmul.f32 %v5151_v11, %v6708_v6  ;;  %v5153_v14 = vpop.eup %5152 }
 0x4aa   : > { %1780 = vadd.xlane.f32.xlu1 %v7603_v50  ;;  %v2825_v63 = vunpack.c.l.b16 %v2641_v3  ;;  %v2640_v49 = vpack.c.bf16 %v2624_v28, %v2624_v28  ;;  %v2621_v42 = vmul.f32 %v5153_v14, %v6697_v35  ;;  %v7610_v28 = vld [vmem:[#allocation15_spill] sm:$0xff] }
 0x4ab   : > { %v2638_v62 = vpack.c.bf16 %v2622_v7, %v2622_v7 }
 0x4ac   : > { %v2838_v20 = vpack.c.b16 %v2826_v53, %v2825_v63  ;;  %v2637_v33 = vpack.c.bf16 %v2621_v42, %v2621_v42 }
 0x4ad   : > { %v2822_v8 = vunpack.c.l.b16 %v2638_v62 }
 0x4b0   : > { %v2736_v26 = vpop.permute.xlu0 %2735 }
 0x4b1   : > { %v2867_v43 = vsel %vm1178_vm0, %v2685_v1, %v2736_v26  ;;  %v7606_v26 = vld [vmem:[#allocation18_spill] sm:$0xff] }
 0x4b2   : > { %2520 = vadd.xlane.f32.xlu1 %v6666_v23  ;;  %v6735_v12 = vsel %vm2883_vm2, %v2867_v43, %v2792_v52  ;;  %v2623_v23 = vmul.f32 %v5147_v51, %v2573_v37  ;;  %v2824_v37 = vunpack.c.l.b16 %v2640_v49  ;;  %v2885_v52 = vsel %vm2883_vm2, %v6693_v30, %v6716_v10  ;;  %v7609_v10 = vld [vmem:[#allocation13_spill] sm:$0xff] }
 0x4b4   : > { %v2639_v25 = vpack.c.bf16 %v2623_v23, %v2623_v23 }
 0x4b6   : > { %2516 = vadd.xlane.f32.xlu0 %v6654_v34  ;;  %v2823_v31 = vunpack.c.l.b16 %v2639_v25  ;;  %v7611_v25 = vld [vmem:[#allocation11_spill] sm:$0xff] }
 0x4b8   : > { %v2837_v58 = vpack.c.b16 %v2824_v37, %v2823_v31 }
 0x4be   : > { %1778 = vadd.xlane.f32.xlu0 %v7604_v40  ;;  %2849 = vrot.lane.b32.xlu2 %v2838_v20, %s5322_s1  ;;  %v2583_v20 = vpop.f32.mrf.mxu2  ;;  %v2223_v40 = vpop.f32.mrf.mxu0 }
 0x4c2   : > { %v2145_v34 = vpop.xlane.xlu1 %2144 }
 0x4c6   : > { %2150 = vadd.xlane.f32.xlu0 %v7605_v60  ;;  %2795 = vrot.lane.b32.xlu2 %v2783_v27, %s5321_s0  ;;  %v2821_v27 = vunpack.c.l.b16 %v2637_v33  ;;  %v2585_v44 = vpop.f32.mrf.mxu2  ;;  %v2225_v18 = vpop.f32.mrf.mxu0 }
 0x4c8   : > { %v1375_v50 = vpop.xlane.xlu2 %1374  ;;  %v2836_v55 = vpack.c.b16 %v2822_v8, %v2821_v27 }
 0x4c9   : > { %5154 = vrcp.f32 %v1375_v50 }
 0x4ca   : > { %v2509_v0 = vpop.xlane.xlu1 %2508 }
 0x4cb   : > { %2847 = vrot.lane.b32.xlu1 %v2837_v58, %s5322_s1 }
 0x4ce   : > { %v2588_v31 = vpop.f32.mrf.mxu2 }
 0x4cf   : > { %v5155_v35 = vpop.eup %5154 }
 0x4d0   : > { %v6754_v1 = vpop.xlane.xlu2 %2514  ;;  %v1518_v22 = vmul.f32 %v5155_v35, %v7606_v26 }
 0x4d2   : > { %v6756_v13 = vpop.xlane.xlu1 %2510  ;;  %v1534_v43 = vpack.c.bf16 %v1518_v22, %v1518_v22 }
 0x4d3   : > { %2739 = vrot.lane.b32.xlu1 %v2727_v16, %s5323_s2 }
 0x4d4   : > { %v6773_v53 = vunpack.c.l.b16 %v1534_v43 }
 0x4d6   : > { %v2590_v29 = vpop.f32.mrf.mxu2 }
 0x4d8   : > { %v6762_v56 = vpop.xlane.xlu2 %2148 }
 0x4da   : > { %v1373_v6 = vpop.xlane.xlu1 %1372  ;;  %2845 = vrot.lane.b32.xlu0 %v2836_v55, %s5322_s1 }
 0x4db   : > { %5156 = vrcp.f32 %v1373_v6  ;;  %v2507_v59 = vpop.xlane.xlu0 %2506 }
 0x4de   : > { %v2593_v33 = vpop.f32.mrf.mxu2 }
 0x4e0   : > { %v2844_v17 = vpop.permute.xlu2 %2843 }
 0x4e1   : > { %v5157_v57 = vpop.eup %5156  ;;  %v2902_v16 = vsel %vm2900_vm3, %v2885_v52, %v2844_v17 }
 0x4e2   : > { %v1517_v61 = vmul.f32 %v5157_v57, %v7607_v46  ;;  %3001 = vmatmul.bf16.vlgmr.msra.gmra.mxu3 %v2902_v16 }
 0x4e3   : > { %v2147_v63 = vpop.xlane.xlu0 %2146 }
 0x4e4   : > { %v1533_v3 = vpack.c.bf16 %v1517_v61, %v1517_v61  ;;  %5158 = vrcp.f32 %v2147_v63 }
 0x4e5   : > { %5160 = vrcp.f32 %v2145_v34 }
 0x4e6   : > { %v6771_v54 = vunpack.c.l.b16 %v1533_v3  ;;  %5162 = vrcp.f32 %v2507_v59  ;;  %v2595_v52 = vpop.f32.mrf.mxu2  ;;  %v2228_v3 = vpop.f32.mrf.mxu0 }
 0x4e7   : > { %5164 = vrcp.f32 %v2509_v0 }
 0x4e8   : > { %v2687_v51 = vpack.c.b16 %v6773_v53, %v6771_v54 }
 0x4ea   : > { %v5159_v49 = vpop.eup %5158 }
 0x4eb   : > { %v2513_v30 = vpop.xlane.xlu0 %2512  ;;  %v5161_v4 = vpop.eup %5160 }
 0x4ec   : > { %v5163_v50 = vpop.eup %5162  ;;  %5166 = vrcp.f32 %v2513_v30 }
 0x4ed   : > { %v5165_v11 = vpop.eup %5164  ;;  %v2627_v2 = vmul.f32 %v5163_v50, %v2583_v20  ;;  %5168 = vrcp.f32 %v6756_v13 }
 0x4ee   : > { %5170 = vrcp.f32 %v6754_v1 }
 0x4ef   : > { %1382 = vadd.xlane.f32.xlu2 %v7608_v24  ;;  %v2643_v14 = vpack.c.bf16 %v2627_v2, %v2627_v2 }
 0x4f1   : > { %v2827_v0 = vunpack.c.l.b16 %v2643_v14 }
 0x4f2   : > { %v5167_v27 = vpop.eup %5166  ;;  %v2794_v20 = vpop.permute.xlu1 %2793 }
 0x4f3   : > { %v5169_v55 = vpop.eup %5168  ;;  %v2630_v26 = vmul.f32 %v5167_v27, %v2590_v29 }
 0x4f4   : > { %v5171_v35 = vpop.eup %5170  ;;  %v2629_v22 = vmul.f32 %v5169_v55, %v2588_v31 }
 0x4f5   : > { %v2631_v45 = vmul.f32 %v5171_v35, %v2593_v33  ;;  %v2646_v19 = vpack.c.bf16 %v2630_v26, %v2630_v26 }
 0x4f6   : > { %v2645_v17 = vpack.c.bf16 %v2629_v22, %v2629_v22 }
 0x4f7   : > { %v2647_v1 = vpack.c.bf16 %v2631_v45, %v2631_v45  ;;  %v2830_v16 = vunpack.c.l.b16 %v2646_v19 }
 0x4f8   : > { %v2829_v46 = vunpack.c.l.b16 %v2645_v17 }
 0x4f9   : > { %v2831_v61 = vunpack.c.l.b16 %v2647_v1 }
 0x4fa   : > { %v2840_v63 = vpack.c.b16 %v2830_v16, %v2829_v46 }
 0x4fd   : > { %1380 = vadd.xlane.f32.xlu1 %v7609_v10  ;;  %v2230_v10 = vpop.f32.mrf.mxu0 }
 0x4fe   : > { %v2738_v23 = vpop.permute.xlu0 %2737 }
 0x4ff   : > { %v6783_v47 = vsel %vm1178_vm0, %v2686_v9, %v2738_v23  ;;  %v2262_v9 = vmul.f32 %v5159_v49, %v2225_v18 }
 0x501   : > { %v2278_v60 = vpack.c.bf16 %v2262_v9, %v2262_v9 }
 0x503   : > { %v2776_v58 = vunpack.c.l.b16 %v2278_v60 }
 0x504   : > { %2518 = vadd.xlane.f32.xlu0 %v6663_v21  ;;  %v2261_v21 = vmul.f32 %v5161_v4, %v2223_v40 }
 0x505   : > { %1386 = vadd.xlane.f32.xlu1 %v7610_v28 }
 0x506   : > { %v2277_v37 = vpack.c.bf16 %v2261_v21, %v2261_v21 }
 0x507   : > { %2743 = vrot.lane.b32.xlu2 %v2729_v39, %s5323_s2  ;;  %v2628_v39 = vmul.f32 %v5165_v11, %v2585_v44 }
 0x508   : > { %v2775_v7 = vunpack.c.l.b16 %v2277_v37  ;;  %v7612_v37 = vld [vmem:[#allocation17_spill] sm:$0xff] }
 0x509   : > { %v2644_v42 = vpack.c.bf16 %v2628_v39, %v2628_v39 }
 0x50a   : > { %v2785_v34 = vpack.c.b16 %v2776_v58, %v2775_v7 }
 0x50b   : > { %v2828_v62 = vunpack.c.l.b16 %v2644_v42 }
 0x50c   : > { %1378 = vadd.xlane.f32.xlu0 %v7611_v25 }
 0x50d   : > { %v2839_v8 = vpack.c.b16 %v2828_v62, %v2827_v0  ;;  %v5264_v62 = vld [vmem:[#allocation2 + $0x30] sm:$0xff] }
 0x519   : > { %v1377_v60 = vpop.xlane.xlu2 %1376 }
 0x51d   : > { %v1781_v49 = vpop.xlane.xlu1 %1780 }
 0x51e   : > { %2799 = vrot.lane.b32.xlu1 %v2785_v34, %s5321_s0  ;;  %v2891_v34 = vsel %vm2883_vm2, %v6783_v47, %v2794_v20 }
 0x520   : > { %2741 = vrot.lane.b32.xlu0 %v2728_v41, %s5323_s2 }
 0x525   : > { %v2521_v9 = vpop.xlane.xlu1 %2520 }
 0x528   : > { %2851 = vrot.lane.b32.xlu0 %v2839_v8, %s5322_s1 }
 0x529   : > { %v2517_v6 = vpop.xlane.xlu0 %2516 }
 0x52a   : > { %5172 = vrcp.f32 %v2517_v6 }
 0x52b   : > { %5174 = vrcp.f32 %v6762_v56 }
 0x530   : > { %v5173_v41 = vpop.eup %5172  ;;  %2797 = vrot.lane.b32.xlu0 %v2784_v48, %s5321_s0 }
 0x531   : > { %v2632_v13 = vmul.f32 %v5173_v41, %v2595_v52  ;;  %v1779_v57 = vpop.xlane.xlu0 %1778  ;;  %v5175_v38 = vpop.eup %5174 }
 0x532   : > { %v2263_v36 = vmul.f32 %v5175_v38, %v2228_v3  ;;  %v7614_v3 = vld [vmem:[#allocation20_spill] sm:$0xff] }
 0x533   : > { %v2648_v43 = vpack.c.bf16 %v2632_v13, %v2632_v13 }
 0x534   : > { %v2279_v23 = vpack.c.bf16 %v2263_v36, %v2263_v36 }
 0x535   : > { %v2832_v59 = vunpack.c.l.b16 %v2648_v43 }
 0x536   : > { %v2777_v56 = vunpack.c.l.b16 %v2279_v23 }
 0x537   : > { %v2841_v24 = vpack.c.b16 %v2832_v59, %v2831_v61 }
 0x538   : > { %2853 = vrot.lane.b32.xlu0 %v2840_v63, %s5322_s1 }
 0x539   : > { %2855 = vrot.lane.b32.xlu2 %v2841_v24, %s5322_s1  ;;  %v2151_v30 = vpop.xlane.xlu0 %2150 }
 0x53a   : > { %5176 = vrcp.f32 %v2151_v30  ;;  %v7615_v30 = vld [vmem:[#allocation19_spill] sm:$0xff] }
 0x53b   : > { %5178 = vrcp.f32 %v1779_v57 }
 0x53c   : > { %5180 = vrcp.f32 %v1781_v49 }
 0x53d   : > { %v2848_v31 = vpop.permute.xlu1 %2847  ;;  %5182 = vrcp.f32 %v2521_v9  ;;  %v7617_v9 = vld [vmem:[#allocation24_spill] sm:$0xff] }
 0x53e   : > { %v2908_v21 = vsel %vm2900_vm3, %v6735_v12, %v2848_v31  ;;  %v2850_v12 = vpop.permute.xlu2 %2849 }
 0x53f   : > { %v2911_v14 = vsel %vm2900_vm3, %v2891_v34, %v2850_v12 }
 0x540   : > { %v5177_v48 = vpop.eup %5176 }
 0x541   : > { %v2264_v40 = vmul.f32 %v5177_v48, %v2230_v10  ;;  %v5179_v50 = vpop.eup %5178 }
 0x542   : > { %v5181_v58 = vpop.eup %5180  ;;  %v1893_v11 = vmul.f32 %v5179_v50, %v6668_v15  ;;  %v2598_v15 = vpop.f32.mrf.mxu2 }
 0x543   : > { %v2280_v28 = vpack.c.bf16 %v2264_v40, %v2264_v40  ;;  %v1894_v2 = vmul.f32 %v5181_v58, %v6682_v32  ;;  %v5183_v55 = vpop.eup %5182  ;;  %v5265_v58 = vld [vmem:[#allocation2] sm:$0xff] }
 0x544   : > { %v1909_v29 = vpack.c.bf16 %v1893_v11, %v1893_v11 }
 0x545   : > { %v2778_v44 = vunpack.c.l.b16 %v2280_v28  ;;  %v1910_v42 = vpack.c.bf16 %v1894_v2, %v1894_v2  ;;  %v2740_v13 = vpop.permute.xlu1 %2739 }
 0x546   : > { %v2721_v0 = vunpack.c.l.b16 %v1909_v29  ;;  %v2796_v57 = vpop.permute.xlu2 %2795  ;;  %v2873_v16 = vsel %vm1178_vm0, %v2687_v51, %v2740_v13 }
 0x547   : > { %v2786_v25 = vpack.c.b16 %v2778_v44, %v2777_v56  ;;  %v2722_v8 = vunpack.c.l.b16 %v1910_v42  ;;  %v2893_v59 = vsel %vm2883_vm2, %v2873_v16, %v2796_v57  ;;  %v7616_v44 = vld [vmem:[#allocation21_spill] sm:$0xff] }
 0x549   : > { %2801 = vrot.lane.b32.xlu2 %v2786_v25, %s5321_s0  ;;  %v2730_v32 = vpack.c.b16 %v2722_v8, %v2721_v0 }
 0x54a   : > { %v2600_v47 = vpop.f32.mrf.mxu2 }
 0x54b   : > { %v2634_v6 = vmul.f32 %v5183_v55, %v2600_v47  ;;  %v5266_v47 = vld [vmem:[#allocation2 + $0x58] sm:$0xff] }
 0x54c   : > { %v2846_v4 = vpop.permute.xlu0 %2845 }
 0x54d   : > { %v2905_v18 = vsel %vm2900_vm3, %v6720_v5, %v2846_v4  ;;  %v6819_v5 = vld [vmem:[%s7613_s28] ss:$0 sm:$0xff]  ;;  %v2650_v26 = vpack.c.bf16 %v2634_v6, %v2634_v6 }
 0x54e   : > { %3006 = vmatmul.bf16.gmra.mxu3 %v2905_v18 }
 0x54f   : > { %v2834_v19 = vunpack.c.l.b16 %v2650_v26 }
 0x55e   : > { %3011 = vmatmul.bf16.gmra.mxu3 %v2908_v21 }
 0x562   : > { %1384 = vadd.xlane.f32.xlu0 %v7612_v37  ;;  %v1383_v48 = vpop.xlane.xlu2 %1382 }
 0x565   : > { %v3002_v7 = vpop.f32.mrf.mxu3 }
 0x566   : > { %v3003_v39 = vadd.f32 %v6819_v5, %v3002_v7 }
 0x568   : > { %v6826_v33 = vadd.f32 %v5264_v62, %v3003_v39  ;;  %v5325_v62 = vmov 128.0  }
 0x56a   : > { %v2744_v2 = vpop.permute.xlu2 %2743 }
 0x56d   : > { %v3004_v56 = vpop.f32.mrf.mxu3 }
 0x56e   : > { %3016 = vmatmul.bf16.gmra.mxu3 %v2911_v14  ;;  %v3005_v21 = vadd.f32 %v6819_v5, %v3004_v56 }
 0x570   : > { %v1381_v36 = vpop.xlane.xlu1 %1380  ;;  %v6845_v11 = vadd.f32 %v5265_v58, %v3005_v21  ;;  %v5271_v58 = vld [vmem:[#allocation2 + $0x48] sm:$0xff] }
 0x572   : > { %3060 = vadd.xlane.f32.xlu2 %v6826_v33 }
 0x576   : > { %2745 = vrot.lane.b32.xlu0 %v2730_v32, %s5323_s2 }
 0x577   : > { %v2519_v27 = vpop.xlane.xlu0 %2518 }
 0x578   : > { %5184 = vrcp.f32 %v2519_v27  ;;  %v1387_v7 = vpop.xlane.xlu1 %1386 }
 0x57e   : > { %v5185_v35 = vpop.eup %5184 }
 0x57f   : > { %v2633_v22 = vmul.f32 %v5185_v35, %v2598_v15  ;;  %v1379_v17 = vpop.xlane.xlu0 %1378 }
 0x580   : > { %5186 = vrcp.f32 %v1379_v17 }
 0x581   : > { %v2649_v45 = vpack.c.bf16 %v2633_v22, %v2633_v22  ;;  %5188 = vrcp.f32 %v1377_v60 }
 0x582   : > { %5190 = vrcp.f32 %v1381_v36 }
 0x583   : > { %v2833_v41 = vunpack.c.l.b16 %v2649_v45  ;;  %5192 = vrcp.f32 %v1383_v48  ;;  %v7619_v48 = vld [vmem:[#allocation27_spill] sm:$0xff] }
 0x584   : > { %5194 = vrcp.f32 %v5325_v62 }
 0x585   : > { %v2842_v52 = vpack.c.b16 %v2834_v19, %v2833_v41  ;;  %v5267_v41 = vld [vmem:[#allocation2 + $0x18] sm:$0xff] }
 0x586   : > { %v5187_v43 = vpop.eup %5186 }
 0x587   : > { %2857 = vrot.lane.b32.xlu1 %v2842_v52, %s5322_s1  ;;  %v5189_v46 = vpop.eup %5188  ;;  %v1520_v63 = vmul.f32 %v5187_v43, %v7614_v3  ;;  %v5268_v43 = vld [vmem:[#allocation2 + $0x50] sm:$0xff] }
 0x588   : > { %v1519_v38 = vmul.f32 %v5189_v46, %v7615_v30  ;;  %v5191_v23 = vpop.eup %5190 }
 0x589   : > { %v1536_v10 = vpack.c.bf16 %v1520_v63, %v1520_v63  ;;  %v5193_v28 = vpop.eup %5192  ;;  %v1521_v25 = vmul.f32 %v5191_v23, %v7616_v44 }
 0x58a   : > { %v1535_v20 = vpack.c.bf16 %v1519_v38, %v1519_v38  ;;  %v1522_v31 = vmul.f32 %v5193_v28, %v7617_v9  ;;  %v5195_v8 = vpop.eup %5194 }
 0x58b   : > { %v2678_v53 = vunpack.c.l.b16 %v1536_v10  ;;  %v1537_v37 = vpack.c.bf16 %v1521_v25, %v1521_v25  ;;  %v3093_v55 = vmul.f32 128.0, %v5195_v8  ;;  %vm3097_vm4 = vweird.f32 %v5195_v8 }
 0x58c   : > { %v2677_v51 = vunpack.c.l.b16 %v1535_v20  ;;  %v1538_v50 = vpack.c.bf16 %v1522_v31, %v1522_v31 }
 0x58d   : > { %v2679_v12 = vunpack.c.l.b16 %v1537_v37  ;;  %v3094_v35 = vsub.f32 1.0, %v3093_v55 }
 0x58e   : > { %v2688_v40 = vpack.c.b16 %v2678_v53, %v2677_v51  ;;  %v2680_v29 = vunpack.c.l.b16 %v1538_v50  ;;  %v5269_v51 = vld [vmem:[#allocation2 + $0x68] sm:$0xff] }
 0x58f   : > { %v3095_v45 = vmul.f32 %v5195_v8, %v3094_v35 }
 0x590   : > { %v2689_v39 = vpack.c.b16 %v2680_v29, %v2679_v12  ;;  %v2800_v34 = vpop.permute.xlu1 %2799  ;;  %v5272_v29 = vld [vmem:[#allocation2 + $0x40] sm:$0xff] }
 0x592   : > { %v2742_v1 = vpop.permute.xlu0 %2741  ;;  %v2879_v42 = vsel %vm1178_vm0, %v2689_v39, %v2744_v2 }
 0x593   : > { %v2876_v49 = vsel %vm1178_vm0, %v2688_v40, %v2742_v1  ;;  %v2856_v14 = vpop.permute.xlu2 %2855  ;;  %v2897_v15 = vsel %vm2883_vm2, %v2879_v42, %v2800_v34  ;;  %v3096_v1 = vadd.f32 %v5195_v8, %v3095_v45 }
 0x594   : > { %v2920_v0 = vsel %vm2900_vm3, %v2897_v15, %v2856_v14 }
 0x595   : > { %v6860_v16 = vsel %vm3097_vm4, %v5195_v8, %v3096_v1 }
 0x59a   : > { %v2852_v61 = vpop.permute.xlu0 %2851 }
 0x59b   : > { %v2914_v24 = vsel %vm2900_vm3, %v2893_v59, %v2852_v61 }
 0x59c   : > { %3021 = vmatmul.bf16.gmra.mxu3 %v2914_v24  ;;  %v7618_v24 = vld [vmem:[#allocation25_spill] sm:$0xff] }
 0x5a2   : > { %v2798_v54 = vpop.permute.xlu0 %2797 }
 0x5a3   : > { %v2895_v4 = vsel %vm2883_vm2, %v2876_v49, %v2798_v54  ;;  %v2802_v17 = vpop.permute.xlu2 %2801 }
 0x5aa   : > { %v2854_v18 = vpop.permute.xlu0 %2853 }
 0x5ab   : > { %v2917_v60 = vsel %vm2900_vm3, %v2895_v4, %v2854_v18  ;;  %v5270_v4 = vld [vmem:[#allocation2 + $0x8] sm:$0xff] }
 0x5ac   : > { %3026 = vmatmul.bf16.gmra.mxu3 %v2917_v60 }
 0x5b1   : > { %3062 = vadd.xlane.f32.xlu1 %v6845_v11 }
 0x5bc   : > { %3031 = vmatmul.bf16.gmra.mxu3 %v2920_v0 }
 0x5d1   : > { %v3007_v32 = vpop.f32.mrf.mxu3 }
 0x5d2   : > { %v3008_v27 = vadd.f32 %v6819_v5, %v3007_v32 }
 0x5d4   : > { %v6852_v6 = vadd.f32 %v5266_v47, %v3008_v27 }
 0x5d5   : > { %v1385_v19 = vpop.xlane.xlu0 %1384 }
 0x5d6   : > { %3064 = vadd.xlane.f32.xlu0 %v6852_v6  ;;  %5196 = vrcp.f32 %v1385_v19 }
 0x5d7   : > { %5198 = vrcp.f32 %v1387_v7 }
 0x5d9   : > { %v3009_v26 = vpop.f32.mrf.mxu3 }
 0x5da   : > { %v3010_v22 = vadd.f32 %v6819_v5, %v3009_v26 }
 0x5dc   : > { %v6856_v52 = vadd.f32 %v5267_v41, %v3010_v22  ;;  %v5197_v61 = vpop.eup %5196  ;;  %v5273_v22 = vld [vmem:[#allocation2 + $0x20] sm:$0xff] }
 0x5dd   : > { %v5199_v63 = vpop.eup %5198  ;;  %v1523_v30 = vmul.f32 %v5197_v61, %v7618_v24 }
 0x5de   : > { %3066 = vadd.xlane.f32.xlu2 %v6856_v52  ;;  %v1524_v10 = vmul.f32 %v5199_v63, %v7619_v48 }
 0x5df   : > { %v1539_v53 = vpack.c.bf16 %v1523_v30, %v1523_v30  ;;  %v5275_v30 = vld [vmem:[#allocation2 + $0x38] sm:$0xff] }
 0x5e0   : > { %v1540_v40 = vpack.c.bf16 %v1524_v10, %v1524_v10 }
 0x5e1   : > { %v3012_v13 = vpop.f32.mrf.mxu3  ;;  %v2681_v28 = vunpack.c.l.b16 %v1539_v53 }
 0x5e2   : > { %v3013_v57 = vadd.f32 %v6819_v5, %v3012_v13  ;;  %v2682_v44 = vunpack.c.l.b16 %v1540_v40 }
 0x5e4   : > { %v6862_v46 = vadd.f32 %v5268_v43, %v3013_v57  ;;  %v2690_v49 = vpack.c.b16 %v2682_v44, %v2681_v28 }
 0x5e5   : > { %v3061_v59 = vpop.xlane.xlu2 %3060 }
 0x5e6   : > { %v3099_v3 = vmul.f32 %v6860_v16, %v3061_v59  ;;  %3068 = vadd.xlane.f32.xlu1 %v6862_v46 }
 0x5e8   : > { %v6868_v38 = vsub.f32 %v6826_v33, %v3099_v3  ;;  %v2746_v25 = vpop.permute.xlu0 %2745 }
 0x5e9   : > { %v3014_v36 = vpop.f32.mrf.mxu3  ;;  %v2882_v9 = vsel %vm1178_vm0, %v2690_v49, %v2746_v25  ;;  %v5277_v49 = vld [vmem:[#allocation2 + $0x70] sm:$0xff] }
 0x5ea   : > { %v3015_v20 = vadd.f32 %v6819_v5, %v3014_v36  ;;  %v3131_v54 = vmul.f32 %v6868_v38, %v6868_v38  ;;  %v2899_v60 = vsel %vm2883_vm2, %v2882_v9, %v2802_v17  ;;  %v4739_v9 = vld [vmem:[%s5493_s29 + $0x70] sm:$0xf] }
 0x5ec   : > { %v3047_v23 = vadd.f32 %v5269_v51, %v3015_v20  ;;  %3147 = vadd.xlane.f32.xlu2 %v3131_v54  ;;  %v5276_v51 = vld [vmem:[#allocation2 + $0x60] sm:$0xff] }
 0x5ee   : > { %3070 = vadd.xlane.f32.xlu0 %v3047_v23 }
 0x5f1   : > { %v3017_v56 = vpop.f32.mrf.mxu3 }
 0x5f2   : > { %v3018_v33 = vadd.f32 %v6819_v5, %v3017_v56 }
 0x5f4   : > { %v3048_v18 = vadd.f32 %v5270_v4, %v3018_v33 }
 0x5f6   : > { %3072 = vadd.xlane.f32.xlu0 %v3048_v18 }
 0x5f9   : > { %v3019_v31 = vpop.f32.mrf.mxu3  ;;  %v2858_v21 = vpop.permute.xlu1 %2857 }
 0x5fa   : > { %v3020_v37 = vadd.f32 %v6819_v5, %v3019_v31  ;;  %v2923_v50 = vsel %vm2900_vm3, %v2899_v60, %v2858_v21  ;;  %v4863_v31 = vld [vmem:[%s5493_s29 + $0x74] sm:$0xf0]  ;;  %v4862_v21 = vld [vmem:[%s5493_s29 + $0x74] sm:$0xf] }
 0x5fb   : > { %3036 = vmatmul.bf16.gmra.mxu3 %v2923_v50  ;;  %v4740_v60 = vor.u32 %v4863_v31, %v4739_v9 }
 0x5fc   : > { %v3049_v7 = vadd.f32 %v5271_v58, %v3020_v37  ;;  %v4741_v37 = vld [vmem:[%s5493_s29 + $0x78] sm:$0xf0] }
 0x5fd   : > { %v4744_v50 = vor.u32 %v4862_v21, %v4741_v37  ;;  %3535 = vmatpush.bf16.msrb.mxu0 %v4740_v60  ;;  %v4683_v60 = vld [vmem:[%s5493_s29] sm:$0xf]  ;;  %v4849_v37 = vld [vmem:[%s5493_s29 + $0x4] sm:$0xf0] }
 0x5fe   : > { %3074 = vadd.xlane.f32.xlu2 %v3049_v7 }
 0x5ff   : > { %3584 = vmatpush.bf16.msrb.mxu1 %v4744_v50  ;;  %v4848_v50 = vld [vmem:[%s5493_s29 + $0x4] sm:$0xf] }
 0x61f   : > { %v3022_v2 = vpop.f32.mrf.mxu3 }
 0x620   : > { %v3023_v12 = vadd.f32 %v6819_v5, %v3022_v2  ;;  %v5278_v2 = vld [vmem:[#allocation2 + $0x78] sm:$0xff] }
 0x622   : > { %v6880_v39 = vadd.f32 %v5272_v29, %v3023_v12  ;;  %v4731_v29 = vld [vmem:[%s5493_s29 + $0x60] sm:$0xf] }
 0x624   : > { %v3063_v34 = vpop.xlane.xlu1 %3062  ;;  %3076 = vadd.xlane.f32.xlu2 %v6880_v39 }
 0x625   : > { %v3100_v14 = vmul.f32 %v6860_v16, %v3063_v34  ;;  %v4861_v34 = vld [vmem:[%s5493_s29 + $0x64] sm:$0xf0] }
 0x627   : > { %v6885_v42 = vsub.f32 %v6845_v11, %v3100_v14  ;;  %v3024_v0 = vpop.f32.mrf.mxu3  ;;  %v4860_v14 = vld [vmem:[%s5493_s29 + $0x64] sm:$0xf] }
 0x628   : > { %v3025_v11 = vadd.f32 %v6819_v5, %v3024_v0  ;;  %v4733_v0 = vld [vmem:[%s5493_s29 + $0x68] sm:$0xf0] }
 0x629   : > { %v3132_v15 = vmul.f32 %v6885_v42, %v6885_v42 }
 0x62a   : > { %v6900_v45 = vadd.f32 %v5273_v22, %v3025_v11  ;;  %v4725_v11 = vld [vmem:[%s5493_s29 + $0x58] sm:$0xf0] }
 0x62b   : > { %3149 = vadd.xlane.f32.xlu1 %v3132_v15  ;;  %v4732_v15 = vor.u32 %v4861_v34, %v4731_v29  ;;  %v4685_v29 = vld [vmem:[%s5493_s29 + $0x8] sm:$0xf0] }
 0x62c   : > { %v4688_v34 = vor.u32 %v4848_v50, %v4685_v29 }
 0x62d   : > { %3536 = vmatpush.bf16.msrb.mxu0 %v4732_v15 }
 0x62f   : > { %v3027_v55 = vpop.f32.mrf.mxu3 }
 0x630   : > { %v3028_v41 = vadd.f32 %v6819_v5, %v3027_v55  ;;  %v4858_v55 = vld [vmem:[%s5493_s29 + $0x54] sm:$0xf] }
 0x637   : > { %v3029_v1 = vpop.f32.mrf.mxu3 }
 0x638   : > { %v3030_v59 = vadd.f32 %v6819_v5, %v3029_v1  ;;  %v4717_v1 = vld [vmem:[%s5493_s29 + $0x48] sm:$0xf0] }
 0x63f   : > { %v3032_v24 = vpop.f32.mrf.mxu3 }
 0x640   : > { %v3033_v20 = vadd.f32 %v6819_v5, %v3032_v24 }
 0x647   : > { %v3034_v28 = vpop.f32.mrf.mxu3 }
 0x648   : > { %v3035_v44 = vadd.f32 %v6819_v5, %v3034_v28  ;;  %v4691_v28 = vld [vmem:[%s5493_s29 + $0x10] sm:$0xf] }
 0x649   : > { %v3065_v62 = vpop.xlane.xlu0 %3064 }
 0x64a   : > { %v3101_v8 = vmul.f32 %v6860_v16, %v3065_v62  ;;  %v6937_v4 = vadd.f32 %v5277_v49, %v3035_v44  ;;  %v4736_v62 = vor.u32 %v4860_v14, %v4733_v0  ;;  %v4850_v44 = vld [vmem:[%s5493_s29 + $0x14] sm:$0xf]  ;;  %v4693_v49 = vld [vmem:[%s5493_s29 + $0x18] sm:$0xf0] }
 0x64b   : > { %v4696_v31 = vor.u32 %v4850_v44, %v4693_v49 }
 0x64c   : > { %v6891_v32 = vsub.f32 %v6852_v6, %v3101_v8  ;;  %3585 = vmatpush.bf16.msrb.mxu1 %v4736_v62  ;;  %v4723_v8 = vld [vmem:[%s5493_s29 + $0x50] sm:$0xf] }
 0x64e   : > { %v3133_v27 = vmul.f32 %v6891_v32, %v6891_v32 }
 0x650   : > { %3151 = vadd.xlane.f32.xlu1 %v3133_v27  ;;  %v4859_v27 = vld [vmem:[%s5493_s29 + $0x54] sm:$0xf0] }
 0x651   : > { %v3067_v47 = vpop.xlane.xlu2 %3066 }
 0x652   : > { %v3102_v35 = vmul.f32 %v6860_v16, %v3067_v47  ;;  %v4724_v47 = vor.u32 %v4859_v27, %v4723_v8 }
 0x654   : > { %v6898_v26 = vsub.f32 %v6856_v52, %v3102_v35  ;;  %v5274_v52 = vld [vmem:[#allocation2 + $0x10] sm:$0xff]  ;;  %v4728_v35 = vor.u32 %v4858_v55, %v4725_v11  ;;  %3537 = vmatpush.bf16.msrb.mxu0 %v4724_v47 }
 0x655   : > { %v6910_v57 = vadd.f32 %v5274_v52, %v3028_v41  ;;  %v4856_v41 = vld [vmem:[%s5493_s29 + $0x44] sm:$0xf] }
 0x656   : > { %v3134_v6 = vmul.f32 %v6898_v26, %v6898_v26  ;;  %3586 = vmatpush.bf16.msrb.mxu1 %v4728_v35  ;;  %v4720_v52 = vor.u32 %v4856_v41, %v4717_v1 }
 0x658   : > { %3153 = vadd.xlane.f32.xlu0 %v3134_v6  ;;  %3078 = vadd.xlane.f32.xlu1 %v6900_v45  ;;  %v4715_v6 = vld [vmem:[%s5493_s29 + $0x40] sm:$0xf] }
 0x659   : > { %v3069_v19 = vpop.xlane.xlu1 %3068 }
 0x65a   : > { %v3103_v17 = vmul.f32 %v6860_v16, %v3069_v19  ;;  %v4857_v19 = vld [vmem:[%s5493_s29 + $0x44] sm:$0xf0]  ;;  %3587 = vmatpush.bf16.msrb.mxu1 %v4720_v52  ;;  %v6995_v52 = vld [vmem:[%s7620_s13] ss:$0 sm:$0xff] }
 0x65c   : > { %v6908_v13 = vsub.f32 %v6862_v46, %v3103_v17  ;;  %v6919_v46 = vadd.f32 %v5275_v30, %v3030_v59  ;;  %v4716_v17 = vor.u32 %v4857_v19, %v4715_v6  ;;  %v4855_v59 = vld [vmem:[%s5493_s29 + $0x34] sm:$0xf0]  ;;  %v4709_v30 = vld [vmem:[%s5493_s29 + $0x38] sm:$0xf0] }
 0x65e   : > { %v3135_v43 = vmul.f32 %v6908_v13, %v6908_v13  ;;  %3538 = vmatpush.bf16.msrb.mxu0 %v4716_v17 }
 0x65f   : > { %v3148_v48 = vpop.xlane.xlu2 %3147 }
 0x660   : > { %3155 = vadd.xlane.f32.xlu0 %v3135_v43  ;;  %3080 = vadd.xlane.f32.xlu1 %v6910_v57  ;;  %v3179_v22 = vmul.f32 %v3148_v48, %v6860_v16  ;;  %v4699_v48 = vld [vmem:[%s5493_s29 + $0x20] sm:$0xf] }
 0x661   : > { %v3071_v61 = vpop.xlane.xlu0 %3070 }
 0x662   : > { %v3104_v3 = vmul.f32 %v6860_v16, %v3071_v61  ;;  %v3195_v43 = vadd.f32 1e-05, %v3179_v22  ;;  %v4707_v61 = vld [vmem:[%s5493_s29 + $0x30] sm:$0xf] }
 0x663   : > { %v4708_v24 = vor.u32 %v4855_v59, %v4707_v61 }
 0x664   : > { %v6917_v63 = vsub.f32 %v3047_v23, %v3104_v3  ;;  %v6928_v23 = vadd.f32 %v5276_v51, %v3033_v20  ;;  %v4854_v3 = vld [vmem:[%s5493_s29 + $0x34] sm:$0xf]  ;;  %5200 = vrsqrt.f32 %v3195_v43  ;;  %v4852_v20 = vld [vmem:[%s5493_s29 + $0x24] sm:$0xf]  ;;  %v4701_v51 = vld [vmem:[%s5493_s29 + $0x28] sm:$0xf0]  ;;  %vm3217_vm6 = vweird.f32 %v3195_v43 }
 0x665   : > { %3539 = vmatpush.bf16.msrb.mxu0 %v4708_v24 }
 0x666   : > { %v3136_v36 = vmul.f32 %v6917_v63, %v6917_v63 }
 0x668   : > { %3082 = vadd.xlane.f32.xlu0 %v6919_v46  ;;  %3157 = vadd.xlane.f32.xlu2 %v3136_v36  ;;  %v4712_v36 = vor.u32 %v4854_v3, %v4709_v30 }
 0x669   : > { %v3073_v10 = vpop.xlane.xlu0 %3072 }
 0x66a   : > { %v3105_v54 = vmul.f32 %v6860_v16, %v3073_v10  ;;  %3588 = vmatpush.bf16.msrb.mxu1 %v4712_v36  ;;  %v4853_v10 = vld [vmem:[%s5493_s29 + $0x24] sm:$0xf0] }
 0x66c   : > { %v6926_v53 = vsub.f32 %v3048_v18, %v3105_v54  ;;  %v4700_v54 = vor.u32 %v4853_v10, %v4699_v48 }
 0x66e   : > { %v3137_v40 = vmul.f32 %v6926_v53, %v6926_v53  ;;  %3540 = vmatpush.bf16.msrb.mxu0 %v4700_v54 }
 0x670   : > { %3084 = vadd.xlane.f32.xlu0 %v6928_v23  ;;  %3159 = vadd.xlane.f32.xlu2 %v3137_v40  ;;  %v4704_v40 = vor.u32 %v4852_v20, %v4701_v51 }
 0x671   : > { %v3075_v56 = vpop.xlane.xlu2 %3074 }
 0x672   : > { %v3106_v33 = vmul.f32 %v6860_v16, %v3075_v56  ;;  %3589 = vmatpush.bf16.msrb.mxu1 %v4704_v40  ;;  %v4851_v56 = vld [vmem:[%s5493_s29 + $0x14] sm:$0xf0] }
 0x674   : > { %v6935_v25 = vsub.f32 %v3049_v7, %v3106_v33  ;;  %v4692_v33 = vor.u32 %v4851_v56, %v4691_v28 }
 0x676   : > { %v3138_v18 = vmul.f32 %v6935_v25, %v6935_v25  ;;  %3541 = vmatpush.bf16.msrb.mxu0 %v4692_v33  ;;  %3590 = vmatpush.bf16.msrb.mxu1 %v4696_v31 }
 0x678   : > { %3161 = vadd.xlane.f32.xlu1 %v3138_v18  ;;  %3086 = vadd.xlane.f32.xlu2 %v6937_v4  ;;  %v5201_v18 = vpop.eup %5200 }
 0x679   : > { %vm3218_vm5 = vweird.f32 %v5201_v18 }
 0x67a   : > { %3591 = vmatpush.bf16.msrb.mxu1 %v4688_v34  ;;  %vm3219_vm7 = vmor %vm3217_vm6, %vm3218_vm5 }
 0x67e   : > { %v3037_v58 = vpop.f32.mrf.mxu3 }
 0x67f   : > { %v3038_v7 = vadd.f32 %v6819_v5, %v3037_v58  ;;  %v3212_v58 = vmul.f32 %v5201_v18, %v3195_v43  ;;  %v7003_v43 = vld [vmem:[%s7621_s16] ss:$0 sm:$0xff] }
 0x681   : > { %v6947_v12 = vadd.f32 %v5278_v2, %v3038_v7  ;;  %v4684_v2 = vor.u32 %v4849_v37, %v4683_v60  ;;  %v3213_v0 = vmul.f32 %v5201_v18, %v3212_v58 }
 0x683   : > { %3088 = vadd.xlane.f32.xlu2 %v6947_v12  ;;  %3542 = vmatpush.bf16.msrb.mxu0 %v4684_v2  ;;  %v3214_v47 = vmul.f32 0.5, %v3213_v0 }
 0x685   : > { %v3215_v35 = vsub.f32 1.5, %v3214_v47 }
 0x686   : > { %v3039_v15 = vpop.f32.mrf.mxu3 }
 0x687   : > { %v3040_v27 = vadd.f32 %v6819_v5, %v3039_v15  ;;  %v3216_v6 = vmul.f32 %v5201_v18, %v3215_v35 }
 0x689   : > { %v3220_v17 = vsel %vm3219_vm7, %v5201_v18, %v3216_v6 }
 0x68a   : > { %v3371_v61 = vmul.f32 %v3220_v17, %v6868_v38 }
 0x68c   : > { %v3390_v24 = vmul.f32 %v6995_v52, %v3371_v61 }
 0x68e   : > { %v7009_v48 = vadd.f32 %v7003_v43, %v3390_v24 }
 0x697   : > { %v3077_v9 = vpop.xlane.xlu2 %3076 }
 0x698   : > { %v3107_v21 = vmul.f32 %v6860_v16, %v3077_v9 }
 0x69a   : > { %v6980_v7 = vsub.f32 %v6880_v39, %v3107_v21  ;;  %v5279_v39 = vld [vmem:[#allocation2 + $0x28] sm:$0xff] }
 0x69b   : > { %v6987_v11 = vadd.f32 %v5279_v39, %v3040_v27 }
 0x69c   : > { %v3139_v14 = vmul.f32 %v6980_v7, %v6980_v7 }
 0x69e   : > { %v3150_v62 = vpop.xlane.xlu1 %3149  ;;  %3163 = vadd.xlane.f32.xlu1 %v3139_v14 }
 0x69f   : > { %v3180_v8 = vmul.f32 %v3150_v62, %v6860_v16 }
 0x6a1   : > { %v3196_v55 = vadd.f32 1e-05, %v3180_v8 }
 0x6a3   : > { %5202 = vrsqrt.f32 %v3196_v55  ;;  %vm3227_vm9 = vweird.f32 %v3196_v55 }
 0x6a6   : > { %3090 = vadd.xlane.f32.xlu1 %v6987_v11 }
 0x6a9   : > { %v5203_v22 = vpop.eup %5202 }
 0x6aa   : > { %v3222_v19 = vmul.f32 %v5203_v22, %v3196_v55  ;;  %vm3228_vm8 = vweird.f32 %v5203_v22 }
 0x6ab   : > { %vm3229_vm10 = vmor %vm3227_vm9, %vm3228_vm8 }
 0x6ac   : > { %v3223_v41 = vmul.f32 %v5203_v22, %v3222_v19 }
 0x6ae   : > { %v3224_v5 = vmul.f32 0.5, %v3223_v41 }
 0x6b0   : > { %v3225_v1 = vsub.f32 1.5, %v3224_v5 }
 0x6b2   : > { %v3226_v59 = vmul.f32 %v5203_v22, %v3225_v1 }
 0x6b4   : > { %v3230_v3 = vsel %vm3229_vm10, %v5203_v22, %v3226_v59 }
 0x6b5   : > { %v3372_v30 = vmul.f32 %v3230_v3, %v6885_v42 }
 0x6b7   : > { %v3391_v36 = vmul.f32 %v6995_v52, %v3372_v30 }
 0x6b9   : > { %v7012_v38 = vadd.f32 %v7003_v43, %v3391_v36 }
 0x6bb   : > { %v3425_v10 = vpack.c.bf16 %v7012_v38, %v7009_v48 }
 0x6bd   : > { %3543 = vmatmul.bf16.vlgmr.msrb.gmra.mxu0 %v3425_v10  ;;  %3592 = vmatmul.bf16.vlgmr.msrb.gmra.mxu1 %v3425_v10 }
 0x6c3   : > { %v3152_v20 = vpop.xlane.xlu1 %3151 }
 0x6c4   : > { %v3181_v54 = vmul.f32 %v3152_v20, %v6860_v16 }
 0x6c6   : > { %v3197_v51 = vadd.f32 1e-05, %v3181_v54 }
 0x6c8   : > { %5204 = vrsqrt.f32 %v3197_v51  ;;  %vm3237_vm12 = vweird.f32 %v3197_v51 }
 0x6cb   : > { %v3079_v40 = vpop.xlane.xlu1 %3078  ;;  %v3154_v42 = vpop.xlane.xlu0 %3153 }
 0x6cc   : > { %v3108_v28 = vmul.f32 %v6860_v16, %v3079_v40  ;;  %v3182_v56 = vmul.f32 %v3154_v42, %v6860_v16 }
 0x6ce   : > { %v5205_v44 = vpop.eup %5204  ;;  %v7020_v33 = vsub.f32 %v6900_v45, %v3108_v28  ;;  %v3198_v49 = vadd.f32 1e-05, %v3182_v56 }
 0x6cf   : > { %v3232_v18 = vmul.f32 %v5205_v44, %v3197_v51  ;;  %vm3238_vm11 = vweird.f32 %v5205_v44 }
 0x6d0   : > { %5206 = vrsqrt.f32 %v3198_v49  ;;  %v3140_v9 = vmul.f32 %v7020_v33, %v7020_v33  ;;  %vm3239_vm13 = vmor %vm3237_vm12, %vm3238_vm11  ;;  %vm3247_vm15 = vweird.f32 %v3198_v49 }
 0x6d1   : > { %v3233_v31 = vmul.f32 %v5205_v44, %v3232_v18 }
 0x6d2   : > { %3165 = vadd.xlane.f32.xlu0 %v3140_v9 }
 0x6d3   : > { %v3234_v21 = vmul.f32 0.5, %v3233_v31  ;;  %v3081_v60 = vpop.xlane.xlu1 %3080  ;;  %v3156_v37 = vpop.xlane.xlu0 %3155 }
 0x6d4   : > { %v3109_v50 = vmul.f32 %v6860_v16, %v3081_v60  ;;  %v3183_v58 = vmul.f32 %v3156_v37, %v6860_v16 }
 0x6d5   : > { %v3235_v2 = vsub.f32 1.5, %v3234_v21 }
 0x6d6   : > { %v5207_v29 = vpop.eup %5206  ;;  %v7027_v45 = vsub.f32 %v6910_v57, %v3109_v50  ;;  %v3199_v34 = vadd.f32 1e-05, %v3183_v58 }
 0x6d7   : > { %v3236_v14 = vmul.f32 %v5205_v44, %v3235_v2  ;;  %v3242_v15 = vmul.f32 %v5207_v29, %v3198_v49  ;;  %vm3248_vm14 = vweird.f32 %v5207_v29 }
 0x6d8   : > { %5208 = vrsqrt.f32 %v3199_v34  ;;  %v3141_v0 = vmul.f32 %v7027_v45, %v7027_v45  ;;  %vm3249_vm0 = vmor %vm3247_vm15, %vm3248_vm14  ;;  %vm3257_vm2 = vweird.f32 %v3199_v34 }
 0x6d9   : > { %v3243_v62 = vmul.f32 %v5207_v29, %v3242_v15  ;;  %v3240_v8 = vsel %vm3239_vm13, %v5205_v44, %v3236_v14 }
 0x6da   : > { %3167 = vadd.xlane.f32.xlu0 %v3141_v0  ;;  %v3373_v6 = vmul.f32 %v3240_v8, %v6891_v32 }
 0x6db   : > { %v3244_v27 = vmul.f32 0.5, %v3243_v62  ;;  %v3158_v55 = vpop.xlane.xlu2 %3157  ;;  %v3083_v47 = vpop.xlane.xlu0 %3082 }
 0x6dc   : > { %v3184_v39 = vmul.f32 %v3158_v55, %v6860_v16  ;;  %v3110_v57 = vmul.f32 %v6860_v16, %v3083_v47  ;;  %v3392_v24 = vmul.f32 %v6995_v52, %v3373_v6 }
 0x6dd   : > { %v3245_v35 = vsub.f32 1.5, %v3244_v27 }
 0x6de   : > { %v5209_v22 = vpop.eup %5208  ;;  %v3200_v19 = vadd.f32 1e-05, %v3184_v39  ;;  %v7035_v41 = vsub.f32 %v6919_v46, %v3110_v57 }
 0x6df   : > { %v3246_v17 = vmul.f32 %v5207_v29, %v3245_v35  ;;  %v3252_v5 = vmul.f32 %v5209_v22, %v3199_v34  ;;  %vm3258_vm1 = vweird.f32 %v5209_v22 }
 0x6e0   : > { %5210 = vrsqrt.f32 %v3200_v19  ;;  %v3142_v1 = vmul.f32 %v7035_v41, %v7035_v41  ;;  %vm3259_vm3 = vmor %vm3257_vm2, %vm3258_vm1  ;;  %vm3267_vm5 = vweird.f32 %v3200_v19 }
 0x6e1   : > { %v3250_v61 = vsel %vm3249_vm0, %v5207_v29, %v3246_v17  ;;  %v3253_v59 = vmul.f32 %v5209_v22, %v3252_v5 }
 0x6e2   : > { %v3374_v3 = vmul.f32 %v3250_v61, %v6898_v26  ;;  %3169 = vadd.xlane.f32.xlu2 %v3142_v1  ;;  %v7048_v26 = vadd.f32 %v7003_v43, %v3392_v24 }
 0x6e3   : > { %v3254_v32 = vmul.f32 0.5, %v3253_v59  ;;  %v3160_v30 = vpop.xlane.xlu2 %3159  ;;  %v3085_v36 = vpop.xlane.xlu0 %3084 }
 0x6e4   : > { %v3185_v46 = vmul.f32 %v3160_v30, %v6860_v16  ;;  %v3111_v10 = vmul.f32 %v6860_v16, %v3085_v36  ;;  %v3393_v20 = vmul.f32 %v6995_v52, %v3374_v3 }
 0x6e5   : > { %v3255_v54 = vsub.f32 1.5, %v3254_v32 }
 0x6e6   : > { %v5211_v51 = vpop.eup %5210  ;;  %v3201_v40 = vadd.f32 1e-05, %v3185_v46  ;;  %v7045_v42 = vsub.f32 %v6928_v23, %v3111_v10  ;;  %v7051_v28 = vadd.f32 %v7003_v43, %v3393_v20 }
 0x6e7   : > { %v3256_v56 = vmul.f32 %v5209_v22, %v3255_v54  ;;  %v3262_v44 = vmul.f32 %v5211_v51, %v3200_v19  ;;  %vm3268_vm4 = vweird.f32 %v5211_v51 }
 0x6e8   : > { %5212 = vrsqrt.f32 %v3201_v40  ;;  %v3426_v49 = vpack.c.bf16 %v7051_v28, %v7048_v26  ;;  %v3143_v18 = vmul.f32 %v7045_v42, %v7045_v42  ;;  %vm3269_vm6 = vmor %vm3267_vm5, %vm3268_vm4  ;;  %vm3277_vm8 = vweird.f32 %v3201_v40 }
 0x6e9   : > { %v3263_v9 = vmul.f32 %v5211_v51, %v3262_v44  ;;  %v3260_v23 = vsel %vm3259_vm3, %v5209_v22, %v3256_v56  ;;  %v4869_v56 = vld [vmem:[%s5503_s15 + $0x28] sm:$0xff] }
 0x6ea   : > { %3548 = vmatmul.bf16.gmra.mxu0 %v3426_v49  ;;  %3597 = vmatmul.bf16.gmra.mxu1 %v3426_v49  ;;  %v3375_v29 = vmul.f32 %v3260_v23, %v6908_v13  ;;  %v4868_v49 = vld [vmem:[%s5503_s15 + $0x20] sm:$0xff]  ;;  %v4867_v23 = vld [vmem:[%s5503_s15 + $0x18] sm:$0xff] }
 0x6eb   : > { %v3264_v31 = vmul.f32 0.5, %v3263_v9  ;;  %3171 = vadd.xlane.f32.xlu1 %v3143_v18  ;;  %v3162_v21 = vpop.xlane.xlu1 %3161  ;;  %v3087_v60 = vpop.xlane.xlu2 %3086 }
 0x6ec   : > { %v3186_v37 = vmul.f32 %v3162_v21, %v6860_v16  ;;  %v3112_v50 = vmul.f32 %v6860_v16, %v3087_v60  ;;  %v3394_v47 = vmul.f32 %v6995_v52, %v3375_v29  ;;  %v4866_v21 = vld [vmem:[%s5503_s15 + $0x10] sm:$0xff]  ;;  %v3449_v29 = vld [vmem:[%s5498_s30] sm:$0x3] }
 0x6ed   : > { %v3265_v58 = vsub.f32 1.5, %v3264_v31 }
 0x6ee   : > { %v5213_v2 = vpop.eup %5212  ;;  %v3202_v14 = vadd.f32 1e-05, %v3186_v37  ;;  %v7061_v34 = vsub.f32 %v6937_v4, %v3112_v50  ;;  %v7069_v22 = vadd.f32 %v7003_v43, %v3394_v47  ;;  %v4865_v37 = vld [vmem:[%s5503_s15 + $0x8] sm:$0xff]  ;;  %v4864_v50 = vld [vmem:[%s5503_s15] sm:$0xff] }
 0x6ef   : > { %v3266_v15 = vmul.f32 %v5211_v51, %v3265_v58  ;;  %v3272_v0 = vmul.f32 %v5213_v2, %v3201_v40  ;;  %vm3278_vm7 = vweird.f32 %v5213_v2  ;;  %v4871_v40 = vld [vmem:[%s5503_s15 + $0x38] sm:$0xff] }
 0x6f0   : > { %5214 = vrsqrt.f32 %v3202_v14  ;;  %v3144_v62 = vmul.f32 %v7061_v34, %v7061_v34  ;;  %vm3279_vm9 = vmor %vm3277_vm8, %vm3278_vm7  ;;  %vm3287_vm11 = vweird.f32 %v3202_v14  ;;  %3813 = vmatpush.bf16.msrb.mxu2 %v4871_v40 }
 0x6f1   : > { %v3270_v8 = vsel %vm3269_vm6, %v5211_v51, %v3266_v15  ;;  %v3273_v27 = vmul.f32 %v5213_v2, %v3272_v0  ;;  %v4878_v0 = vld [vmem:[%s5503_s15 + $0x70] sm:$0xff] }
 0x6f2   : > { %v3376_v55 = vmul.f32 %v3270_v8, %v6917_v63  ;;  %3173 = vadd.xlane.f32.xlu0 %v3144_v62  ;;  %v7114_v8 = vperm.slane %v3449_v29, 0 }
 0x6f3   : > { %v3274_v13 = vmul.f32 0.5, %v3273_v27  ;;  %v7116_v27 = vperm.slane %v3449_v29, 1 }
 0x6f4   : > { %v3395_v39 = vmul.f32 %v6995_v52, %v3376_v55  ;;  %v4877_v55 = vld [vmem:[%s5503_s15 + $0x68] sm:$0xff] }
 0x6f5   : > { %v3275_v4 = vsub.f32 1.5, %v3274_v13 }
 0x6f6   : > { %v5215_v57 = vpop.eup %5214  ;;  %v3089_v35 = vpop.xlane.xlu2 %3088  ;;  %v7072_v6 = vadd.f32 %v7003_v43, %v3395_v39 }
 0x6f7   : > { %v3276_v19 = vmul.f32 %v5213_v2, %v3275_v4  ;;  %v3282_v17 = vmul.f32 %v5215_v57, %v3202_v14  ;;  %v3113_v63 = vmul.f32 %v6860_v16, %v3089_v35  ;;  %vm3288_vm10 = vweird.f32 %v5215_v57 }
 0x6f8   : > { %v3427_v5 = vpack.c.bf16 %v7072_v6, %v7069_v22  ;;  %vm3289_vm12 = vmor %vm3287_vm11, %vm3288_vm10 }
 0x6f9   : > { %v3283_v1 = vmul.f32 %v5215_v57, %v3282_v17  ;;  %v7078_v61 = vsub.f32 %v6947_v12, %v3113_v63  ;;  %v3280_v59 = vsel %vm3279_vm9, %v5213_v2, %v3276_v19  ;;  %v4876_v17 = vld [vmem:[%s5503_s15 + $0x60] sm:$0xff] }
 0x6fa   : > { %3553 = vmatmul.bf16.gmra.mxu0 %v3427_v5  ;;  %3602 = vmatmul.bf16.gmra.mxu1 %v3427_v5  ;;  %v3377_v30 = vmul.f32 %v3280_v59, %v6926_v53 }
 0x6fb   : > { %v3284_v3 = vmul.f32 0.5, %v3283_v1  ;;  %v3145_v24 = vmul.f32 %v7078_v61, %v7078_v61 }
 0x6fc   : > { %v3396_v10 = vmul.f32 %v6995_v52, %v3377_v30 }
 0x6fd   : > { %v3285_v32 = vsub.f32 1.5, %v3284_v3  ;;  %3175 = vadd.xlane.f32.xlu2 %v3145_v24 }
 0x6fe   : > { %v7087_v54 = vadd.f32 %v7003_v43, %v3396_v10 }
 0x6ff   : > { %v3286_v36 = vmul.f32 %v5215_v57, %v3285_v32 }
 0x701   : > { %v3290_v12 = vsel %vm3289_vm12, %v5215_v57, %v3286_v36 }
 0x702   : > { %v3378_v46 = vmul.f32 %v3290_v12, %v6935_v25  ;;  %v4870_v25 = vld [vmem:[%s5503_s15 + $0x30] sm:$0xff]  ;;  %v4875_v12 = vld [vmem:[%s5503_s15 + $0x58] sm:$0xff] }
 0x703   : > { %3814 = vmatpush.bf16.msrb.mxu2 %v4870_v25 }
 0x704   : > { %v3397_v20 = vmul.f32 %v6995_v52, %v3378_v46 }
 0x706   : > { %v7090_v51 = vadd.f32 %v7003_v43, %v3397_v20  ;;  %v4874_v20 = vld [vmem:[%s5503_s15 + $0x50] sm:$0xff] }
 0x707   : > { %3815 = vmatpush.bf16.msrb.mxu2 %v4869_v56  ;;  %v4873_v56 = vld [vmem:[%s5503_s15 + $0x48] sm:$0xff] }
 0x708   : > { %v3428_v53 = vpack.c.bf16 %v7090_v51, %v7087_v54 }
 0x70a   : > { %3558 = vmatmul.bf16.gmra.mxu0 %v3428_v53  ;;  %3607 = vmatmul.bf16.gmra.mxu1 %v3428_v53 }
 0x70b   : > { %3816 = vmatpush.bf16.msrb.mxu2 %v4868_v49 }
 0x70f   : > { %3817 = vmatpush.bf16.msrb.mxu2 %v4867_v23 }
 0x711   : > { %v3164_v44 = vpop.xlane.xlu1 %3163 }
 0x712   : > { %v3187_v58 = vmul.f32 %v3164_v44, %v6860_v16 }
 0x713   : > { %3818 = vmatpush.bf16.msrb.mxu2 %v4866_v21  ;;  %v4872_v21 = vld [vmem:[%s5503_s15 + $0x40] sm:$0xff] }
 0x714   : > { %v3203_v2 = vadd.f32 1e-05, %v3187_v58 }
 0x716   : > { %5216 = vrsqrt.f32 %v3203_v2  ;;  %vm3297_vm14 = vweird.f32 %v3203_v2 }
 0x717   : > { %3819 = vmatpush.bf16.msrb.mxu2 %v4865_v37 }
 0x719   : > { %v3091_v18 = vpop.xlane.xlu1 %3090 }
 0x71a   : > { %v3114_v9 = vmul.f32 %v6860_v16, %v3091_v18 }
 0x71b   : > { %3820 = vmatpush.bf16.msrb.mxu2 %v4864_v50 }
 0x71c   : > { %v7101_v31 = vsub.f32 %v6987_v11, %v3114_v9  ;;  %v4879_v11 = vld [vmem:[%s5503_s15 + $0x78] sm:$0xff]  ;;  %v7112_v62 = vpop.eup %5216 }
 0x71d   : > { %4880 = vmatpush.bf16.msrb.mxu3 %v4879_v11  ;;  %3862 = vmatpush.bf16.msra.mxu0 %v4879_v11  ;;  %v3292_v47 = vmul.f32 %v7112_v62, %v3203_v2  ;;  %vm3298_vm13 = vweird.f32 %v7112_v62 }
 0x71e   : > { %v3146_v60 = vmul.f32 %v7101_v31, %v7101_v31  ;;  %vm3299_vm15 = vmor %vm3297_vm14, %vm3298_vm13 }
 0x71f   : > { %v3293_v63 = vmul.f32 %v7112_v62, %v3292_v47 }
 0x720   : > { %3177 = vadd.xlane.f32.xlu1 %v3146_v60 }
 0x721   : > { %4881 = vmatpush.bf16.msrb.mxu3 %v4878_v0  ;;  %3863 = vmatpush.bf16.msra.mxu0 %v4878_v0  ;;  %v3294_v10 = vmul.f32 0.5, %v3293_v63 }
 0x723   : > { %v3295_v53 = vsub.f32 1.5, %v3294_v10 }
 0x725   : > { %4882 = vmatpush.bf16.msrb.mxu3 %v4877_v55  ;;  %3864 = vmatpush.bf16.msra.mxu0 %v4877_v55  ;;  %v3296_v18 = vmul.f32 %v7112_v62, %v3295_v53 }
 0x727   : > { %v3300_v60 = vsel %vm3299_vm15, %v7112_v62, %v3296_v18 }
 0x729   : > { %4883 = vmatpush.bf16.msrb.mxu3 %v4876_v17  ;;  %3865 = vmatpush.bf16.msra.mxu0 %v4876_v17 }
 0x72d   : > { %4884 = vmatpush.bf16.msrb.mxu3 %v4875_v12  ;;  %3866 = vmatpush.bf16.msra.mxu0 %v4875_v12 }
 0x731   : > { %4885 = vmatpush.bf16.msrb.mxu3 %v4874_v20  ;;  %3867 = vmatpush.bf16.msra.mxu0 %v4874_v20 }
 0x735   : > { %4886 = vmatpush.bf16.msrb.mxu3 %v4873_v56  ;;  %3868 = vmatpush.bf16.msra.mxu0 %v4873_v56 }
 0x739   : > { %4887 = vmatpush.bf16.msrb.mxu3 %v4872_v21  ;;  %3869 = vmatpush.bf16.msra.mxu0 %v4872_v21 }
 0x73a   : > { %v3544_v14 = vpop.f32.mrf.mxu0  ;;  %v3593_v15 = vpop.f32.mrf.mxu1 }
 0x73b   : > { %v3545_v13 = vadd.f32 %v3544_v14, %v7114_v8  ;;  %v3594_v39 = vadd.f32 %v3593_v15, %v7116_v27  ;;  %v3379_v14 = vmul.f32 %v3300_v60, %v6980_v7 }
 0x73d   : > { %v3633_v5 = vmax.f32 %v3545_v13, 0.0  ;;  %v3634_v1 = vmax.f32 %v3594_v39, 0.0  ;;  %v3398_v13 = vmul.f32 %v6995_v52, %v3379_v14 }
 0x73f   : > { %v7144_v17 = vadd.f32 %v7003_v43, %v3398_v13 }
 0x742   : > { %v3546_v4 = vpop.f32.mrf.mxu0  ;;  %v3595_v57 = vpop.f32.mrf.mxu1 }
 0x743   : > { %v3547_v35 = vadd.f32 %v3546_v4, %v7114_v8  ;;  %v3596_v19 = vadd.f32 %v3595_v57, %v7116_v27 }
 0x745   : > { %v3635_v59 = vmax.f32 %v3547_v35, 0.0  ;;  %v3636_v3 = vmax.f32 %v3596_v19, 0.0  ;;  %v3166_v24 = vpop.xlane.xlu0 %3165 }
 0x746   : > { %v3188_v32 = vmul.f32 %v3166_v24, %v6860_v16 }
 0x747   : > { %v3665_v30 = vpack.c.bf16 %v3635_v59, %v3633_v5  ;;  %v7127_v36 = vpack.c.bf16 %v3636_v3, %v3634_v1 }
 0x748   : > { %v3204_v46 = vadd.f32 1e-05, %v3188_v32 }
 0x749   : > { %3821 = vmatmul.bf16.vlgmr.msrb.gmra.mxu2 %v3665_v30 }
 0x74a   : > { %5218 = vrsqrt.f32 %v3204_v46  ;;  %vm3307_vm1 = vweird.f32 %v3204_v46 }
 0x74d   : > { %v3168_v40 = vpop.xlane.xlu0 %3167 }
 0x74e   : > { %v3189_v25 = vmul.f32 %v3168_v40, %v6860_v16 }
 0x750   : > { %v5219_v44 = vpop.eup %5218  ;;  %v3205_v49 = vadd.f32 1e-05, %v3189_v25 }
 0x751   : > { %v3302_v9 = vmul.f32 %v5219_v44, %v3204_v46  ;;  %vm3308_vm0 = vweird.f32 %v5219_v44 }
 0x752   : > { %5220 = vrsqrt.f32 %v3205_v49  ;;  %vm3309_vm2 = vmor %vm3307_vm1, %vm3308_vm0  ;;  %vm3317_vm4 = vweird.f32 %v3205_v49 }
 0x753   : > { %v3303_v23 = vmul.f32 %v5219_v44, %v3302_v9 }
 0x755   : > { %v3304_v37 = vmul.f32 0.5, %v3303_v23  ;;  %v3170_v50 = vpop.xlane.xlu2 %3169 }
 0x756   : > { %v3190_v58 = vmul.f32 %v3170_v50, %v6860_v16 }
 0x757   : > { %v3305_v11 = vsub.f32 1.5, %v3304_v37 }
 0x758   : > { %v5221_v29 = vpop.eup %5220  ;;  %v3206_v15 = vadd.f32 1e-05, %v3190_v58 }
 0x759   : > { %v3306_v0 = vmul.f32 %v5219_v44, %v3305_v11  ;;  %v3312_v2 = vmul.f32 %v5221_v29, %v3205_v49  ;;  %vm3318_vm3 = vweird.f32 %v5221_v29 }
 0x75a   : > { %5222 = vrsqrt.f32 %v3206_v15  ;;  %vm3319_vm5 = vmor %vm3317_vm4, %vm3318_vm3  ;;  %vm3327_vm7 = vweird.f32 %v3206_v15 }
 0x75b   : > { %v3310_v55 = vsel %vm3309_vm2, %v5219_v44, %v3306_v0  ;;  %v3313_v47 = vmul.f32 %v5221_v29, %v3312_v2 }
 0x75c   : > { %v3380_v62 = vmul.f32 %v3310_v55, %v7020_v33 }
 0x75d   : > { %v3314_v39 = vmul.f32 0.5, %v3313_v47 }
 0x75e   : > { %v3172_v4 = vpop.xlane.xlu1 %3171  ;;  %v3399_v57 = vmul.f32 %v6995_v52, %v3380_v62 }
 0x75f   : > { %v3315_v35 = vsub.f32 1.5, %v3314_v39  ;;  %v3191_v19 = vmul.f32 %v3172_v4, %v6860_v16 }
 0x760   : > { %v5223_v7 = vpop.eup %5222  ;;  %v7147_v63 = vadd.f32 %v7003_v43, %v3399_v57 }
 0x761   : > { %v3316_v5 = vmul.f32 %v5221_v29, %v3315_v35  ;;  %v3322_v1 = vmul.f32 %v5223_v7, %v3206_v15  ;;  %v3207_v33 = vadd.f32 1e-05, %v3191_v19  ;;  %vm3328_vm6 = vweird.f32 %v5223_v7 }
 0x762   : > { %v3429_v59 = vpack.c.bf16 %v7147_v63, %v7144_v17  ;;  %vm3329_vm8 = vmor %vm3327_vm7, %vm3328_vm6 }
 0x763   : > { %v3323_v3 = vmul.f32 %v5223_v7, %v3322_v1  ;;  %5224 = vrsqrt.f32 %v3207_v33  ;;  %v3320_v24 = vsel %vm3319_vm5, %v5221_v29, %v3316_v5  ;;  %vm3337_vm10 = vweird.f32 %v3207_v33 }
 0x764   : > { %3563 = vmatmul.bf16.gmra.mxu0 %v3429_v59  ;;  %3612 = vmatmul.bf16.gmra.mxu1 %v3429_v59  ;;  %v3381_v46 = vmul.f32 %v3320_v24, %v7027_v45 }
 0x765   : > { %v3324_v32 = vmul.f32 0.5, %v3323_v3  ;;  %v3174_v30 = vpop.xlane.xlu0 %3173 }
 0x766   : > { %v3192_v12 = vmul.f32 %v3174_v30, %v6860_v16  ;;  %v3400_v18 = vmul.f32 %v6995_v52, %v3381_v46 }
 0x767   : > { %v3325_v10 = vsub.f32 1.5, %v3324_v32  ;;  %v3549_v20 = vpop.f32.mrf.mxu0  ;;  %v3598_v53 = vpop.f32.mrf.mxu1 }
 0x768   : > { %v3208_v40 = vadd.f32 1e-05, %v3192_v12  ;;  %v3550_v21 = vadd.f32 %v3549_v20, %v7114_v8  ;;  %v3599_v45 = vadd.f32 %v3598_v53, %v7116_v27  ;;  %v7159_v11 = vadd.f32 %v7003_v43, %v3400_v18 }
 0x769   : > { %v5225_v25 = vpop.eup %5224  ;;  %v3326_v56 = vmul.f32 %v5223_v7, %v3325_v10 }
 0x76a   : > { %v3332_v44 = vmul.f32 %v5225_v25, %v3207_v33  ;;  %5226 = vrsqrt.f32 %v3208_v40  ;;  %vm3338_vm9 = vweird.f32 %v5225_v25  ;;  %v3637_v55 = vmax.f32 %v3550_v21, 0.0 }
 0x76b   : > { %v3330_v49 = vsel %vm3329_vm8, %v5223_v7, %v3326_v56  ;;  %v3638_v47 = vmax.f32 %v3599_v45, 0.0  ;;  %vm3339_vm11 = vmor %vm3337_vm10, %vm3338_vm9  ;;  %vm3347_vm13 = vweird.f32 %v3208_v40 }
 0x76c   : > { %v3382_v9 = vmul.f32 %v3330_v49, %v7035_v41  ;;  %v3333_v23 = vmul.f32 %v5225_v25, %v3332_v44 }
 0x76e   : > { %v3334_v60 = vmul.f32 0.5, %v3333_v23  ;;  %v3401_v37 = vmul.f32 %v6995_v52, %v3382_v9 }
 0x76f   : > { %v3551_v50 = vpop.f32.mrf.mxu0  ;;  %v3600_v58 = vpop.f32.mrf.mxu1 }
 0x770   : > { %v5227_v29 = vpop.eup %5226  ;;  %v3335_v14 = vsub.f32 1.5, %v3334_v60  ;;  %v3552_v15 = vadd.f32 %v3551_v50, %v7114_v8  ;;  %v3601_v0 = vadd.f32 %v3600_v58, %v7116_v27  ;;  %v7164_v41 = vadd.f32 %v7003_v43, %v3401_v37  ;;  %v3176_v33 = vpop.xlane.xlu2 %3175 }
 0x771   : > { %v3342_v2 = vmul.f32 %v5227_v29, %v3208_v40  ;;  %vm3348_vm12 = vweird.f32 %v5227_v29  ;;  %v3193_v10 = vmul.f32 %v3176_v33, %v6860_v16 }
 0x772   : > { %v3336_v62 = vmul.f32 %v5225_v25, %v3335_v14  ;;  %v3639_v13 = vmax.f32 %v3552_v15, 0.0  ;;  %v3640_v39 = vmax.f32 %v3601_v0, 0.0  ;;  %v3430_v4 = vpack.c.bf16 %v7164_v41, %v7159_v11  ;;  %vm3349_vm14 = vmor %vm3347_vm13, %vm3348_vm12 }
 0x773   : > { %v3343_v57 = vmul.f32 %v5227_v29, %v3342_v2  ;;  %v3209_v18 = vadd.f32 1e-05, %v3193_v10 }
 0x774   : > { %v3667_v35 = vpack.c.bf16 %v3639_v13, %v3637_v55  ;;  %v3668_v19 = vpack.c.bf16 %v3640_v39, %v3638_v47  ;;  %3568 = vmatmul.bf16.gmra.mxu0 %v3430_v4  ;;  %3617 = vmatmul.bf16.gmra.mxu1 %v3430_v4  ;;  %v3340_v7 = vsel %vm3339_vm11, %v5225_v25, %v3336_v62 }
 0x775   : > { %v3344_v5 = vmul.f32 0.5, %v3343_v57  ;;  %v3383_v24 = vmul.f32 %v3340_v7, %v7045_v42  ;;  %5228 = vrsqrt.f32 %v3209_v18  ;;  %vm3357_vm0 = vweird.f32 %v3209_v18 }
 0x776   : > { %3826 = vmatmul.bf16.gmra.mxu2 %v3667_v35  ;;  %3875 = vmatmul.bf16.vlgmr.msrb.gmra.mxu3 %v3668_v19 }
 0x777   : > { %v3345_v1 = vsub.f32 1.5, %v3344_v5  ;;  %v3554_v59 = vpop.f32.mrf.mxu0  ;;  %v3603_v3 = vpop.f32.mrf.mxu1  ;;  %v3402_v46 = vmul.f32 %v6995_v52, %v3383_v24 }
 0x778   : > { %v3555_v20 = vadd.f32 %v3554_v59, %v7114_v8  ;;  %v3604_v53 = vadd.f32 %v3603_v3, %v7116_v27 }
 0x779   : > { %v3346_v32 = vmul.f32 %v5227_v29, %v3345_v1  ;;  %v7178_v49 = vadd.f32 %v7003_v43, %v3402_v46 }
 0x77a   : > { %v3641_v9 = vmax.f32 %v3555_v20, 0.0  ;;  %v3642_v23 = vmax.f32 %v3604_v53, 0.0 }
 0x77b   : > { %v3350_v30 = vsel %vm3349_vm14, %v5227_v29, %v3346_v32  ;;  %v5229_v14 = vpop.eup %5228 }
 0x77c   : > { %v3384_v12 = vmul.f32 %v3350_v30, %v7061_v34  ;;  %v3352_v2 = vmul.f32 %v5229_v14, %v3209_v18  ;;  %vm3358_vm15 = vweird.f32 %v5229_v14 }
 0x77d   : > { %vm3359_vm1 = vmor %vm3357_vm0, %vm3358_vm15 }
 0x77e   : > { %v3403_v25 = vmul.f32 %v6995_v52, %v3384_v12  ;;  %v3353_v19 = vmul.f32 %v5229_v14, %v3352_v2 }
 0x77f   : > { %v3556_v56 = vpop.f32.mrf.mxu0  ;;  %v3605_v44 = vpop.f32.mrf.mxu1 }
 0x780   : > { %v3557_v42 = vadd.f32 %v3556_v56, %v7114_v8  ;;  %v3606_v40 = vadd.f32 %v3605_v44, %v7116_v27  ;;  %v7181_v34 = vadd.f32 %v7003_v43, %v3403_v25  ;;  %v3354_v24 = vmul.f32 0.5, %v3353_v19 }
 0x782   : > { %v3643_v21 = vmax.f32 %v3557_v42, 0.0  ;;  %v3644_v45 = vmax.f32 %v3606_v40, 0.0  ;;  %v3431_v60 = vpack.c.bf16 %v7181_v34, %v7178_v49  ;;  %v3355_v32 = vsub.f32 1.5, %v3354_v24 }
 0x784   : > { %v3669_v37 = vpack.c.bf16 %v3643_v21, %v3641_v9  ;;  %v3670_v50 = vpack.c.bf16 %v3644_v45, %v3642_v23  ;;  %3573 = vmatmul.bf16.gmra.mxu0 %v3431_v60  ;;  %3622 = vmatmul.bf16.gmra.mxu1 %v3431_v60  ;;  %v3356_v30 = vmul.f32 %v5229_v14, %v3355_v32 }
 0x786   : > { %3831 = vmatmul.bf16.gmra.mxu2 %v3669_v37  ;;  %3880 = vmatmul.bf16.gmra.mxu3 %v3670_v50  ;;  %v3360_v10 = vsel %vm3359_vm1, %v5229_v14, %v3356_v30 }
 0x787   : > { %v3559_v58 = vpop.f32.mrf.mxu0  ;;  %v3608_v29 = vpop.f32.mrf.mxu1  ;;  %v3385_v25 = vmul.f32 %v3360_v10, %v7078_v61 }
 0x788   : > { %v3560_v15 = vadd.f32 %v3559_v58, %v7114_v8  ;;  %v3609_v0 = vadd.f32 %v3608_v29, %v7116_v27 }
 0x789   : > { %v3404_v40 = vmul.f32 %v6995_v52, %v3385_v25 }
 0x78a   : > { %v3645_v39 = vmax.f32 %v3560_v15, 0.0  ;;  %v3646_v4 = vmax.f32 %v3609_v0, 0.0 }
 0x78b   : > { %v7195_v18 = vadd.f32 %v7003_v43, %v3404_v40 }
 0x78f   : > { %v3561_v55 = vpop.f32.mrf.mxu0  ;;  %v3610_v47 = vpop.f32.mrf.mxu1 }
 0x790   : > { %v3562_v62 = vadd.f32 %v3561_v55, %v7114_v8  ;;  %v3611_v13 = vadd.f32 %v3610_v47, %v7116_v27 }
 0x792   : > { %v3647_v57 = vmax.f32 %v3562_v62, 0.0  ;;  %v3648_v35 = vmax.f32 %v3611_v13, 0.0 }
 0x793   : > { %v3178_v7 = vpop.xlane.xlu1 %3177 }
 0x794   : > { %v3671_v5 = vpack.c.bf16 %v3647_v57, %v3645_v39  ;;  %v3672_v1 = vpack.c.bf16 %v3648_v35, %v3646_v4  ;;  %v3194_v59 = vmul.f32 %v3178_v7, %v6860_v16  ;;  %v7218_v4 = vld [vmem:[%s693_s19] ss:$0 sm:$0xff] }
 0x796   : > { %v3210_v3 = vadd.f32 1e-05, %v3194_v59  ;;  %3836 = vmatmul.bf16.gmra.mxu2 %v3671_v5  ;;  %3885 = vmatmul.bf16.gmra.mxu3 %v3672_v1 }
 0x798   : > { %5230 = vrsqrt.f32 %v3210_v3  ;;  %vm3367_vm3 = vweird.f32 %v3210_v3 }
 0x79e   : > { %v5231_v33 = vpop.eup %5230 }
 0x79f   : > { %v3362_v12 = vmul.f32 %v5231_v33, %v3210_v3  ;;  %vm3368_vm2 = vweird.f32 %v5231_v33 }
 0x7a0   : > { %vm3369_vm4 = vmor %vm3367_vm3, %vm3368_vm2 }
 0x7a1   : > { %v3363_v46 = vmul.f32 %v5231_v33, %v3362_v12 }
 0x7a3   : > { %v3364_v20 = vmul.f32 0.5, %v3363_v46 }
 0x7a5   : > { %v3365_v53 = vsub.f32 1.5, %v3364_v20 }
 0x7a7   : > { %v3366_v56 = vmul.f32 %v5231_v33, %v3365_v53 }
 0x7a9   : > { %v3370_v44 = vsel %vm3369_vm4, %v5231_v33, %v3366_v56 }
 0x7aa   : > { %v3386_v42 = vmul.f32 %v3370_v44, %v7101_v31 }
 0x7ac   : > { %v3405_v9 = vmul.f32 %v6995_v52, %v3386_v42 }
 0x7ae   : > { %v7198_v23 = vadd.f32 %v7003_v43, %v3405_v9 }
 0x7b0   : > { %v3432_v21 = vpack.c.bf16 %v7198_v23, %v7195_v18 }
 0x7b2   : > { %3578 = vmatmul.bf16.gmra.mxu0 %v3432_v21  ;;  %3627 = vmatmul.bf16.gmra.mxu1 %v3432_v21 }
 0x7c2   : > { %3870 = vmatmul.bf16.vlgmr.msra.gmra.mxu0 %v7127_v36 }
 0x7cc   : > { %v7203_v31 = vpop.f32.mrf.mxu2 }
 0x7d4   : > { %v7209_v62 = vpop.f32.mrf.mxu2 }
 0x7e1   : > { %v3564_v61 = vpop.f32.mrf.mxu0  ;;  %v3613_v45 = vpop.f32.mrf.mxu1 }
 0x7e2   : > { %v3565_v60 = vadd.f32 %v3564_v61, %v7114_v8  ;;  %v3614_v52 = vadd.f32 %v3613_v45, %v7116_v27 }
 0x7e4   : > { %v3649_v29 = vmax.f32 %v3565_v60, 0.0  ;;  %v3650_v14 = vmax.f32 %v3614_v52, 0.0 }
 0x7e9   : > { %v3566_v37 = vpop.f32.mrf.mxu0  ;;  %v3615_v50 = vpop.f32.mrf.mxu1 }
 0x7ea   : > { %v3567_v43 = vadd.f32 %v3566_v37, %v7114_v8  ;;  %v3616_v58 = vadd.f32 %v3615_v50, %v7116_v27 }
 0x7ec   : > { %v3651_v15 = vmax.f32 %v3567_v43, 0.0  ;;  %v3652_v0 = vmax.f32 %v3616_v58, 0.0 }
 0x7ee   : > { %v3673_v36 = vpack.c.bf16 %v3651_v15, %v3649_v29  ;;  %v3674_v2 = vpack.c.bf16 %v3652_v0, %v3650_v14 }
 0x7f0   : > { %3841 = vmatmul.bf16.gmra.mxu2 %v3673_v36  ;;  %3890 = vmatmul.bf16.gmra.mxu3 %v3674_v2 }
 0x7f1   : > { %v3569_v55 = vpop.f32.mrf.mxu0  ;;  %v3618_v47 = vpop.f32.mrf.mxu1 }
 0x7f2   : > { %v3570_v13 = vadd.f32 %v3569_v55, %v7114_v8  ;;  %v3619_v39 = vadd.f32 %v3618_v47, %v7116_v27 }
 0x7f4   : > { %v3653_v3 = vmax.f32 %v3570_v13, 0.0  ;;  %v3654_v24 = vmax.f32 %v3619_v39, 0.0 }
 0x7f9   : > { %v3571_v57 = vpop.f32.mrf.mxu0  ;;  %v3620_v35 = vpop.f32.mrf.mxu1 }
 0x7fa   : > { %v3572_v19 = vadd.f32 %v3571_v57, %v7114_v8  ;;  %v3621_v7 = vadd.f32 %v3620_v35, %v7116_v27  ;;  %v3827_v5 = vpop.f32.mrf.mxu2  ;;  %v3876_v1 = vpop.f32.mrf.mxu3 }
 0x7fb   : > { %v3828_v59 = vadd.f32 %v7218_v4, %v3827_v5 }
 0x7fc   : > { %v3655_v32 = vmax.f32 %v3572_v19, 0.0  ;;  %v3656_v33 = vmax.f32 %v3621_v7, 0.0 }
 0x7fd   : > { %v3877_v30 = vadd.f32 %v3876_v1, %v3828_v59 }
 0x7fe   : > { %v3675_v12 = vpack.c.bf16 %v3655_v32, %v3653_v3  ;;  %v3676_v46 = vpack.c.bf16 %v3656_v33, %v3654_v24 }
 0x7ff   : > { %v7224_v10 = vadd.f32 %v3877_v30, %v7048_v26 }
 0x800   : > { %3846 = vmatmul.bf16.gmra.mxu2 %v3675_v12  ;;  %3895 = vmatmul.bf16.gmra.mxu3 %v3676_v46  ;;  %v3823_v12 = vadd.f32 %v7218_v4, %v7203_v31 }
 0x801   : > { %3933 = vadd.xlane.f32.xlu1 %v7224_v10  ;;  %v3574_v20 = vpop.f32.mrf.mxu0  ;;  %v3623_v53 = vpop.f32.mrf.mxu1 }
 0x802   : > { %v3829_v25 = vpop.f32.mrf.mxu2  ;;  %v3878_v56 = vpop.f32.mrf.mxu3  ;;  %v3575_v40 = vadd.f32 %v3574_v20, %v7114_v8  ;;  %v3624_v9 = vadd.f32 %v3623_v53, %v7116_v27 }
 0x803   : > { %v3830_v44 = vadd.f32 %v7218_v4, %v3829_v25 }
 0x804   : > { %v3657_v50 = vmax.f32 %v3575_v40, 0.0  ;;  %v3658_v43 = vmax.f32 %v3624_v9, 0.0 }
 0x805   : > { %v3879_v42 = vadd.f32 %v3878_v56, %v3830_v44 }
 0x807   : > { %v7248_v44 = vadd.f32 %v3879_v42, %v7051_v28 }
 0x809   : > { %v3576_v21 = vpop.f32.mrf.mxu0  ;;  %v3625_v61 = vpop.f32.mrf.mxu1 }
 0x80a   : > { %v3577_v26 = vadd.f32 %v3576_v21, %v7114_v8  ;;  %v3626_v45 = vadd.f32 %v3625_v61, %v7116_v27  ;;  %v3832_v60 = vpop.f32.mrf.mxu2  ;;  %v3881_v52 = vpop.f32.mrf.mxu3 }
 0x80b   : > { %v3833_v37 = vadd.f32 %v7218_v4, %v3832_v60 }
 0x80c   : > { %v3659_v58 = vmax.f32 %v3577_v26, 0.0  ;;  %v3660_v29 = vmax.f32 %v3626_v45, 0.0 }
 0x80d   : > { %v3882_v14 = vadd.f32 %v3881_v52, %v3833_v37 }
 0x80e   : > { %v3677_v15 = vpack.c.bf16 %v3659_v58, %v3657_v50  ;;  %v3678_v0 = vpack.c.bf16 %v3660_v29, %v3658_v43 }
 0x80f   : > { %v7257_v61 = vadd.f32 %v3882_v14, %v7069_v22 }
 0x810   : > { %3851 = vmatmul.bf16.gmra.mxu2 %v3677_v15  ;;  %3900 = vmatmul.bf16.gmra.mxu3 %v3678_v0 }
 0x812   : > { %v3834_v36 = vpop.f32.mrf.mxu2  ;;  %v3883_v55 = vpop.f32.mrf.mxu3 }
 0x813   : > { %v3835_v2 = vadd.f32 %v7218_v4, %v3834_v36 }
 0x815   : > { %v3884_v47 = vadd.f32 %v3883_v55, %v3835_v2 }
 0x817   : > { %v7235_v13 = vadd.f32 %v3884_v47, %v7072_v6 }
 0x819   : > { %3939 = vadd.xlane.f32.xlu1 %v7235_v13 }
 0x81a   : > { %v3837_v25 = vpop.f32.mrf.mxu2  ;;  %v3886_v9 = vpop.f32.mrf.mxu3 }
 0x81b   : > { %v3838_v40 = vadd.f32 %v7218_v4, %v3837_v25 }
 0x822   : > { %v3839_v21 = vpop.f32.mrf.mxu2 }
 0x823   : > { %v3840_v28 = vadd.f32 %v7218_v4, %v3839_v21 }
 0x82f   : > { %v3579_v39 = vpop.f32.mrf.mxu0  ;;  %v3628_v57 = vpop.f32.mrf.mxu1 }
 0x830   : > { %v3580_v35 = vadd.f32 %v3579_v39, %v7114_v8  ;;  %v3629_v19 = vadd.f32 %v3628_v57, %v7116_v27 }
 0x832   : > { %v3661_v3 = vmax.f32 %v3580_v35, 0.0  ;;  %v3662_v24 = vmax.f32 %v3629_v19, 0.0 }
 0x837   : > { %v3581_v7 = vpop.f32.mrf.mxu0  ;;  %v3630_v5 = vpop.f32.mrf.mxu1 }
 0x838   : > { %v3582_v1 = vadd.f32 %v3581_v7, %v7114_v8  ;;  %v3631_v59 = vadd.f32 %v3630_v5, %v7116_v27  ;;  %v3825_v8 = vadd.f32 %v7218_v4, %v7209_v62 }
 0x83a   : > { %v3663_v32 = vmax.f32 %v3582_v1, 0.0  ;;  %v3664_v33 = vmax.f32 %v3631_v59, 0.0 }
 0x83c   : > { %v3679_v6 = vpack.c.bf16 %v3663_v32, %v3661_v3  ;;  %v3680_v30 = vpack.c.bf16 %v3664_v33, %v3662_v24 }
 0x83e   : > { %3856 = vmatmul.bf16.gmra.mxu2 %v3679_v6  ;;  %3905 = vmatmul.bf16.gmra.mxu3 %v3680_v30 }
 0x83f   : > { %v3871_v46 = vpop.f32.mrf.mxu0 }
 0x840   : > { %v3872_v20 = vadd.f32 %v3871_v46, %v3823_v12 }
 0x842   : > { %v3911_v53 = vadd.f32 %v3872_v20, %v7009_v48  ;;  %v3887_v48 = vadd.f32 %v3886_v9, %v3838_v40 }
 0x844   : > { %3929 = vadd.xlane.f32.xlu0 %v3911_v53  ;;  %v7260_v62 = vadd.f32 %v3887_v48, %v7087_v54 }
 0x847   : > { %v3873_v27 = vpop.f32.mrf.mxu0 }
 0x848   : > { %v3874_v56 = vadd.f32 %v3873_v27, %v3825_v8 }
 0x84a   : > { %v7252_v31 = vadd.f32 %v3874_v56, %v7012_v38  ;;  %v3888_v38 = vpop.f32.mrf.mxu3 }
 0x84b   : > { %v3889_v42 = vadd.f32 %v3888_v38, %v3840_v28 }
 0x84c   : > { %3931 = vadd.xlane.f32.xlu2 %v7252_v31  ;;  %3935 = vadd.xlane.f32.xlu0 %v7248_v44 }
 0x84d   : > { %v7266_v26 = vadd.f32 %v3889_v42, %v7090_v51 }
 0x854   : > { %3937 = vadd.xlane.f32.xlu2 %v7257_v61  ;;  %3941 = vadd.xlane.f32.xlu0 %v7260_v62 }
 0x85c   : > { %3943 = vadd.xlane.f32.xlu2 %v7266_v26 }
 0x873   : > { %v3842_v45 = vpop.f32.mrf.mxu2  ;;  %v3891_v60 = vpop.f32.mrf.mxu3 }
 0x874   : > { %v3843_v22 = vadd.f32 %v7218_v4, %v3842_v45  ;;  %v3934_v38 = vpop.xlane.xlu1 %3933 }
 0x876   : > { %v3892_v52 = vadd.f32 %v3891_v60, %v3843_v22  ;;  %v3963_v60 = vmul.f32 %v3934_v38, %v6860_v16 }
 0x878   : > { %v7271_v54 = vadd.f32 %v3892_v52, %v7144_v17 }
 0x87a   : > { %3945 = vadd.xlane.f32.xlu1 %v7271_v54 }
 0x87b   : > { %v3844_v37 = vpop.f32.mrf.mxu2  ;;  %v3893_v50 = vpop.f32.mrf.mxu3 }
 0x87c   : > { %v3845_v43 = vadd.f32 %v7218_v4, %v3844_v37 }
 0x87e   : > { %v3894_v58 = vadd.f32 %v3893_v50, %v3845_v43 }
 0x880   : > { %v7276_v51 = vadd.f32 %v3894_v58, %v7147_v63 }
 0x882   : > { %3947 = vadd.xlane.f32.xlu0 %v7276_v51 }
 0x883   : > { %v3847_v29 = vpop.f32.mrf.mxu2  ;;  %v3896_v14 = vpop.f32.mrf.mxu3 }
 0x884   : > { %v3848_v15 = vadd.f32 %v7218_v4, %v3847_v29 }
 0x886   : > { %v3897_v0 = vadd.f32 %v3896_v14, %v3848_v15 }
 0x888   : > { %v7281_v17 = vadd.f32 %v3897_v0, %v7159_v11 }
 0x88a   : > { %3949 = vadd.xlane.f32.xlu2 %v7281_v17 }
 0x88b   : > { %v3849_v36 = vpop.f32.mrf.mxu2  ;;  %v3898_v2 = vpop.f32.mrf.mxu3 }
 0x88c   : > { %v3850_v55 = vadd.f32 %v7218_v4, %v3849_v36  ;;  %v3940_v37 = vpop.xlane.xlu1 %3939 }
 0x88d   : > { %v3966_v43 = vmul.f32 %v3940_v37, %v6860_v16 }
 0x88e   : > { %v3899_v47 = vadd.f32 %v3898_v2, %v3850_v55 }
 0x890   : > { %v7286_v63 = vadd.f32 %v3899_v47, %v7164_v41 }
 0x892   : > { %3951 = vadd.xlane.f32.xlu1 %v7286_v63 }
 0x893   : > { %v3852_v39 = vpop.f32.mrf.mxu2  ;;  %v3901_v57 = vpop.f32.mrf.mxu3 }
 0x894   : > { %v3853_v35 = vadd.f32 %v7218_v4, %v3852_v39 }
 0x896   : > { %v3902_v19 = vadd.f32 %v3901_v57, %v3853_v35 }
 0x898   : > { %v7291_v11 = vadd.f32 %v3902_v19, %v7178_v49 }
 0x89a   : > { %3953 = vadd.xlane.f32.xlu0 %v7291_v11 }
 0x89b   : > { %v3854_v7 = vpop.f32.mrf.mxu2  ;;  %v3903_v1 = vpop.f32.mrf.mxu3 }
 0x89c   : > { %v3855_v5 = vadd.f32 %v7218_v4, %v3854_v7 }
 0x89e   : > { %v3904_v59 = vadd.f32 %v3903_v1, %v3855_v5 }
 0x8a0   : > { %v7296_v41 = vadd.f32 %v3904_v59, %v7181_v34 }
 0x8a2   : > { %3955 = vadd.xlane.f32.xlu2 %v7296_v41 }
 0x8b7   : > { %v3930_v3 = vpop.xlane.xlu0 %3929 }
 0x8b8   : > { %v3961_v24 = vmul.f32 %v3930_v3, %v6860_v16 }
 0x8ba   : > { %v7300_v32 = vsub.f32 %v3911_v53, %v3961_v24 }
 0x8bc   : > { %v3993_v49 = vmul.f32 %v7300_v32, %v7300_v32 }
 0x8be   : > { %4009 = vadd.xlane.f32.xlu2 %v3993_v49 }
 0x8bf   : > { %v3932_v33 = vpop.xlane.xlu2 %3931  ;;  %v3936_v6 = vpop.xlane.xlu0 %3935 }
 0x8c0   : > { %v3964_v30 = vmul.f32 %v3936_v6, %v6860_v16  ;;  %v3962_v8 = vmul.f32 %v3932_v33, %v6860_v16 }
 0x8c1   : > { %v3857_v12 = vpop.f32.mrf.mxu2  ;;  %v3906_v46 = vpop.f32.mrf.mxu3 }
 0x8c2   : > { %v7306_v34 = vsub.f32 %v7248_v44, %v3964_v30  ;;  %v3858_v20 = vadd.f32 %v7218_v4, %v3857_v12  ;;  %v7318_v48 = vsub.f32 %v7252_v31, %v3962_v8 }
 0x8c4   : > { %v3907_v25 = vadd.f32 %v3906_v46, %v3858_v20  ;;  %v3996_v53 = vmul.f32 %v7306_v34, %v7306_v34  ;;  %v3994_v31 = vmul.f32 %v7318_v48, %v7318_v48 }
 0x8c6   : > { %v7313_v27 = vadd.f32 %v3907_v25, %v7195_v18  ;;  %4015 = vadd.xlane.f32.xlu2 %v3996_v53 }
 0x8c7   : > { %v3942_v56 = vpop.xlane.xlu0 %3941  ;;  %v3938_v9 = vpop.xlane.xlu2 %3937 }
 0x8c8   : > { %v3967_v40 = vmul.f32 %v3942_v56, %v6860_v16  ;;  %3957 = vadd.xlane.f32.xlu1 %v7313_v27  ;;  %v3965_v22 = vmul.f32 %v3938_v9, %v6860_v16 }
 0x8c9   : > { %v3859_v44 = vpop.f32.mrf.mxu2  ;;  %v3908_v42 = vpop.f32.mrf.mxu3 }
 0x8ca   : > { %v7321_v21 = vsub.f32 %v7260_v62, %v3967_v40  ;;  %v3860_v28 = vadd.f32 %v7218_v4, %v3859_v44  ;;  %v7335_v4 = vsub.f32 %v7224_v10, %v3963_v60  ;;  %v7338_v62 = vsub.f32 %v7257_v61, %v3965_v22 }
 0x8cb   : > { %v7347_v10 = vsub.f32 %v7235_v13, %v3966_v43 }
 0x8cc   : > { %v3909_v18 = vadd.f32 %v3908_v42, %v3860_v28  ;;  %v3999_v45 = vmul.f32 %v7321_v21, %v7321_v21  ;;  %v3997_v58 = vmul.f32 %v7338_v62, %v7338_v62  ;;  %v3995_v29 = vmul.f32 %v7335_v4, %v7335_v4 }
 0x8cd   : > { %v3998_v15 = vmul.f32 %v7347_v10, %v7347_v10 }
 0x8ce   : > { %v7329_v52 = vadd.f32 %v3909_v18, %v7198_v23  ;;  %4021 = vadd.xlane.f32.xlu2 %v3999_v45 }
 0x8cf   : > { %v3944_v50 = vpop.xlane.xlu2 %3943 }
 0x8d0   : > { %4011 = vadd.xlane.f32.xlu1 %v3994_v31  ;;  %3959 = vadd.xlane.f32.xlu0 %v7329_v52  ;;  %v3968_v23 = vmul.f32 %v3944_v50, %v6860_v16 }
 0x8d2   : > { %v7350_v61 = vsub.f32 %v7266_v26, %v3968_v23  ;;  %v7408_v23 = vld [vmem:[%s696_s3] ss:$0 sm:$0xff] }
 0x8d4   : > { %v4000_v14 = vmul.f32 %v7350_v61, %v7350_v61 }
 0x8d8   : > { %4017 = vadd.xlane.f32.xlu1 %v3997_v58  ;;  %4013 = vadd.xlane.f32.xlu0 %v3995_v29 }
 0x8e0   : > { %4023 = vadd.xlane.f32.xlu1 %v4000_v14  ;;  %4019 = vadd.xlane.f32.xlu0 %v3998_v15 }
 0x8ed   : > { %v3946_v0 = vpop.xlane.xlu1 %3945 }
 0x8ee   : > { %v3969_v36 = vmul.f32 %v3946_v0, %v6860_v16  ;;  %v7418_v0 = vld [vmem:[%s699_s7] ss:$0 sm:$0xff]  ;;  %s7622_s7 = sld [smem:[#allocation4_spill]] }
 0x8f0   : > { %v7358_v2 = vsub.f32 %v7271_v54, %v3969_v36 }
 0x8f2   : > { %v4001_v13 = vmul.f32 %v7358_v2, %v7358_v2 }
 0x8f4   : > { %4025 = vadd.xlane.f32.xlu0 %v4001_v13  ;;  %p4809_p8 = scmp.ne.s32.totalorder %s7622_s7, 1 }
 0x8f5   : > { %v3948_v26 = vpop.xlane.xlu0 %3947  ;;  %s7623_s14 = sld [smem:[#allocation33_spill]] (!%p4809_p8) }
 0x8f6   : > { %v3970_v55 = vmul.f32 %v3948_v26, %v6860_v16  ;;  %s7624_s25 = sld [smem:[#allocation10_spill]] (!%p4809_p8) }
 0x8f7   : > { %s7625_s2 = sld [smem:[#allocation34_spill]] (!%p4809_p8) }
 0x8f8   : > { %v7364_v47 = vsub.f32 %v7276_v51, %v3970_v55 }
 0x8fa   : > { %v4002_v39 = vmul.f32 %v7364_v47, %v7364_v47 }
 0x8fc   : > { %4027 = vadd.xlane.f32.xlu2 %v4002_v39 }
 0x8fd   : > { %v3950_v57 = vpop.xlane.xlu2 %3949  ;;  %s7626_s24 = scalar_lea.vmem (!%p4809_p8), %s7625_s2, %s7624_s25 }
 0x8fe   : > { %v3971_v35 = vmul.f32 %v3950_v57, %v6860_v16 }
 0x900   : > { %v7370_v54 = vsub.f32 %v7281_v17, %v3971_v35 }
 0x902   : > { %v4003_v19 = vmul.f32 %v7370_v54, %v7370_v54 }
 0x904   : > { %4029 = vadd.xlane.f32.xlu1 %v4003_v19 }
 0x905   : > { %v3952_v7 = vpop.xlane.xlu1 %3951 }
 0x906   : > { %v3972_v5 = vmul.f32 %v3952_v7, %v6860_v16 }
 0x908   : > { %v7376_v51 = vsub.f32 %v7286_v63, %v3972_v5 }
 0x90a   : > { %v4004_v1 = vmul.f32 %v7376_v51, %v7376_v51 }
 0x90c   : > { %4031 = vadd.xlane.f32.xlu0 %v4004_v1 }
 0x90d   : > { %v3954_v59 = vpop.xlane.xlu0 %3953 }
 0x90e   : > { %v3973_v3 = vmul.f32 %v3954_v59, %v6860_v16 }
 0x910   : > { %v7382_v17 = vsub.f32 %v7291_v11, %v3973_v3 }
 0x912   : > { %v4005_v24 = vmul.f32 %v7382_v17, %v7382_v17 }
 0x914   : > { %4033 = vadd.xlane.f32.xlu2 %v4005_v24 }
 0x915   : > { %v3956_v49 = vpop.xlane.xlu2 %3955 }
 0x916   : > { %v3974_v33 = vmul.f32 %v3956_v49, %v6860_v16 }
 0x918   : > { %v7388_v63 = vsub.f32 %v7296_v41, %v3974_v33 }
 0x91a   : > { %v4006_v6 = vmul.f32 %v7388_v63, %v7388_v63 }
 0x91c   : > { %4035 = vadd.xlane.f32.xlu1 %v4006_v6 }
 0x931   : > { %v4010_v30 = vpop.xlane.xlu2 %4009 }
 0x932   : > { %v4041_v12 = vmul.f32 %v4010_v30, %v6860_v16 }
 0x934   : > { %v4057_v46 = vadd.f32 1e-05, %v4041_v12 }
 0x936   : > { %5232 = vrsqrt.f32 %v4057_v46  ;;  %vm4079_vm6 = vweird.f32 %v4057_v46 }
 0x939   : > { %v4016_v11 = vpop.xlane.xlu2 %4015 }
 0x93a   : > { %v4044_v20 = vmul.f32 %v4016_v11, %v6860_v16 }
 0x93b   : > { %v3958_v25 = vpop.xlane.xlu1 %3957 }
 0x93c   : > { %v5233_v53 = vpop.eup %5232  ;;  %v4060_v8 = vadd.f32 1e-05, %v4044_v20  ;;  %v3975_v56 = vmul.f32 %v3958_v25, %v6860_v16 }
 0x93d   : > { %v4074_v40 = vmul.f32 %v5233_v53, %v4057_v46  ;;  %vm4080_vm5 = vweird.f32 %v5233_v53 }
 0x93e   : > { %5234 = vrsqrt.f32 %v4060_v8  ;;  %v7396_v41 = vsub.f32 %v7313_v27, %v3975_v56  ;;  %vm4081_vm7 = vmor %vm4079_vm6, %vm4080_vm5  ;;  %vm4109_vm9 = vweird.f32 %v4060_v8 }
 0x93f   : > { %v4075_v9 = vmul.f32 %v5233_v53, %v4074_v40 }
 0x940   : > { %v4007_v44 = vmul.f32 %v7396_v41, %v7396_v41 }
 0x941   : > { %v4076_v28 = vmul.f32 0.5, %v4075_v9  ;;  %v4022_v38 = vpop.xlane.xlu2 %4021 }
 0x942   : > { %v4047_v42 = vmul.f32 %v4022_v38, %v6860_v16  ;;  %4037 = vadd.xlane.f32.xlu0 %v4007_v44 }
 0x943   : > { %v4077_v18 = vsub.f32 1.5, %v4076_v28  ;;  %v4012_v45 = vpop.xlane.xlu1 %4011  ;;  %v3960_v60 = vpop.xlane.xlu0 %3959 }
 0x944   : > { %v5235_v22 = vpop.eup %5234  ;;  %v4063_v31 = vadd.f32 1e-05, %v4047_v42  ;;  %v4042_v27 = vmul.f32 %v4012_v45, %v6860_v16  ;;  %v3976_v37 = vmul.f32 %v3960_v60, %v6860_v16 }
 0x945   : > { %v4078_v50 = vmul.f32 %v5233_v53, %v4077_v18  ;;  %v4104_v43 = vmul.f32 %v5235_v22, %v4060_v8  ;;  %vm4110_vm8 = vweird.f32 %v5235_v22 }
 0x946   : > { %5236 = vrsqrt.f32 %v4063_v31  ;;  %v4058_v58 = vadd.f32 1e-05, %v4042_v27  ;;  %v7411_v29 = vsub.f32 %v7329_v52, %v3976_v37  ;;  %vm4111_vm10 = vmor %vm4109_vm9, %vm4110_vm8  ;;  %vm4139_vm12 = vweird.f32 %v4063_v31 }
 0x947   : > { %v4082_v14 = vsel %vm4081_vm7, %v5233_v53, %v4078_v50  ;;  %v4105_v15 = vmul.f32 %v5235_v22, %v4104_v43 }
 0x948   : > { %v4233_v36 = vmul.f32 %v4082_v14, %v7300_v32  ;;  %5238 = vrsqrt.f32 %v4058_v58  ;;  %v4008_v13 = vmul.f32 %v7411_v29, %v7411_v29  ;;  %vm4089_vm15 = vweird.f32 %v4058_v58 }
 0x949   : > { %v4106_v26 = vmul.f32 0.5, %v4105_v15 }
 0x94a   : > { %v4252_v55 = vmul.f32 %v7408_v23, %v4233_v36  ;;  %4039 = vadd.xlane.f32.xlu2 %v4008_v13 }
 0x94b   : > { %v4107_v52 = vsub.f32 1.5, %v4106_v26  ;;  %v4018_v39 = vpop.xlane.xlu1 %4017  ;;  %v4014_v57 = vpop.xlane.xlu0 %4013 }
 0x94c   : > { %v5237_v35 = vpop.eup %5236  ;;  %v7425_v19 = vadd.f32 %v7418_v0, %v4252_v55  ;;  %v4045_v7 = vmul.f32 %v4018_v39, %v6860_v16  ;;  %v4043_v32 = vmul.f32 %v4014_v57, %v6860_v16 }
 0x94d   : > { %v4108_v5 = vmul.f32 %v5235_v22, %v4107_v52  ;;  %v4134_v1 = vmul.f32 %v5237_v35, %v4063_v31  ;;  %vm4140_vm11 = vweird.f32 %v5237_v35 }
 0x94e   : > { %v5239_v59 = vpop.eup %5238  ;;  %4287 = vst [vmem:[#allocation2 + $0x30] sm:$0xff] %v7425_v19  ;;  %v4061_v3 = vadd.f32 1e-05, %v4045_v7  ;;  %v7430_v24 = vadd.f32 1e-05, %v4043_v32  ;;  %vm4141_vm14 = vmor %vm4139_vm12, %vm4140_vm11 }
 0x94f   : > { %v4112_v49 = vsel %vm4111_vm10, %v5235_v22, %v4108_v5  ;;  %v4135_v33 = vmul.f32 %v5237_v35, %v4134_v1  ;;  %v4084_v6 = vmul.f32 %v5239_v59, %v4058_v58  ;;  %vm4090_vm13 = vweird.f32 %v5239_v59 }
 0x950   : > { %v4236_v30 = vmul.f32 %v4112_v49, %v7306_v34  ;;  %5240 = vrsqrt.f32 %v4061_v3  ;;  %vm4091_vm0 = vmor %vm4089_vm15, %vm4090_vm13  ;;  %vm4119_vm3 = vweird.f32 %v4061_v3  ;;  %vm4099_vm5 = vweird.f32 %v7430_v24 }
 0x951   : > { %v4136_v12 = vmul.f32 0.5, %v4135_v33  ;;  %v4085_v46 = vmul.f32 %v5239_v59, %v4084_v6  ;;  %5242 = vrsqrt.f32 %v7430_v24 }
 0x952   : > { %v4255_v11 = vmul.f32 %v7408_v23, %v4236_v30 }
 0x953   : > { %v4137_v20 = vsub.f32 1.5, %v4136_v12  ;;  %v4086_v25 = vmul.f32 0.5, %v4085_v46  ;;  %v4024_v53 = vpop.xlane.xlu1 %4023  ;;  %v4020_v8 = vpop.xlane.xlu0 %4019 }
 0x954   : > { %v4274_v56 = vadd.f32 %v7418_v0, %v4255_v11  ;;  %v4048_v40 = vmul.f32 %v4024_v53, %v6860_v16  ;;  %v4046_v9 = vmul.f32 %v4020_v8, %v6860_v16 }
 0x955   : > { %v4138_v44 = vmul.f32 %v5237_v35, %v4137_v20  ;;  %v4087_v34 = vsub.f32 1.5, %v4086_v25 }
 0x956   : > { %v5241_v28 = vpop.eup %5240  ;;  %4290 = vst [vmem:[#allocation2 + $0x18] sm:$0xff] %v4274_v56  ;;  %v4064_v38 = vadd.f32 1e-05, %v4048_v40  ;;  %v7438_v42 = vadd.f32 1e-05, %v4046_v9 }
 0x957   : > { %v5243_v18 = vpop.eup %5242  ;;  %v4142_v45 = vsel %vm4141_vm14, %v5237_v35, %v4138_v44  ;;  %v4088_v60 = vmul.f32 %v5239_v59, %v4087_v34  ;;  %v4114_v22 = vmul.f32 %v5241_v28, %v4061_v3  ;;  %vm4120_vm1 = vweird.f32 %v5241_v28 }
 0x958   : > { %v4239_v27 = vmul.f32 %v4142_v45, %v7321_v21  ;;  %v4094_v37 = vmul.f32 %v5243_v18, %v7430_v24  ;;  %5244 = vrsqrt.f32 %v4064_v38  ;;  %vm4100_vm2 = vweird.f32 %v5243_v18  ;;  %vm4121_vm4 = vmor %vm4119_vm3, %vm4120_vm1 }
 0x959   : > { %v4092_v31 = vsel %vm4091_vm0, %v5239_v59, %v4088_v60  ;;  %v4115_v50 = vmul.f32 %v5241_v28, %v4114_v22  ;;  %5246 = vrsqrt.f32 %v7438_v42  ;;  %vm4101_vm6 = vmor %vm4099_vm5, %vm4100_vm2  ;;  %vm4149_vm9 = vweird.f32 %v4064_v38 }
 0x95a   : > { %v4258_v43 = vmul.f32 %v7408_v23, %v4239_v27  ;;  %v4234_v14 = vmul.f32 %v4092_v31, %v7318_v48  ;;  %v4095_v15 = vmul.f32 %v5243_v18, %v4094_v37  ;;  %vm4129_vm11 = vweird.f32 %v7438_v42 }
 0x95b   : > { %v4116_v36 = vmul.f32 0.5, %v4115_v50 }
 0x95c   : > { %v4277_v13 = vadd.f32 %v7418_v0, %v4258_v43  ;;  %v4253_v58 = vmul.f32 %v7408_v23, %v4234_v14  ;;  %v4096_v26 = vmul.f32 0.5, %v4095_v15 }
 0x95d   : > { %v4117_v21 = vsub.f32 1.5, %v4116_v36 }
 0x95e   : > { %v5245_v55 = vpop.eup %5244  ;;  %4293 = vst [vmem:[#allocation2 + $0x8] sm:$0xff] %v4277_v13  ;;  %v4272_v52 = vadd.f32 %v7418_v0, %v4253_v58  ;;  %v4097_v39 = vsub.f32 1.5, %v4096_v26 }
 0x95f   : > { %v5247_v57 = vpop.eup %5246  ;;  %v4118_v35 = vmul.f32 %v5241_v28, %v4117_v21  ;;  %v4144_v7 = vmul.f32 %v5245_v55, %v4064_v38  ;;  %vm4150_vm7 = vweird.f32 %v5245_v55 }
 0x960   : > { %4288 = vst [vmem:[#allocation2] sm:$0xff] %v4272_v52  ;;  %v4098_v48 = vmul.f32 %v5243_v18, %v4097_v39  ;;  %v4124_v32 = vmul.f32 %v5247_v57, %v7438_v42  ;;  %vm4130_vm8 = vweird.f32 %v5247_v57  ;;  %vm4151_vm10 = vmor %vm4149_vm9, %vm4150_vm7 }
 0x961   : > { %v4122_v5 = vsel %vm4121_vm4, %v5241_v28, %v4118_v35  ;;  %v4145_v1 = vmul.f32 %v5245_v55, %v4144_v7  ;;  %vm4131_vm12 = vmor %vm4129_vm11, %vm4130_vm8 }
 0x962   : > { %v4237_v59 = vmul.f32 %v4122_v5, %v7338_v62  ;;  %v4102_v49 = vsel %vm4101_vm6, %v5243_v18, %v4098_v48  ;;  %v4125_v33 = vmul.f32 %v5247_v57, %v4124_v32 }
 0x963   : > { %v4235_v6 = vmul.f32 %v4102_v49, %v7335_v4  ;;  %v4146_v30 = vmul.f32 0.5, %v4145_v1 }
 0x964   : > { %v4256_v3 = vmul.f32 %v7408_v23, %v4237_v59  ;;  %v4126_v12 = vmul.f32 0.5, %v4125_v33 }
 0x965   : > { %v4254_v46 = vmul.f32 %v7408_v23, %v4235_v6  ;;  %v4147_v11 = vsub.f32 1.5, %v4146_v30 }
 0x966   : > { %v4275_v24 = vadd.f32 %v7418_v0, %v4256_v3  ;;  %v4127_v20 = vsub.f32 1.5, %v4126_v12 }
 0x967   : > { %v4273_v25 = vadd.f32 %v7418_v0, %v4254_v46  ;;  %v4148_v53 = vmul.f32 %v5245_v55, %v4147_v11  ;;  %v4026_v62 = vpop.xlane.xlu0 %4025 }
 0x968   : > { %4291 = vst [vmem:[#allocation2 + $0x50] sm:$0xff] %v4275_v24  ;;  %v4128_v4 = vmul.f32 %v5247_v57, %v4127_v20  ;;  %v4049_v8 = vmul.f32 %v4026_v62, %v6860_v16 }
 0x969   : > { %4289 = vst [vmem:[#allocation2 + $0x58] sm:$0xff] %v4273_v25  ;;  %v4152_v56 = vsel %vm4151_vm10, %v5245_v55, %v4148_v53 }
 0x96a   : > { %v4240_v40 = vmul.f32 %v4152_v56, %v7350_v61  ;;  %v4132_v9 = vsel %vm4131_vm12, %v5247_v57, %v4128_v4  ;;  %v4065_v44 = vadd.f32 1e-05, %v4049_v8 }
 0x96b   : > { %v4238_v34 = vmul.f32 %v4132_v9, %v7347_v10 }
 0x96c   : > { %v4259_v28 = vmul.f32 %v7408_v23, %v4240_v40  ;;  %5248 = vrsqrt.f32 %v4065_v44  ;;  %vm4159_vm14 = vweird.f32 %v4065_v44 }
 0x96d   : > { %v4257_v38 = vmul.f32 %v7408_v23, %v4238_v34 }
 0x96e   : > { %v4278_v18 = vadd.f32 %v7418_v0, %v4259_v28 }
 0x96f   : > { %v4276_v42 = vadd.f32 %v7418_v0, %v4257_v38  ;;  %v4028_v45 = vpop.xlane.xlu2 %4027 }
 0x970   : > { %4294 = vst [vmem:[#allocation2 + $0x48] sm:$0xff] %v4278_v18  ;;  %v4050_v60 = vmul.f32 %v4028_v45, %v6860_v16 }
 0x971   : > { %4292 = vst [vmem:[#allocation2 + $0x68] sm:$0xff] %v4276_v42 }
 0x972   : > { %v5249_v22 = vpop.eup %5248  ;;  %v4066_v61 = vadd.f32 1e-05, %v4050_v60 }
 0x973   : > { %v4154_v27 = vmul.f32 %v5249_v22, %v4065_v44  ;;  %vm4160_vm13 = vweird.f32 %v5249_v22 }
 0x974   : > { %5250 = vrsqrt.f32 %v4066_v61  ;;  %vm4161_vm15 = vmor %vm4159_vm14, %vm4160_vm13  ;;  %vm4169_vm1 = vweird.f32 %v4066_v61 }
 0x975   : > { %v4155_v37 = vmul.f32 %v5249_v22, %v4154_v27 }
 0x977   : > { %v4156_v10 = vmul.f32 0.5, %v4155_v37  ;;  %v4030_v31 = vpop.xlane.xlu1 %4029 }
 0x978   : > { %v4051_v50 = vmul.f32 %v4030_v31, %v6860_v16 }
 0x979   : > { %v4157_v43 = vsub.f32 1.5, %v4156_v10 }
 0x97a   : > { %v5251_v14 = vpop.eup %5250  ;;  %v4067_v15 = vadd.f32 1e-05, %v4051_v50 }
 0x97b   : > { %v4158_v36 = vmul.f32 %v5249_v22, %v4157_v43  ;;  %v4164_v13 = vmul.f32 %v5251_v14, %v4066_v61  ;;  %vm4170_vm0 = vweird.f32 %v5251_v14 }
 0x97c   : > { %5252 = vrsqrt.f32 %v4067_v15  ;;  %vm4171_vm2 = vmor %vm4169_vm1, %vm4170_vm0  ;;  %vm4179_vm4 = vweird.f32 %v4067_v15 }
 0x97d   : > { %v4162_v58 = vsel %vm4161_vm15, %v5249_v22, %v4158_v36  ;;  %v4165_v26 = vmul.f32 %v5251_v14, %v4164_v13 }
 0x97e   : > { %v4241_v21 = vmul.f32 %v4162_v58, %v7358_v2 }
 0x97f   : > { %v4166_v55 = vmul.f32 0.5, %v4165_v26  ;;  %v4032_v52 = vpop.xlane.xlu0 %4031 }
 0x980   : > { %v4260_v39 = vmul.f32 %v7408_v23, %v4241_v21  ;;  %v4052_v57 = vmul.f32 %v4032_v52, %v6860_v16 }
 0x981   : > { %v4167_v35 = vsub.f32 1.5, %v4166_v55 }
 0x982   : > { %v5253_v7 = vpop.eup %5252  ;;  %v4279_v48 = vadd.f32 %v7418_v0, %v4260_v39  ;;  %v4068_v32 = vadd.f32 1e-05, %v4052_v57 }
 0x983   : > { %v4168_v5 = vmul.f32 %v5251_v14, %v4167_v35  ;;  %v4174_v1 = vmul.f32 %v5253_v7, %v4067_v15  ;;  %vm4180_vm3 = vweird.f32 %v5253_v7 }
 0x984   : > { %4295 = vst [vmem:[#allocation2 + $0x40] sm:$0xff] %v4279_v48  ;;  %5254 = vrsqrt.f32 %v4068_v32  ;;  %vm4181_vm5 = vmor %vm4179_vm4, %vm4180_vm3  ;;  %vm4189_vm7 = vweird.f32 %v4068_v32 }
 0x985   : > { %v4172_v59 = vsel %vm4171_vm2, %v5251_v14, %v4168_v5  ;;  %v4175_v2 = vmul.f32 %v5253_v7, %v4174_v1 }
 0x986   : > { %v4242_v49 = vmul.f32 %v4172_v59, %v7364_v47 }
 0x987   : > { %v4176_v33 = vmul.f32 0.5, %v4175_v2  ;;  %v4034_v6 = vpop.xlane.xlu2 %4033 }
 0x988   : > { %v4261_v30 = vmul.f32 %v7408_v23, %v4242_v49  ;;  %v4053_v3 = vmul.f32 %v4034_v6, %v6860_v16 }
 0x989   : > { %v4177_v12 = vsub.f32 1.5, %v4176_v33 }
 0x98a   : > { %v5255_v46 = vpop.eup %5254  ;;  %v4280_v11 = vadd.f32 %v7418_v0, %v4261_v30  ;;  %v4069_v24 = vadd.f32 1e-05, %v4053_v3 }
 0x98b   : > { %v4178_v20 = vmul.f32 %v5253_v7, %v4177_v12  ;;  %v4184_v25 = vmul.f32 %v5255_v46, %v4068_v32  ;;  %vm4190_vm6 = vweird.f32 %v5255_v46 }
 0x98c   : > { %4296 = vst [vmem:[#allocation2 + $0x20] sm:$0xff] %v4280_v11  ;;  %5256 = vrsqrt.f32 %v4069_v24  ;;  %vm4191_vm8 = vmor %vm4189_vm7, %vm4190_vm6  ;;  %vm4199_vm10 = vweird.f32 %v4069_v24 }
 0x98d   : > { %v4182_v53 = vsel %vm4181_vm5, %v5253_v7, %v4178_v20  ;;  %v4185_v47 = vmul.f32 %v5255_v46, %v4184_v25 }
 0x98e   : > { %v4243_v62 = vmul.f32 %v4182_v53, %v7370_v54 }
 0x98f   : > { %v4186_v4 = vmul.f32 0.5, %v4185_v47  ;;  %v4036_v8 = vpop.xlane.xlu1 %4035 }
 0x990   : > { %v4262_v56 = vmul.f32 %v7408_v23, %v4243_v62  ;;  %v4054_v40 = vmul.f32 %v4036_v8, %v6860_v16 }
 0x991   : > { %v4187_v9 = vsub.f32 1.5, %v4186_v4 }
 0x992   : > { %v5257_v44 = vpop.eup %5256  ;;  %v4281_v34 = vadd.f32 %v7418_v0, %v4262_v56  ;;  %v4070_v28 = vadd.f32 1e-05, %v4054_v40 }
 0x993   : > { %v4188_v38 = vmul.f32 %v5255_v46, %v4187_v9  ;;  %v4194_v18 = vmul.f32 %v5257_v44, %v4069_v24  ;;  %vm4200_vm9 = vweird.f32 %v5257_v44 }
 0x994   : > { %4297 = vst [vmem:[#allocation2 + $0x10] sm:$0xff] %v4281_v34  ;;  %5258 = vrsqrt.f32 %v4070_v28  ;;  %vm4201_vm11 = vmor %vm4199_vm10, %vm4200_vm9  ;;  %vm4209_vm13 = vweird.f32 %v4070_v28 }
 0x995   : > { %v4192_v42 = vsel %vm4191_vm8, %v5255_v46, %v4188_v38  ;;  %v4195_v54 = vmul.f32 %v5257_v44, %v4194_v18 }
 0x996   : > { %v4244_v45 = vmul.f32 %v4192_v42, %v7376_v51 }
 0x997   : > { %v4196_v60 = vmul.f32 0.5, %v4195_v54 }
 0x998   : > { %v4263_v22 = vmul.f32 %v7408_v23, %v4244_v45 }
 0x999   : > { %v4197_v61 = vsub.f32 1.5, %v4196_v60 }
 0x99a   : > { %v5259_v27 = vpop.eup %5258  ;;  %v4282_v37 = vadd.f32 %v7418_v0, %v4263_v22 }
 0x99b   : > { %v4198_v10 = vmul.f32 %v5257_v44, %v4197_v61  ;;  %v4204_v31 = vmul.f32 %v5259_v27, %v4070_v28  ;;  %vm4210_vm12 = vweird.f32 %v5259_v27 }
 0x99c   : > { %4298 = vst [vmem:[#allocation2 + $0x38] sm:$0xff] %v4282_v37  ;;  %vm4211_vm14 = vmor %vm4209_vm13, %vm4210_vm12 }
 0x99d   : > { %v4202_v50 = vsel %vm4201_vm11, %v5257_v44, %v4198_v10  ;;  %v4205_v43 = vmul.f32 %v5259_v27, %v4204_v31 }
 0x99e   : > { %v4245_v14 = vmul.f32 %v4202_v50, %v7382_v17 }
 0x99f   : > { %v4206_v15 = vmul.f32 0.5, %v4205_v43 }
 0x9a0   : > { %v4264_v51 = vmul.f32 %v7408_v23, %v4245_v14 }
 0x9a1   : > { %v4207_v36 = vsub.f32 1.5, %v4206_v15 }
 0x9a2   : > { %v4283_v13 = vadd.f32 %v7418_v0, %v4264_v51 }
 0x9a3   : > { %v4208_v58 = vmul.f32 %v5259_v27, %v4207_v36 }
 0x9a4   : > { %4299 = vst [vmem:[#allocation2 + $0x60] sm:$0xff] %v4283_v13 }
 0x9a5   : > { %v4212_v26 = vsel %vm4211_vm14, %v5259_v27, %v4208_v58 }
 0x9a6   : > { %v4246_v21 = vmul.f32 %v4212_v26, %v7388_v63 }
 0x9a8   : > { %v4265_v55 = vmul.f32 %v7408_v23, %v4246_v21 }
 0x9aa   : > { %v4284_v52 = vadd.f32 %v7418_v0, %v4265_v55 }
 0x9ac   : > { %4300 = vst [vmem:[#allocation2 + $0x70] sm:$0xff] %v4284_v52 }
 0x9b5   : > { %v4038_v17 = vpop.xlane.xlu0 %4037 }
 0x9b6   : > { %v4055_v39 = vmul.f32 %v4038_v17, %v6860_v16 }
 0x9b8   : > { %v4071_v57 = vadd.f32 1e-05, %v4055_v39 }
 0x9ba   : > { %5260 = vrsqrt.f32 %v4071_v57  ;;  %vm4219_vm0 = vweird.f32 %v4071_v57 }
 0x9bd   : > { %v4040_v35 = vpop.xlane.xlu2 %4039 }
 0x9be   : > { %v4056_v7 = vmul.f32 %v4040_v35, %v6860_v16 }
 0x9c0   : > { %v5261_v48 = vpop.eup %5260  ;;  %v4072_v32 = vadd.f32 1e-05, %v4056_v7 }
 0x9c1   : > { %v4214_v5 = vmul.f32 %v5261_v48, %v4071_v57  ;;  %vm4220_vm15 = vweird.f32 %v5261_v48 }
 0x9c2   : > { %5262 = vrsqrt.f32 %v4072_v32  ;;  %vm4221_vm1 = vmor %vm4219_vm0, %vm4220_vm15  ;;  %vm4229_vm3 = vweird.f32 %v4072_v32 }
 0x9c3   : > { %v4215_v1 = vmul.f32 %v5261_v48, %v4214_v5 }
 0x9c5   : > { %v4216_v59 = vmul.f32 0.5, %v4215_v1 }
 0x9c7   : > { %v4217_v63 = vsub.f32 1.5, %v4216_v59 }
 0x9c8   : > { %v5263_v2 = vpop.eup %5262 }
 0x9c9   : > { %v4218_v49 = vmul.f32 %v5261_v48, %v4217_v63  ;;  %v4224_v33 = vmul.f32 %v5263_v2, %v4072_v32  ;;  %vm4230_vm2 = vweird.f32 %v5263_v2 }
 0x9ca   : > { %vm4231_vm4 = vmor %vm4229_vm3, %vm4230_vm2 }
 0x9cb   : > { %v4222_v6 = vsel %vm4221_vm1, %v5261_v48, %v4218_v49  ;;  %v4225_v30 = vmul.f32 %v5263_v2, %v4224_v33 }
 0x9cc   : > { %v4247_v3 = vmul.f32 %v4222_v6, %v7396_v41 }
 0x9cd   : > { %v4226_v12 = vmul.f32 0.5, %v4225_v30 }
 0x9ce   : > { %v4266_v16 = vmul.f32 %v7408_v23, %v4247_v3 }
 0x9cf   : > { %v4227_v46 = vsub.f32 1.5, %v4226_v12 }
 0x9d0   : > { %v4285_v11 = vadd.f32 %v7418_v0, %v4266_v16 }
 0x9d1   : > { %v4228_v24 = vmul.f32 %v5263_v2, %v4227_v46 }
 0x9d2   : > { %4301 = vst [vmem:[#allocation2 + $0x78] sm:$0xff] %v4285_v11 }
 0x9d3   : > { %v4232_v20 = vsel %vm4231_vm4, %v5263_v2, %v4228_v24 }
 0x9d4   : > { %v4248_v25 = vmul.f32 %v4232_v20, %v7411_v29 }
 0x9d6   : > { %v4267_v53 = vmul.f32 %v7408_v23, %v4248_v25  ;;  %4306 = sbr.rel (%p4809_p8) target bundleno = 2761 (0xac9), region = 88 }
 0x9d8   : > { %v4286_v47 = vadd.f32 %v7418_v0, %v4267_v53 }
 0x9da   : > { %4302 = vst [vmem:[#allocation2 + $0x28] sm:$0xff] %v4286_v47 }
 0x9db   : > { %v4307_v41 = vld [vmem:[%s7623_s14] sm:$0x1]  ;;  %vm4309_vm5 = vcmask 1040384   ;;  %v5326_v8 = vmov 0  }
 0x9dc   : > { %v4308_v62 = vmul.f32 %v4307_v41, %v7425_v19  ;;  %5280 = vset.pattern.permute.xlu0 %v5326_v8  ;;  %v4313_v29 = vld [vmem:[#allocation3] sm:$0x1] }
 0x9de   : > { %v4310_v4 = vsel %vm4309_vm5, %v4308_v62, 0.0 }
 0x9df   : > { %4311 = vadd.xlane.f32.xlu0 %v4310_v4 }
 0xa52   : > { %v4312_v23 = vpop.xlane.xlu0 %4311 }
 0xa53   : > { %v4314_v56 = vadd.f32 %v4313_v29, %v4312_v23 }
 0xa55   : > { %4317 = vperm.xlu0 %5280, %v4314_v56  }
 0xac7   : > { %v4318_v0 = vpop.permute.xlu0 %4317 }
 0xac8   : > { %4320 = vst [vmem:[%s7626_s24] sm:$0x1] %v4318_v0 }
 0xac9 PF: > { %s7627_s18 = sld [smem:[#allocation7_spill]] }
 0xaca   : > { %s7628_s20 = sld [smem:[#allocation5_spill]] }
 0xacb   : > { %s7629_s21 = sld [smem:[#allocation6_spill]] }
 0xacc   : > { %s7630_s22 = sld [smem:[#allocation8_spill]] }
 0xacd   : > { %s7631_s23 = sld [smem:[#allocation9_spill]] }
 0xacf   : > { %s27_s24 = sadd.s32 1, %s7627_s18  }
 0xad0   : > { %p24_p9 = scmp.ge.s32.totalorder %s27_s24, 6  }
 0xad2   :  { %26 = sbr.rel (!%p24_p9) target bundleno = 8 (0x8), region = 154 }

</bundles_post_ra>
